<compile_context>
chip_gen: v6e
topology: v6e:2x2x1
jax: 0.10.0
libtpu: 0.0.40
codegen_flags: <defaults>
</compile_context>

<pallas_src>
import functools

import jax
import jax.numpy as jnp
from jax import lax
from jax.experimental import pallas as pl
from jax.experimental.pallas import tpu as pltpu

# ----------------------------- small config ---------------------------------
# (the reference hardcodes n_embd=384, n_head=8, n_layer=8, block_size=256;
#  we use small but structurally identical values for this synthetic kernel)
N_EMBD = 128
N_HEAD = 4
HEAD_SIZE = N_EMBD // N_HEAD
N_LAYER = 2
BLOCK_SIZE = 16          # max sequence length
VOCAB_SIZE = 256
EPS = 1e-5               # torch LayerNorm default

INV_SQRT2 = 0.7071067811865476


# ----------------------------- in-kernel helpers -----------------------------
def _layer_norm(x, gamma, beta):
    # single-pass variance E[x^2] - mu^2 (one lane reduction).  Kept in f32;
    # revert to two-pass (x-mu)^2 if activations grow / go bf16.
    mu = jnp.mean(x, axis=-1, keepdims=True)
    var = jnp.mean(x * x, axis=-1, keepdims=True) - mu * mu
    return (x - mu) * lax.rsqrt(var + EPS) * gamma + beta


def _gelu_exact(x):
    return 0.5 * x * (1.0 + lax.erf(x * INV_SQRT2))


# ----------------------------- fused Pallas kernel ---------------------------
def gpt_kernel(x_ref,
               g1_ref, b1_ref, wqkv_ref, wp_ref, bp_ref,
               g2_ref, b2_ref, w1_ref, bf1_ref, w2_ref, bf2_ref,
               gf_ref, bf_ref, wlm_ref, blm_ref,
               o_ref, *, n_layer, n_head, head_size):
    """Whole GPT forward for one (B, T, C) activation slab, single launch.

    Matmul weights are bf16 and stacked along a leading L axis; activations are
    cast to bf16 only at dot operands (f32 accumulation everywhere).
    """
    bf16 = jnp.bfloat16
    xb = x_ref[...]                                 # (B, T, C) f32
    B, T, C = xb.shape
    BT = B * T
    x = xb.reshape(BT, C)                           # lane/sublane-dense slab
    scale = 1.0 / (C ** 0.5)                        # matches `/ C ** 0.5` (C = n_embd)

    for l in range(n_layer):                        # static unroll over layers
        # ---- attention branch (pre-LN) ------------------------------------
        xn = _layer_norm(x, g1_ref[l], b1_ref[l])   # (BT, C) f32
        # fused QKV projection: one (BT, C) @ (C, 3C) bf16 matmul
        qkv = jnp.dot(xn.astype(bf16), wqkv_ref[l],
                      preferred_element_type=jnp.float32)        # (BT, 3C) f32
        q = (qkv[:, :C] * scale).reshape(B, T, C)   # scale folded in once per layer
        k = qkv[:, C:2 * C].reshape(B, T, C)
        v = qkv[:, 2 * C:].reshape(B, T, C)

        # per-head attention (3-D batch-leading einsums); head outputs are
        # lane-concatenated so the output projection is ONE K=C matmul.
        head_outs = []
        for h in range(n_head):                     # static unroll over heads
            sl = slice(h * head_size, (h + 1) * head_size)
            s = jnp.einsum('btd,bsd->bts',
                           q[..., sl].astype(bf16), k[..., sl].astype(bf16),
                           preferred_element_type=jnp.float32)   # (B,T,T) f32
            s = s - jnp.max(s, axis=-1, keepdims=True)
            p = jnp.exp(s)
            p = p * pl.reciprocal(jnp.sum(p, axis=-1, keepdims=True), approx=True)
            head_outs.append(
                jnp.einsum('bts,bsd->btd',
                           p.astype(bf16), v[..., sl].astype(bf16),
                           preferred_element_type=jnp.float32))  # (B,T,hs)
        cat = jnp.concatenate(head_outs, axis=-1).reshape(BT, C)  # heads contiguous in lanes
        attn = jnp.dot(cat.astype(bf16), wp_ref[l],
                       preferred_element_type=jnp.float32)        # single K=C projection
        x = x + attn + bp_ref[l]                    # residual 1

        # ---- feed-forward branch (pre-LN) ----------------------------------
        xn2 = _layer_norm(x, g2_ref[l], b2_ref[l])
        h1 = jnp.dot(xn2.astype(bf16), w1_ref[l],
                     preferred_element_type=jnp.float32) + bf1_ref[l]
        h1 = _gelu_exact(h1)                        # exact (erf) GELU, f32
        x = x + jnp.dot(h1.astype(bf16), w2_ref[l],
                        preferred_element_type=jnp.float32) + bf2_ref[l]

    # ---- final LayerNorm + lm_head ------------------------------------------
    xf = _layer_norm(x, gf_ref[...], bf_ref[...])
    logits = jnp.dot(xf.astype(bf16), wlm_ref[...],
                     preferred_element_type=jnp.float32) + blm_ref[...]
    V = wlm_ref.shape[-1]
    o_ref[...] = logits.reshape(B, T, V).astype(o_ref.dtype)


# ----------------------------- wrapper ----------------------------------------
def _cost_estimate(B, T):
    C, H, V, hs, nh, L = N_EMBD, 4 * N_EMBD, VOCAB_SIZE, HEAD_SIZE, N_HEAD, N_LAYER
    BT = B * T
    flops_layer = (2 * BT * C * (3 * C)                 # fused qkv projection
                   + 4 * B * nh * T * T * hs            # scores + p@v
                   + 2 * BT * C * C                     # output projection
                   + 4 * BT * C * H)                    # MLP (two matmuls)
    flops = L * flops_layer + 2 * BT * C * V            # + lm_head
    transcendentals = L * (B * nh * T * T               # exp
                           + BT * H                     # erf
                           + B * nh * T                 # approx reciprocal
                           + 2 * BT) + BT               # rsqrt
    weight_bytes = (2 * L * (3 * C * C + C * C + 2 * C * H)   # bf16 matmul weights
                    + 2 * C * V                                 # bf16 lm_head
                    + 4 * (L * (6 * C + H) + 2 * C + V))        # f32 biases/gammas
    bytes_accessed = 4 * (BT * C + BT * V) + weight_bytes
    return pl.CostEstimate(flops=int(flops),
                           transcendentals=int(transcendentals),
                           bytes_accessed=int(bytes_accessed))


@jax.jit
def gpt_forward(idx, params):
    """idx: (B, T) int32 token ids -> logits (B, T, VOCAB_SIZE) f32."""
    B, T = idx.shape
    # Embedding gathers are glue (pure JAX); everything else runs in one fused
    # Pallas kernel with all weights VMEM-resident.
    tok = jnp.take(params["tok_emb"], idx, axis=0)          # (B, T, C)
    pos = params["pos_emb"][:T][None, :, :]                 # (1, T, C)
    x = tok + pos

    kern = functools.partial(gpt_kernel, n_layer=N_LAYER,
                             n_head=N_HEAD, head_size=HEAD_SIZE)
    return pl.pallas_call(
        kern,
        out_shape=jax.ShapeDtypeStruct((B, T, VOCAB_SIZE), jnp.float32),
        compiler_params=pltpu.CompilerParams(vmem_limit_bytes=32 * 1024 * 1024),
        cost_estimate=_cost_estimate(B, T),
    )(x,
      params["g1"], params["b1"],
      params["wqkv"], params["wp"], params["bp"],
      params["g2"], params["b2"],
      params["w1"], params["bf1"], params["w2"], params["bf2"],
      params["g_f"], params["b_f"], params["w_lm"], params["b_lm"])


# ----------------------------- parameter init --------------------------------
def init_params(key):
    C, H, V, L = N_EMBD, 4 * N_EMBD, VOCAB_SIZE, N_LAYER
    keys = iter(jax.random.split(key, 16))

    def nrm(shape, scale=0.02):
        return (scale * jax.random.normal(next(keys), shape)).astype(jnp.float32)

    def bf(a):
        return a.astype(jnp.bfloat16)

    wq, wk, wv = nrm((L, C, C)), nrm((L, C, C)), nrm((L, C, C))
    # Matmul weights stored in bf16 (halves weight footprint/DMA); biases and LN
    # affine params stay f32.  "x @ W" layout, layers stacked on leading L axis.
    return {
        "tok_emb": nrm((V, C), 1.0),
        "pos_emb": nrm((BLOCK_SIZE, C), 1.0),
        "g1": jnp.ones((L, 1, C), jnp.float32),
        "b1": jnp.zeros((L, 1, C), jnp.float32),
        "wqkv": bf(jnp.concatenate([wq, wk, wv], axis=-1)),   # (L, C, 3C) packed
        "wp": bf(nrm((L, C, C))), "bp": nrm((L, 1, C)),
        "g2": jnp.ones((L, 1, C), jnp.float32),
        "b2": jnp.zeros((L, 1, C), jnp.float32),
        "w1": bf(nrm((L, C, H))), "bf1": nrm((L, 1, H)),
        "w2": bf(nrm((L, H, C))), "bf2": nrm((L, 1, C)),
        "g_f": jnp.ones((1, C), jnp.float32),
        "b_f": jnp.zeros((1, C), jnp.float32),
        "w_lm": bf(nrm((C, V))), "b_lm": nrm((1, V)),
    }


# ----------------------------- pure-JAX reference -----------------------------
def _ref_forward(idx, params):
    # f32 reference using the SAME (bf16-stored) weight values, so the comparison
    # only sees the kernel's activation bf16 casts / approx reciprocal.
    def ln(x, g, b):
        mu = x.mean(-1, keepdims=True)
        var = ((x - mu) ** 2).mean(-1, keepdims=True)
        return (x - mu) / jnp.sqrt(var + EPS) * g + b

    def f32(a):
        return a.astype(jnp.float32)

    B, T = idx.shape
    C = N_EMBD
    x = jnp.take(params["tok_emb"], idx, axis=0) + params["pos_emb"][:T][None]
    for l in range(N_LAYER):
        wqkv = f32(params["wqkv"][l])
        xn = ln(x, params["g1"][l, 0], params["b1"][l, 0])
        q = xn @ wqkv[:, :C]
        k = xn @ wqkv[:, C:2 * C]
        v = xn @ wqkv[:, 2 * C:]
        heads = []
        for h in range(N_HEAD):
            sl = slice(h * HEAD_SIZE, (h + 1) * HEAD_SIZE)
            s = (q[..., sl] @ jnp.swapaxes(k[..., sl], -1, -2)) / (C ** 0.5)
            heads.append(jax.nn.softmax(s, axis=-1) @ v[..., sl])
        attn = jnp.concatenate(heads, axis=-1) @ f32(params["wp"][l]) + params["bp"][l, 0]
        x = x + attn
        xn2 = ln(x, params["g2"][l, 0], params["b2"][l, 0])
        h1 = jax.nn.gelu(xn2 @ f32(params["w1"][l]) + params["bf1"][l, 0],
                         approximate=False)
        x = x + (h1 @ f32(params["w2"][l]) + params["bf2"][l, 0])
    xf = ln(x, params["g_f"][0], params["b_f"][0])
    return xf @ f32(params["w_lm"]) + params["b_lm"][0]


# ----------------------------- main -------------------------------------------
if __name__ == "__main__":
    key = jax.random.PRNGKey(0)
    kp, ki = jax.random.split(key)
    params = init_params(kp)

    B, T = 2, 8
    idx = jax.random.randint(ki, (B, T), 0, VOCAB_SIZE, dtype=jnp.int32)

    logits = gpt_forward(idx, params)
    logits = jax.block_until_ready(logits)

    ref = _ref_forward(idx, params)
    assert logits.shape == (B, T, VOCAB_SIZE)
    # tolerance covers bf16 dot operands + pl.reciprocal(approx=True) in softmax
    assert jnp.allclose(logits, ref, rtol=2e-2, atol=2e-2), "mismatch vs reference"

    print("KERNEL_OK")
</pallas_src>

<mosaic_0001>
module attributes {stable_mosaic.version = 11 : i64} {
  func.func @gpt_kernel(%arg0: memref<2x8x128xf32, #tpu.memory_space<vmem>>, %arg1: memref<2x1x128xf32, #tpu.memory_space<vmem>>, %arg2: memref<2x1x128xf32, #tpu.memory_space<vmem>>, %arg3: memref<2x128x384xbf16, #tpu.memory_space<vmem>>, %arg4: memref<2x128x128xbf16, #tpu.memory_space<vmem>>, %arg5: memref<2x1x128xf32, #tpu.memory_space<vmem>>, %arg6: memref<2x1x128xf32, #tpu.memory_space<vmem>>, %arg7: memref<2x1x128xf32, #tpu.memory_space<vmem>>, %arg8: memref<2x128x512xbf16, #tpu.memory_space<vmem>>, %arg9: memref<2x1x512xf32, #tpu.memory_space<vmem>>, %arg10: memref<2x512x128xbf16, #tpu.memory_space<vmem>>, %arg11: memref<2x1x128xf32, #tpu.memory_space<vmem>>, %arg12: memref<1x128xf32, #tpu.memory_space<vmem>>, %arg13: memref<1x128xf32, #tpu.memory_space<vmem>>, %arg14: memref<128x256xbf16, #tpu.memory_space<vmem>>, %arg15: memref<1x256xf32, #tpu.memory_space<vmem>>, %arg16: memref<2x8x256xf32, #tpu.memory_space<vmem>>) attributes {dimension_semantics = [], scalar_prefetch = 0 : i64, scratch_operands = 0 : i64, tpu.core_type = #tpu.core_type<tc>} {
    %c0 = arith.constant 0 : index
    %c0_0 = arith.constant 0 : index
    %c0_1 = arith.constant 0 : index
    %0 = vector.load %arg0[%c0, %c0_0, %c0_1] : memref<2x8x128xf32, #tpu.memory_space<vmem>>, vector<2x8x128xf32>
    %1 = vector.shape_cast %0 : vector<2x8x128xf32> to vector<16x128xf32>
    %c0_2 = arith.constant 0 : index
    %c0_3 = arith.constant 0 : index
    %c0_4 = arith.constant 0 : index
    %2 = vector.load %arg1[%c0_2, %c0_3, %c0_4] : memref<2x1x128xf32, #tpu.memory_space<vmem>>, vector<1x1x128xf32>
    %3 = vector.shape_cast %2 : vector<1x1x128xf32> to vector<1x128xf32>
    %c0_5 = arith.constant 0 : index
    %c0_6 = arith.constant 0 : index
    %c0_7 = arith.constant 0 : index
    %4 = vector.load %arg2[%c0_5, %c0_6, %c0_7] : memref<2x1x128xf32, #tpu.memory_space<vmem>>, vector<1x1x128xf32>
    %5 = vector.shape_cast %4 : vector<1x1x128xf32> to vector<1x128xf32>
    %cst = arith.constant dense<0.000000e+00> : vector<16xf32>
    %6 = vector.multi_reduction <add>, %1, %cst [1] : vector<16x128xf32> to vector<16xf32>
    %7 = vector.shape_cast %6 : vector<16xf32> to vector<16x1xf32>
    %cst_8 = arith.constant 1.280000e+02 : f32
    %8 = vector.broadcast %cst_8 : f32 to vector<16x1xf32>
    %9 = arith.divf %7, %8 : vector<16x1xf32>
    %10 = arith.mulf %1, %1 : vector<16x128xf32>
    %cst_9 = arith.constant dense<0.000000e+00> : vector<16xf32>
    %11 = vector.multi_reduction <add>, %10, %cst_9 [1] : vector<16x128xf32> to vector<16xf32>
    %12 = vector.shape_cast %11 : vector<16xf32> to vector<16x1xf32>
    %cst_10 = arith.constant 1.280000e+02 : f32
    %13 = vector.broadcast %cst_10 : f32 to vector<16x1xf32>
    %14 = arith.divf %12, %13 : vector<16x1xf32>
    %15 = arith.mulf %9, %9 : vector<16x1xf32>
    %16 = arith.subf %14, %15 : vector<16x1xf32>
    %17 = vector.broadcast %9 : vector<16x1xf32> to vector<16x128xf32>
    %18 = arith.subf %1, %17 : vector<16x128xf32>
    %cst_11 = arith.constant 9.99999974E-6 : f32
    %19 = vector.broadcast %cst_11 : f32 to vector<16x1xf32>
    %20 = arith.addf %16, %19 : vector<16x1xf32>
    %21 = math.rsqrt %20 : vector<16x1xf32>
    %22 = vector.broadcast %21 : vector<16x1xf32> to vector<16x128xf32>
    %23 = arith.mulf %18, %22 : vector<16x128xf32>
    %24 = vector.broadcast %3 : vector<1x128xf32> to vector<16x128xf32>
    %25 = arith.mulf %23, %24 : vector<16x128xf32>
    %26 = vector.broadcast %5 : vector<1x128xf32> to vector<16x128xf32>
    %27 = arith.addf %25, %26 : vector<16x128xf32>
    %28 = arith.truncf %27 : vector<16x128xf32> to vector<16x128xbf16>
    %c0_12 = arith.constant 0 : index
    %c0_13 = arith.constant 0 : index
    %c0_14 = arith.constant 0 : index
    %29 = vector.load %arg3[%c0_12, %c0_13, %c0_14] : memref<2x128x384xbf16, #tpu.memory_space<vmem>>, vector<1x128x384xbf16>
    %30 = vector.shape_cast %29 : vector<1x128x384xbf16> to vector<128x384xbf16>
    %cst_15 = arith.constant dense<0.000000e+00> : vector<16x384xf32>
    %31 = tpu.matmul %28, %30, %cst_15 {dimension_numbers = #tpu.dot_dimension_numbers<[1], [0], [0], [1], [0, 0, 1, 1], [], []>} : vector<16x128xbf16>, vector<128x384xbf16>, vector<16x384xf32> -> vector<16x384xf32>
    %32 = vector.extract_strided_slice %31 {offsets = [0, 0], sizes = [16, 128], strides = [1, 1]} : vector<16x384xf32> to vector<16x128xf32>
    %cst_16 = arith.constant 0.0883883461 : f32
    %33 = vector.broadcast %cst_16 : f32 to vector<16x128xf32>
    %34 = arith.mulf %32, %33 : vector<16x128xf32>
    %35 = vector.shape_cast %34 : vector<16x128xf32> to vector<2x8x128xf32>
    %36 = vector.extract_strided_slice %31 {offsets = [0, 128], sizes = [16, 128], strides = [1, 1]} : vector<16x384xf32> to vector<16x128xf32>
    %37 = vector.shape_cast %36 : vector<16x128xf32> to vector<2x8x128xf32>
    %38 = vector.extract_strided_slice %31 {offsets = [0, 256], sizes = [16, 128], strides = [1, 1]} : vector<16x384xf32> to vector<16x128xf32>
    %39 = vector.shape_cast %38 : vector<16x128xf32> to vector<2x8x128xf32>
    %40 = vector.extract_strided_slice %35 {offsets = [0, 0, 0], sizes = [2, 8, 32], strides = [1, 1, 1]} : vector<2x8x128xf32> to vector<2x8x32xf32>
    %41 = arith.truncf %40 : vector<2x8x32xf32> to vector<2x8x32xbf16>
    %42 = vector.extract_strided_slice %37 {offsets = [0, 0, 0], sizes = [2, 8, 32], strides = [1, 1, 1]} : vector<2x8x128xf32> to vector<2x8x32xf32>
    %43 = arith.truncf %42 : vector<2x8x32xf32> to vector<2x8x32xbf16>
    "tpu.trace_start"() <{level = 10 : i32, message = "btd,bsd->bts"}> : () -> ()
    %cst_17 = arith.constant dense<0.000000e+00> : vector<2x8x8xf32>
    %44 = tpu.matmul %41, %43, %cst_17 {dimension_numbers = #tpu.dot_dimension_numbers<[2], [2], [1], [1], [0, 0, 0, 1, 1, 1], [0], [0]>} : vector<2x8x32xbf16>, vector<2x8x32xbf16>, vector<2x8x8xf32> -> vector<2x8x8xf32>
    "tpu.trace_stop"() : () -> ()
    %cst_18 = arith.constant dense<0xFF800000> : vector<2x8xf32>
    %45 = vector.multi_reduction <maximumf>, %44, %cst_18 [2] : vector<2x8x8xf32> to vector<2x8xf32>
    %46 = vector.shape_cast %45 : vector<2x8xf32> to vector<2x8x1xf32>
    %47 = vector.broadcast %46 : vector<2x8x1xf32> to vector<2x8x8xf32>
    %48 = arith.subf %44, %47 : vector<2x8x8xf32>
    %49 = math.exp %48 : vector<2x8x8xf32>
    %cst_19 = arith.constant dense<0.000000e+00> : vector<2x8xf32>
    %50 = vector.multi_reduction <add>, %49, %cst_19 [2] : vector<2x8x8xf32> to vector<2x8xf32>
    %51 = vector.shape_cast %50 : vector<2x8xf32> to vector<2x8x1xf32>
    %52 = tpu.reciprocal %51 {approx = true} : vector<2x8x1xf32> -> vector<2x8x1xf32>
    %53 = vector.broadcast %52 : vector<2x8x1xf32> to vector<2x8x8xf32>
    %54 = arith.mulf %49, %53 : vector<2x8x8xf32>
    %55 = arith.truncf %54 : vector<2x8x8xf32> to vector<2x8x8xbf16>
    %56 = vector.extract_strided_slice %39 {offsets = [0, 0, 0], sizes = [2, 8, 32], strides = [1, 1, 1]} : vector<2x8x128xf32> to vector<2x8x32xf32>
    %57 = arith.truncf %56 : vector<2x8x32xf32> to vector<2x8x32xbf16>
    "tpu.trace_start"() <{level = 10 : i32, message = "bts,bsd->btd"}> : () -> ()
    %cst_20 = arith.constant dense<0.000000e+00> : vector<2x8x32xf32>
    %58 = tpu.matmul %55, %57, %cst_20 {dimension_numbers = #tpu.dot_dimension_numbers<[2], [1], [1], [2], [0, 0, 0, 1, 1, 2], [0], [0]>} : vector<2x8x8xbf16>, vector<2x8x32xbf16>, vector<2x8x32xf32> -> vector<2x8x32xf32>
    "tpu.trace_stop"() : () -> ()
    %59 = vector.extract_strided_slice %35 {offsets = [0, 0, 32], sizes = [2, 8, 32], strides = [1, 1, 1]} : vector<2x8x128xf32> to vector<2x8x32xf32>
    %60 = arith.truncf %59 : vector<2x8x32xf32> to vector<2x8x32xbf16>
    %61 = vector.extract_strided_slice %37 {offsets = [0, 0, 32], sizes = [2, 8, 32], strides = [1, 1, 1]} : vector<2x8x128xf32> to vector<2x8x32xf32>
    %62 = arith.truncf %61 : vector<2x8x32xf32> to vector<2x8x32xbf16>
    "tpu.trace_start"() <{level = 10 : i32, message = "btd,bsd->bts"}> : () -> ()
    %cst_21 = arith.constant dense<0.000000e+00> : vector<2x8x8xf32>
    %63 = tpu.matmul %60, %62, %cst_21 {dimension_numbers = #tpu.dot_dimension_numbers<[2], [2], [1], [1], [0, 0, 0, 1, 1, 1], [0], [0]>} : vector<2x8x32xbf16>, vector<2x8x32xbf16>, vector<2x8x8xf32> -> vector<2x8x8xf32>
    "tpu.trace_stop"() : () -> ()
    %cst_22 = arith.constant dense<0xFF800000> : vector<2x8xf32>
    %64 = vector.multi_reduction <maximumf>, %63, %cst_22 [2] : vector<2x8x8xf32> to vector<2x8xf32>
    %65 = vector.shape_cast %64 : vector<2x8xf32> to vector<2x8x1xf32>
    %66 = vector.broadcast %65 : vector<2x8x1xf32> to vector<2x8x8xf32>
    %67 = arith.subf %63, %66 : vector<2x8x8xf32>
    %68 = math.exp %67 : vector<2x8x8xf32>
    %cst_23 = arith.constant dense<0.000000e+00> : vector<2x8xf32>
    %69 = vector.multi_reduction <add>, %68, %cst_23 [2] : vector<2x8x8xf32> to vector<2x8xf32>
    %70 = vector.shape_cast %69 : vector<2x8xf32> to vector<2x8x1xf32>
    %71 = tpu.reciprocal %70 {approx = true} : vector<2x8x1xf32> -> vector<2x8x1xf32>
    %72 = vector.broadcast %71 : vector<2x8x1xf32> to vector<2x8x8xf32>
    %73 = arith.mulf %68, %72 : vector<2x8x8xf32>
    %74 = arith.truncf %73 : vector<2x8x8xf32> to vector<2x8x8xbf16>
    %75 = vector.extract_strided_slice %39 {offsets = [0, 0, 32], sizes = [2, 8, 32], strides = [1, 1, 1]} : vector<2x8x128xf32> to vector<2x8x32xf32>
    %76 = arith.truncf %75 : vector<2x8x32xf32> to vector<2x8x32xbf16>
    "tpu.trace_start"() <{level = 10 : i32, message = "bts,bsd->btd"}> : () -> ()
    %cst_24 = arith.constant dense<0.000000e+00> : vector<2x8x32xf32>
    %77 = tpu.matmul %74, %76, %cst_24 {dimension_numbers = #tpu.dot_dimension_numbers<[2], [1], [1], [2], [0, 0, 0, 1, 1, 2], [0], [0]>} : vector<2x8x8xbf16>, vector<2x8x32xbf16>, vector<2x8x32xf32> -> vector<2x8x32xf32>
    "tpu.trace_stop"() : () -> ()
    %78 = vector.extract_strided_slice %35 {offsets = [0, 0, 64], sizes = [2, 8, 32], strides = [1, 1, 1]} : vector<2x8x128xf32> to vector<2x8x32xf32>
    %79 = arith.truncf %78 : vector<2x8x32xf32> to vector<2x8x32xbf16>
    %80 = vector.extract_strided_slice %37 {offsets = [0, 0, 64], sizes = [2, 8, 32], strides = [1, 1, 1]} : vector<2x8x128xf32> to vector<2x8x32xf32>
    %81 = arith.truncf %80 : vector<2x8x32xf32> to vector<2x8x32xbf16>
    "tpu.trace_start"() <{level = 10 : i32, message = "btd,bsd->bts"}> : () -> ()
    %cst_25 = arith.constant dense<0.000000e+00> : vector<2x8x8xf32>
    %82 = tpu.matmul %79, %81, %cst_25 {dimension_numbers = #tpu.dot_dimension_numbers<[2], [2], [1], [1], [0, 0, 0, 1, 1, 1], [0], [0]>} : vector<2x8x32xbf16>, vector<2x8x32xbf16>, vector<2x8x8xf32> -> vector<2x8x8xf32>
    "tpu.trace_stop"() : () -> ()
    %cst_26 = arith.constant dense<0xFF800000> : vector<2x8xf32>
    %83 = vector.multi_reduction <maximumf>, %82, %cst_26 [2] : vector<2x8x8xf32> to vector<2x8xf32>
    %84 = vector.shape_cast %83 : vector<2x8xf32> to vector<2x8x1xf32>
    %85 = vector.broadcast %84 : vector<2x8x1xf32> to vector<2x8x8xf32>
    %86 = arith.subf %82, %85 : vector<2x8x8xf32>
    %87 = math.exp %86 : vector<2x8x8xf32>
    %cst_27 = arith.constant dense<0.000000e+00> : vector<2x8xf32>
    %88 = vector.multi_reduction <add>, %87, %cst_27 [2] : vector<2x8x8xf32> to vector<2x8xf32>
    %89 = vector.shape_cast %88 : vector<2x8xf32> to vector<2x8x1xf32>
    %90 = tpu.reciprocal %89 {approx = true} : vector<2x8x1xf32> -> vector<2x8x1xf32>
    %91 = vector.broadcast %90 : vector<2x8x1xf32> to vector<2x8x8xf32>
    %92 = arith.mulf %87, %91 : vector<2x8x8xf32>
    %93 = arith.truncf %92 : vector<2x8x8xf32> to vector<2x8x8xbf16>
    %94 = vector.extract_strided_slice %39 {offsets = [0, 0, 64], sizes = [2, 8, 32], strides = [1, 1, 1]} : vector<2x8x128xf32> to vector<2x8x32xf32>
    %95 = arith.truncf %94 : vector<2x8x32xf32> to vector<2x8x32xbf16>
    "tpu.trace_start"() <{level = 10 : i32, message = "bts,bsd->btd"}> : () -> ()
    %cst_28 = arith.constant dense<0.000000e+00> : vector<2x8x32xf32>
    %96 = tpu.matmul %93, %95, %cst_28 {dimension_numbers = #tpu.dot_dimension_numbers<[2], [1], [1], [2], [0, 0, 0, 1, 1, 2], [0], [0]>} : vector<2x8x8xbf16>, vector<2x8x32xbf16>, vector<2x8x32xf32> -> vector<2x8x32xf32>
    "tpu.trace_stop"() : () -> ()
    %97 = vector.extract_strided_slice %35 {offsets = [0, 0, 96], sizes = [2, 8, 32], strides = [1, 1, 1]} : vector<2x8x128xf32> to vector<2x8x32xf32>
    %98 = arith.truncf %97 : vector<2x8x32xf32> to vector<2x8x32xbf16>
    %99 = vector.extract_strided_slice %37 {offsets = [0, 0, 96], sizes = [2, 8, 32], strides = [1, 1, 1]} : vector<2x8x128xf32> to vector<2x8x32xf32>
    %100 = arith.truncf %99 : vector<2x8x32xf32> to vector<2x8x32xbf16>
    "tpu.trace_start"() <{level = 10 : i32, message = "btd,bsd->bts"}> : () -> ()
    %cst_29 = arith.constant dense<0.000000e+00> : vector<2x8x8xf32>
    %101 = tpu.matmul %98, %100, %cst_29 {dimension_numbers = #tpu.dot_dimension_numbers<[2], [2], [1], [1], [0, 0, 0, 1, 1, 1], [0], [0]>} : vector<2x8x32xbf16>, vector<2x8x32xbf16>, vector<2x8x8xf32> -> vector<2x8x8xf32>
    "tpu.trace_stop"() : () -> ()
    %cst_30 = arith.constant dense<0xFF800000> : vector<2x8xf32>
    %102 = vector.multi_reduction <maximumf>, %101, %cst_30 [2] : vector<2x8x8xf32> to vector<2x8xf32>
    %103 = vector.shape_cast %102 : vector<2x8xf32> to vector<2x8x1xf32>
    %104 = vector.broadcast %103 : vector<2x8x1xf32> to vector<2x8x8xf32>
    %105 = arith.subf %101, %104 : vector<2x8x8xf32>
    %106 = math.exp %105 : vector<2x8x8xf32>
    %cst_31 = arith.constant dense<0.000000e+00> : vector<2x8xf32>
    %107 = vector.multi_reduction <add>, %106, %cst_31 [2] : vector<2x8x8xf32> to vector<2x8xf32>
    %108 = vector.shape_cast %107 : vector<2x8xf32> to vector<2x8x1xf32>
    %109 = tpu.reciprocal %108 {approx = true} : vector<2x8x1xf32> -> vector<2x8x1xf32>
    %110 = vector.broadcast %109 : vector<2x8x1xf32> to vector<2x8x8xf32>
    %111 = arith.mulf %106, %110 : vector<2x8x8xf32>
    %112 = arith.truncf %111 : vector<2x8x8xf32> to vector<2x8x8xbf16>
    %113 = vector.extract_strided_slice %39 {offsets = [0, 0, 96], sizes = [2, 8, 32], strides = [1, 1, 1]} : vector<2x8x128xf32> to vector<2x8x32xf32>
    %114 = arith.truncf %113 : vector<2x8x32xf32> to vector<2x8x32xbf16>
    "tpu.trace_start"() <{level = 10 : i32, message = "bts,bsd->btd"}> : () -> ()
    %cst_32 = arith.constant dense<0.000000e+00> : vector<2x8x32xf32>
    %115 = tpu.matmul %112, %114, %cst_32 {dimension_numbers = #tpu.dot_dimension_numbers<[2], [1], [1], [2], [0, 0, 0, 1, 1, 2], [0], [0]>} : vector<2x8x8xbf16>, vector<2x8x32xbf16>, vector<2x8x32xf32> -> vector<2x8x32xf32>
    "tpu.trace_stop"() : () -> ()
    %116 = tpu.concatenate %58, %77, %96, %115 in 2 : vector<2x8x32xf32>, vector<2x8x32xf32>, vector<2x8x32xf32>, vector<2x8x32xf32> -> vector<2x8x128xf32>
    %117 = vector.shape_cast %116 : vector<2x8x128xf32> to vector<16x128xf32>
    %118 = arith.truncf %117 : vector<16x128xf32> to vector<16x128xbf16>
    %c0_33 = arith.constant 0 : index
    %c0_34 = arith.constant 0 : index
    %c0_35 = arith.constant 0 : index
    %119 = vector.load %arg4[%c0_33, %c0_34, %c0_35] : memref<2x128x128xbf16, #tpu.memory_space<vmem>>, vector<1x128x128xbf16>
    %120 = vector.shape_cast %119 : vector<1x128x128xbf16> to vector<128x128xbf16>
    %cst_36 = arith.constant dense<0.000000e+00> : vector<16x128xf32>
    %121 = tpu.matmul %118, %120, %cst_36 {dimension_numbers = #tpu.dot_dimension_numbers<[1], [0], [0], [1], [0, 0, 1, 1], [], []>} : vector<16x128xbf16>, vector<128x128xbf16>, vector<16x128xf32> -> vector<16x128xf32>
    %122 = arith.addf %1, %121 : vector<16x128xf32>
    %c0_37 = arith.constant 0 : index
    %c0_38 = arith.constant 0 : index
    %c0_39 = arith.constant 0 : index
    %123 = vector.load %arg5[%c0_37, %c0_38, %c0_39] : memref<2x1x128xf32, #tpu.memory_space<vmem>>, vector<1x1x128xf32>
    %124 = vector.shape_cast %123 : vector<1x1x128xf32> to vector<1x128xf32>
    %125 = vector.broadcast %124 : vector<1x128xf32> to vector<16x128xf32>
    %126 = arith.addf %122, %125 : vector<16x128xf32>
    %c0_40 = arith.constant 0 : index
    %c0_41 = arith.constant 0 : index
    %c0_42 = arith.constant 0 : index
    %127 = vector.load %arg6[%c0_40, %c0_41, %c0_42] : memref<2x1x128xf32, #tpu.memory_space<vmem>>, vector<1x1x128xf32>
    %128 = vector.shape_cast %127 : vector<1x1x128xf32> to vector<1x128xf32>
    %c0_43 = arith.constant 0 : index
    %c0_44 = arith.constant 0 : index
    %c0_45 = arith.constant 0 : index
    %129 = vector.load %arg7[%c0_43, %c0_44, %c0_45] : memref<2x1x128xf32, #tpu.memory_space<vmem>>, vector<1x1x128xf32>
    %130 = vector.shape_cast %129 : vector<1x1x128xf32> to vector<1x128xf32>
    %cst_46 = arith.constant dense<0.000000e+00> : vector<16xf32>
    %131 = vector.multi_reduction <add>, %126, %cst_46 [1] : vector<16x128xf32> to vector<16xf32>
    %132 = vector.shape_cast %131 : vector<16xf32> to vector<16x1xf32>
    %cst_47 = arith.constant 1.280000e+02 : f32
    %133 = vector.broadcast %cst_47 : f32 to vector<16x1xf32>
    %134 = arith.divf %132, %133 : vector<16x1xf32>
    %135 = arith.mulf %126, %126 : vector<16x128xf32>
    %cst_48 = arith.constant dense<0.000000e+00> : vector<16xf32>
    %136 = vector.multi_reduction <add>, %135, %cst_48 [1] : vector<16x128xf32> to vector<16xf32>
    %137 = vector.shape_cast %136 : vector<16xf32> to vector<16x1xf32>
    %cst_49 = arith.constant 1.280000e+02 : f32
    %138 = vector.broadcast %cst_49 : f32 to vector<16x1xf32>
    %139 = arith.divf %137, %138 : vector<16x1xf32>
    %140 = arith.mulf %134, %134 : vector<16x1xf32>
    %141 = arith.subf %139, %140 : vector<16x1xf32>
    %142 = vector.broadcast %134 : vector<16x1xf32> to vector<16x128xf32>
    %143 = arith.subf %126, %142 : vector<16x128xf32>
    %cst_50 = arith.constant 9.99999974E-6 : f32
    %144 = vector.broadcast %cst_50 : f32 to vector<16x1xf32>
    %145 = arith.addf %141, %144 : vector<16x1xf32>
    %146 = math.rsqrt %145 : vector<16x1xf32>
    %147 = vector.broadcast %146 : vector<16x1xf32> to vector<16x128xf32>
    %148 = arith.mulf %143, %147 : vector<16x128xf32>
    %149 = vector.broadcast %128 : vector<1x128xf32> to vector<16x128xf32>
    %150 = arith.mulf %148, %149 : vector<16x128xf32>
    %151 = vector.broadcast %130 : vector<1x128xf32> to vector<16x128xf32>
    %152 = arith.addf %150, %151 : vector<16x128xf32>
    %153 = arith.truncf %152 : vector<16x128xf32> to vector<16x128xbf16>
    %c0_51 = arith.constant 0 : index
    %c0_52 = arith.constant 0 : index
    %c0_53 = arith.constant 0 : index
    %154 = vector.load %arg8[%c0_51, %c0_52, %c0_53] : memref<2x128x512xbf16, #tpu.memory_space<vmem>>, vector<1x128x512xbf16>
    %155 = vector.shape_cast %154 : vector<1x128x512xbf16> to vector<128x512xbf16>
    %cst_54 = arith.constant dense<0.000000e+00> : vector<16x512xf32>
    %156 = tpu.matmul %153, %155, %cst_54 {dimension_numbers = #tpu.dot_dimension_numbers<[1], [0], [0], [1], [0, 0, 1, 1], [], []>} : vector<16x128xbf16>, vector<128x512xbf16>, vector<16x512xf32> -> vector<16x512xf32>
    %c0_55 = arith.constant 0 : index
    %c0_56 = arith.constant 0 : index
    %c0_57 = arith.constant 0 : index
    %157 = vector.load %arg9[%c0_55, %c0_56, %c0_57] : memref<2x1x512xf32, #tpu.memory_space<vmem>>, vector<1x1x512xf32>
    %158 = vector.shape_cast %157 : vector<1x1x512xf32> to vector<1x512xf32>
    %159 = vector.broadcast %158 : vector<1x512xf32> to vector<16x512xf32>
    %160 = arith.addf %156, %159 : vector<16x512xf32>
    %cst_58 = arith.constant 5.000000e-01 : f32
    %161 = vector.broadcast %cst_58 : f32 to vector<16x512xf32>
    %162 = arith.mulf %161, %160 : vector<16x512xf32>
    %cst_59 = arith.constant 0.707106769 : f32
    %163 = vector.broadcast %cst_59 : f32 to vector<16x512xf32>
    %164 = arith.mulf %160, %163 : vector<16x512xf32>
    %165 = math.erf %164 : vector<16x512xf32>
    %cst_60 = arith.constant 1.000000e+00 : f32
    %166 = vector.broadcast %cst_60 : f32 to vector<16x512xf32>
    %167 = arith.addf %166, %165 : vector<16x512xf32>
    %168 = arith.mulf %162, %167 : vector<16x512xf32>
    %169 = arith.truncf %168 : vector<16x512xf32> to vector<16x512xbf16>
    %c0_61 = arith.constant 0 : index
    %c0_62 = arith.constant 0 : index
    %c0_63 = arith.constant 0 : index
    %170 = vector.load %arg10[%c0_61, %c0_62, %c0_63] : memref<2x512x128xbf16, #tpu.memory_space<vmem>>, vector<1x512x128xbf16>
    %171 = vector.shape_cast %170 : vector<1x512x128xbf16> to vector<512x128xbf16>
    %cst_64 = arith.constant dense<0.000000e+00> : vector<16x128xf32>
    %172 = tpu.matmul %169, %171, %cst_64 {dimension_numbers = #tpu.dot_dimension_numbers<[1], [0], [0], [1], [0, 0, 1, 1], [], []>} : vector<16x512xbf16>, vector<512x128xbf16>, vector<16x128xf32> -> vector<16x128xf32>
    %173 = arith.addf %126, %172 : vector<16x128xf32>
    %c0_65 = arith.constant 0 : index
    %c0_66 = arith.constant 0 : index
    %c0_67 = arith.constant 0 : index
    %174 = vector.load %arg11[%c0_65, %c0_66, %c0_67] : memref<2x1x128xf32, #tpu.memory_space<vmem>>, vector<1x1x128xf32>
    %175 = vector.shape_cast %174 : vector<1x1x128xf32> to vector<1x128xf32>
    %176 = vector.broadcast %175 : vector<1x128xf32> to vector<16x128xf32>
    %177 = arith.addf %173, %176 : vector<16x128xf32>
    %c1 = arith.constant 1 : index
    %c0_68 = arith.constant 0 : index
    %c0_69 = arith.constant 0 : index
    %178 = vector.load %arg1[%c1, %c0_68, %c0_69] : memref<2x1x128xf32, #tpu.memory_space<vmem>>, vector<1x1x128xf32>
    %179 = vector.shape_cast %178 : vector<1x1x128xf32> to vector<1x128xf32>
    %c1_70 = arith.constant 1 : index
    %c0_71 = arith.constant 0 : index
    %c0_72 = arith.constant 0 : index
    %180 = vector.load %arg2[%c1_70, %c0_71, %c0_72] : memref<2x1x128xf32, #tpu.memory_space<vmem>>, vector<1x1x128xf32>
    %181 = vector.shape_cast %180 : vector<1x1x128xf32> to vector<1x128xf32>
    %cst_73 = arith.constant dense<0.000000e+00> : vector<16xf32>
    %182 = vector.multi_reduction <add>, %177, %cst_73 [1] : vector<16x128xf32> to vector<16xf32>
    %183 = vector.shape_cast %182 : vector<16xf32> to vector<16x1xf32>
    %cst_74 = arith.constant 1.280000e+02 : f32
    %184 = vector.broadcast %cst_74 : f32 to vector<16x1xf32>
    %185 = arith.divf %183, %184 : vector<16x1xf32>
    %186 = arith.mulf %177, %177 : vector<16x128xf32>
    %cst_75 = arith.constant dense<0.000000e+00> : vector<16xf32>
    %187 = vector.multi_reduction <add>, %186, %cst_75 [1] : vector<16x128xf32> to vector<16xf32>
    %188 = vector.shape_cast %187 : vector<16xf32> to vector<16x1xf32>
    %cst_76 = arith.constant 1.280000e+02 : f32
    %189 = vector.broadcast %cst_76 : f32 to vector<16x1xf32>
    %190 = arith.divf %188, %189 : vector<16x1xf32>
    %191 = arith.mulf %185, %185 : vector<16x1xf32>
    %192 = arith.subf %190, %191 : vector<16x1xf32>
    %193 = vector.broadcast %185 : vector<16x1xf32> to vector<16x128xf32>
    %194 = arith.subf %177, %193 : vector<16x128xf32>
    %cst_77 = arith.constant 9.99999974E-6 : f32
    %195 = vector.broadcast %cst_77 : f32 to vector<16x1xf32>
    %196 = arith.addf %192, %195 : vector<16x1xf32>
    %197 = math.rsqrt %196 : vector<16x1xf32>
    %198 = vector.broadcast %197 : vector<16x1xf32> to vector<16x128xf32>
    %199 = arith.mulf %194, %198 : vector<16x128xf32>
    %200 = vector.broadcast %179 : vector<1x128xf32> to vector<16x128xf32>
    %201 = arith.mulf %199, %200 : vector<16x128xf32>
    %202 = vector.broadcast %181 : vector<1x128xf32> to vector<16x128xf32>
    %203 = arith.addf %201, %202 : vector<16x128xf32>
    %204 = arith.truncf %203 : vector<16x128xf32> to vector<16x128xbf16>
    %c1_78 = arith.constant 1 : index
    %c0_79 = arith.constant 0 : index
    %c0_80 = arith.constant 0 : index
    %205 = vector.load %arg3[%c1_78, %c0_79, %c0_80] : memref<2x128x384xbf16, #tpu.memory_space<vmem>>, vector<1x128x384xbf16>
    %206 = vector.shape_cast %205 : vector<1x128x384xbf16> to vector<128x384xbf16>
    %cst_81 = arith.constant dense<0.000000e+00> : vector<16x384xf32>
    %207 = tpu.matmul %204, %206, %cst_81 {dimension_numbers = #tpu.dot_dimension_numbers<[1], [0], [0], [1], [0, 0, 1, 1], [], []>} : vector<16x128xbf16>, vector<128x384xbf16>, vector<16x384xf32> -> vector<16x384xf32>
    %208 = vector.extract_strided_slice %207 {offsets = [0, 0], sizes = [16, 128], strides = [1, 1]} : vector<16x384xf32> to vector<16x128xf32>
    %cst_82 = arith.constant 0.0883883461 : f32
    %209 = vector.broadcast %cst_82 : f32 to vector<16x128xf32>
    %210 = arith.mulf %208, %209 : vector<16x128xf32>
    %211 = vector.shape_cast %210 : vector<16x128xf32> to vector<2x8x128xf32>
    %212 = vector.extract_strided_slice %207 {offsets = [0, 128], sizes = [16, 128], strides = [1, 1]} : vector<16x384xf32> to vector<16x128xf32>
    %213 = vector.shape_cast %212 : vector<16x128xf32> to vector<2x8x128xf32>
    %214 = vector.extract_strided_slice %207 {offsets = [0, 256], sizes = [16, 128], strides = [1, 1]} : vector<16x384xf32> to vector<16x128xf32>
    %215 = vector.shape_cast %214 : vector<16x128xf32> to vector<2x8x128xf32>
    %216 = vector.extract_strided_slice %211 {offsets = [0, 0, 0], sizes = [2, 8, 32], strides = [1, 1, 1]} : vector<2x8x128xf32> to vector<2x8x32xf32>
    %217 = arith.truncf %216 : vector<2x8x32xf32> to vector<2x8x32xbf16>
    %218 = vector.extract_strided_slice %213 {offsets = [0, 0, 0], sizes = [2, 8, 32], strides = [1, 1, 1]} : vector<2x8x128xf32> to vector<2x8x32xf32>
    %219 = arith.truncf %218 : vector<2x8x32xf32> to vector<2x8x32xbf16>
    "tpu.trace_start"() <{level = 10 : i32, message = "btd,bsd->bts"}> : () -> ()
    %cst_83 = arith.constant dense<0.000000e+00> : vector<2x8x8xf32>
    %220 = tpu.matmul %217, %219, %cst_83 {dimension_numbers = #tpu.dot_dimension_numbers<[2], [2], [1], [1], [0, 0, 0, 1, 1, 1], [0], [0]>} : vector<2x8x32xbf16>, vector<2x8x32xbf16>, vector<2x8x8xf32> -> vector<2x8x8xf32>
    "tpu.trace_stop"() : () -> ()
    %cst_84 = arith.constant dense<0xFF800000> : vector<2x8xf32>
    %221 = vector.multi_reduction <maximumf>, %220, %cst_84 [2] : vector<2x8x8xf32> to vector<2x8xf32>
    %222 = vector.shape_cast %221 : vector<2x8xf32> to vector<2x8x1xf32>
    %223 = vector.broadcast %222 : vector<2x8x1xf32> to vector<2x8x8xf32>
    %224 = arith.subf %220, %223 : vector<2x8x8xf32>
    %225 = math.exp %224 : vector<2x8x8xf32>
    %cst_85 = arith.constant dense<0.000000e+00> : vector<2x8xf32>
    %226 = vector.multi_reduction <add>, %225, %cst_85 [2] : vector<2x8x8xf32> to vector<2x8xf32>
    %227 = vector.shape_cast %226 : vector<2x8xf32> to vector<2x8x1xf32>
    %228 = tpu.reciprocal %227 {approx = true} : vector<2x8x1xf32> -> vector<2x8x1xf32>
    %229 = vector.broadcast %228 : vector<2x8x1xf32> to vector<2x8x8xf32>
    %230 = arith.mulf %225, %229 : vector<2x8x8xf32>
    %231 = arith.truncf %230 : vector<2x8x8xf32> to vector<2x8x8xbf16>
    %232 = vector.extract_strided_slice %215 {offsets = [0, 0, 0], sizes = [2, 8, 32], strides = [1, 1, 1]} : vector<2x8x128xf32> to vector<2x8x32xf32>
    %233 = arith.truncf %232 : vector<2x8x32xf32> to vector<2x8x32xbf16>
    "tpu.trace_start"() <{level = 10 : i32, message = "bts,bsd->btd"}> : () -> ()
    %cst_86 = arith.constant dense<0.000000e+00> : vector<2x8x32xf32>
    %234 = tpu.matmul %231, %233, %cst_86 {dimension_numbers = #tpu.dot_dimension_numbers<[2], [1], [1], [2], [0, 0, 0, 1, 1, 2], [0], [0]>} : vector<2x8x8xbf16>, vector<2x8x32xbf16>, vector<2x8x32xf32> -> vector<2x8x32xf32>
    "tpu.trace_stop"() : () -> ()
    %235 = vector.extract_strided_slice %211 {offsets = [0, 0, 32], sizes = [2, 8, 32], strides = [1, 1, 1]} : vector<2x8x128xf32> to vector<2x8x32xf32>
    %236 = arith.truncf %235 : vector<2x8x32xf32> to vector<2x8x32xbf16>
    %237 = vector.extract_strided_slice %213 {offsets = [0, 0, 32], sizes = [2, 8, 32], strides = [1, 1, 1]} : vector<2x8x128xf32> to vector<2x8x32xf32>
    %238 = arith.truncf %237 : vector<2x8x32xf32> to vector<2x8x32xbf16>
    "tpu.trace_start"() <{level = 10 : i32, message = "btd,bsd->bts"}> : () -> ()
    %cst_87 = arith.constant dense<0.000000e+00> : vector<2x8x8xf32>
    %239 = tpu.matmul %236, %238, %cst_87 {dimension_numbers = #tpu.dot_dimension_numbers<[2], [2], [1], [1], [0, 0, 0, 1, 1, 1], [0], [0]>} : vector<2x8x32xbf16>, vector<2x8x32xbf16>, vector<2x8x8xf32> -> vector<2x8x8xf32>
    "tpu.trace_stop"() : () -> ()
    %cst_88 = arith.constant dense<0xFF800000> : vector<2x8xf32>
    %240 = vector.multi_reduction <maximumf>, %239, %cst_88 [2] : vector<2x8x8xf32> to vector<2x8xf32>
    %241 = vector.shape_cast %240 : vector<2x8xf32> to vector<2x8x1xf32>
    %242 = vector.broadcast %241 : vector<2x8x1xf32> to vector<2x8x8xf32>
    %243 = arith.subf %239, %242 : vector<2x8x8xf32>
    %244 = math.exp %243 : vector<2x8x8xf32>
    %cst_89 = arith.constant dense<0.000000e+00> : vector<2x8xf32>
    %245 = vector.multi_reduction <add>, %244, %cst_89 [2] : vector<2x8x8xf32> to vector<2x8xf32>
    %246 = vector.shape_cast %245 : vector<2x8xf32> to vector<2x8x1xf32>
    %247 = tpu.reciprocal %246 {approx = true} : vector<2x8x1xf32> -> vector<2x8x1xf32>
    %248 = vector.broadcast %247 : vector<2x8x1xf32> to vector<2x8x8xf32>
    %249 = arith.mulf %244, %248 : vector<2x8x8xf32>
    %250 = arith.truncf %249 : vector<2x8x8xf32> to vector<2x8x8xbf16>
    %251 = vector.extract_strided_slice %215 {offsets = [0, 0, 32], sizes = [2, 8, 32], strides = [1, 1, 1]} : vector<2x8x128xf32> to vector<2x8x32xf32>
    %252 = arith.truncf %251 : vector<2x8x32xf32> to vector<2x8x32xbf16>
    "tpu.trace_start"() <{level = 10 : i32, message = "bts,bsd->btd"}> : () -> ()
    %cst_90 = arith.constant dense<0.000000e+00> : vector<2x8x32xf32>
    %253 = tpu.matmul %250, %252, %cst_90 {dimension_numbers = #tpu.dot_dimension_numbers<[2], [1], [1], [2], [0, 0, 0, 1, 1, 2], [0], [0]>} : vector<2x8x8xbf16>, vector<2x8x32xbf16>, vector<2x8x32xf32> -> vector<2x8x32xf32>
    "tpu.trace_stop"() : () -> ()
    %254 = vector.extract_strided_slice %211 {offsets = [0, 0, 64], sizes = [2, 8, 32], strides = [1, 1, 1]} : vector<2x8x128xf32> to vector<2x8x32xf32>
    %255 = arith.truncf %254 : vector<2x8x32xf32> to vector<2x8x32xbf16>
    %256 = vector.extract_strided_slice %213 {offsets = [0, 0, 64], sizes = [2, 8, 32], strides = [1, 1, 1]} : vector<2x8x128xf32> to vector<2x8x32xf32>
    %257 = arith.truncf %256 : vector<2x8x32xf32> to vector<2x8x32xbf16>
    "tpu.trace_start"() <{level = 10 : i32, message = "btd,bsd->bts"}> : () -> ()
    %cst_91 = arith.constant dense<0.000000e+00> : vector<2x8x8xf32>
    %258 = tpu.matmul %255, %257, %cst_91 {dimension_numbers = #tpu.dot_dimension_numbers<[2], [2], [1], [1], [0, 0, 0, 1, 1, 1], [0], [0]>} : vector<2x8x32xbf16>, vector<2x8x32xbf16>, vector<2x8x8xf32> -> vector<2x8x8xf32>
    "tpu.trace_stop"() : () -> ()
    %cst_92 = arith.constant dense<0xFF800000> : vector<2x8xf32>
    %259 = vector.multi_reduction <maximumf>, %258, %cst_92 [2] : vector<2x8x8xf32> to vector<2x8xf32>
    %260 = vector.shape_cast %259 : vector<2x8xf32> to vector<2x8x1xf32>
    %261 = vector.broadcast %260 : vector<2x8x1xf32> to vector<2x8x8xf32>
    %262 = arith.subf %258, %261 : vector<2x8x8xf32>
    %263 = math.exp %262 : vector<2x8x8xf32>
    %cst_93 = arith.constant dense<0.000000e+00> : vector<2x8xf32>
    %264 = vector.multi_reduction <add>, %263, %cst_93 [2] : vector<2x8x8xf32> to vector<2x8xf32>
    %265 = vector.shape_cast %264 : vector<2x8xf32> to vector<2x8x1xf32>
    %266 = tpu.reciprocal %265 {approx = true} : vector<2x8x1xf32> -> vector<2x8x1xf32>
    %267 = vector.broadcast %266 : vector<2x8x1xf32> to vector<2x8x8xf32>
    %268 = arith.mulf %263, %267 : vector<2x8x8xf32>
    %269 = arith.truncf %268 : vector<2x8x8xf32> to vector<2x8x8xbf16>
    %270 = vector.extract_strided_slice %215 {offsets = [0, 0, 64], sizes = [2, 8, 32], strides = [1, 1, 1]} : vector<2x8x128xf32> to vector<2x8x32xf32>
    %271 = arith.truncf %270 : vector<2x8x32xf32> to vector<2x8x32xbf16>
    "tpu.trace_start"() <{level = 10 : i32, message = "bts,bsd->btd"}> : () -> ()
    %cst_94 = arith.constant dense<0.000000e+00> : vector<2x8x32xf32>
    %272 = tpu.matmul %269, %271, %cst_94 {dimension_numbers = #tpu.dot_dimension_numbers<[2], [1], [1], [2], [0, 0, 0, 1, 1, 2], [0], [0]>} : vector<2x8x8xbf16>, vector<2x8x32xbf16>, vector<2x8x32xf32> -> vector<2x8x32xf32>
    "tpu.trace_stop"() : () -> ()
    %273 = vector.extract_strided_slice %211 {offsets = [0, 0, 96], sizes = [2, 8, 32], strides = [1, 1, 1]} : vector<2x8x128xf32> to vector<2x8x32xf32>
    %274 = arith.truncf %273 : vector<2x8x32xf32> to vector<2x8x32xbf16>
    %275 = vector.extract_strided_slice %213 {offsets = [0, 0, 96], sizes = [2, 8, 32], strides = [1, 1, 1]} : vector<2x8x128xf32> to vector<2x8x32xf32>
    %276 = arith.truncf %275 : vector<2x8x32xf32> to vector<2x8x32xbf16>
    "tpu.trace_start"() <{level = 10 : i32, message = "btd,bsd->bts"}> : () -> ()
    %cst_95 = arith.constant dense<0.000000e+00> : vector<2x8x8xf32>
    %277 = tpu.matmul %274, %276, %cst_95 {dimension_numbers = #tpu.dot_dimension_numbers<[2], [2], [1], [1], [0, 0, 0, 1, 1, 1], [0], [0]>} : vector<2x8x32xbf16>, vector<2x8x32xbf16>, vector<2x8x8xf32> -> vector<2x8x8xf32>
    "tpu.trace_stop"() : () -> ()
    %cst_96 = arith.constant dense<0xFF800000> : vector<2x8xf32>
    %278 = vector.multi_reduction <maximumf>, %277, %cst_96 [2] : vector<2x8x8xf32> to vector<2x8xf32>
    %279 = vector.shape_cast %278 : vector<2x8xf32> to vector<2x8x1xf32>
    %280 = vector.broadcast %279 : vector<2x8x1xf32> to vector<2x8x8xf32>
    %281 = arith.subf %277, %280 : vector<2x8x8xf32>
    %282 = math.exp %281 : vector<2x8x8xf32>
    %cst_97 = arith.constant dense<0.000000e+00> : vector<2x8xf32>
    %283 = vector.multi_reduction <add>, %282, %cst_97 [2] : vector<2x8x8xf32> to vector<2x8xf32>
    %284 = vector.shape_cast %283 : vector<2x8xf32> to vector<2x8x1xf32>
    %285 = tpu.reciprocal %284 {approx = true} : vector<2x8x1xf32> -> vector<2x8x1xf32>
    %286 = vector.broadcast %285 : vector<2x8x1xf32> to vector<2x8x8xf32>
    %287 = arith.mulf %282, %286 : vector<2x8x8xf32>
    %288 = arith.truncf %287 : vector<2x8x8xf32> to vector<2x8x8xbf16>
    %289 = vector.extract_strided_slice %215 {offsets = [0, 0, 96], sizes = [2, 8, 32], strides = [1, 1, 1]} : vector<2x8x128xf32> to vector<2x8x32xf32>
    %290 = arith.truncf %289 : vector<2x8x32xf32> to vector<2x8x32xbf16>
    "tpu.trace_start"() <{level = 10 : i32, message = "bts,bsd->btd"}> : () -> ()
    %cst_98 = arith.constant dense<0.000000e+00> : vector<2x8x32xf32>
    %291 = tpu.matmul %288, %290, %cst_98 {dimension_numbers = #tpu.dot_dimension_numbers<[2], [1], [1], [2], [0, 0, 0, 1, 1, 2], [0], [0]>} : vector<2x8x8xbf16>, vector<2x8x32xbf16>, vector<2x8x32xf32> -> vector<2x8x32xf32>
    "tpu.trace_stop"() : () -> ()
    %292 = tpu.concatenate %234, %253, %272, %291 in 2 : vector<2x8x32xf32>, vector<2x8x32xf32>, vector<2x8x32xf32>, vector<2x8x32xf32> -> vector<2x8x128xf32>
    %293 = vector.shape_cast %292 : vector<2x8x128xf32> to vector<16x128xf32>
    %294 = arith.truncf %293 : vector<16x128xf32> to vector<16x128xbf16>
    %c1_99 = arith.constant 1 : index
    %c0_100 = arith.constant 0 : index
    %c0_101 = arith.constant 0 : index
    %295 = vector.load %arg4[%c1_99, %c0_100, %c0_101] : memref<2x128x128xbf16, #tpu.memory_space<vmem>>, vector<1x128x128xbf16>
    %296 = vector.shape_cast %295 : vector<1x128x128xbf16> to vector<128x128xbf16>
    %cst_102 = arith.constant dense<0.000000e+00> : vector<16x128xf32>
    %297 = tpu.matmul %294, %296, %cst_102 {dimension_numbers = #tpu.dot_dimension_numbers<[1], [0], [0], [1], [0, 0, 1, 1], [], []>} : vector<16x128xbf16>, vector<128x128xbf16>, vector<16x128xf32> -> vector<16x128xf32>
    %298 = arith.addf %177, %297 : vector<16x128xf32>
    %c1_103 = arith.constant 1 : index
    %c0_104 = arith.constant 0 : index
    %c0_105 = arith.constant 0 : index
    %299 = vector.load %arg5[%c1_103, %c0_104, %c0_105] : memref<2x1x128xf32, #tpu.memory_space<vmem>>, vector<1x1x128xf32>
    %300 = vector.shape_cast %299 : vector<1x1x128xf32> to vector<1x128xf32>
    %301 = vector.broadcast %300 : vector<1x128xf32> to vector<16x128xf32>
    %302 = arith.addf %298, %301 : vector<16x128xf32>
    %c1_106 = arith.constant 1 : index
    %c0_107 = arith.constant 0 : index
    %c0_108 = arith.constant 0 : index
    %303 = vector.load %arg6[%c1_106, %c0_107, %c0_108] : memref<2x1x128xf32, #tpu.memory_space<vmem>>, vector<1x1x128xf32>
    %304 = vector.shape_cast %303 : vector<1x1x128xf32> to vector<1x128xf32>
    %c1_109 = arith.constant 1 : index
    %c0_110 = arith.constant 0 : index
    %c0_111 = arith.constant 0 : index
    %305 = vector.load %arg7[%c1_109, %c0_110, %c0_111] : memref<2x1x128xf32, #tpu.memory_space<vmem>>, vector<1x1x128xf32>
    %306 = vector.shape_cast %305 : vector<1x1x128xf32> to vector<1x128xf32>
    %cst_112 = arith.constant dense<0.000000e+00> : vector<16xf32>
    %307 = vector.multi_reduction <add>, %302, %cst_112 [1] : vector<16x128xf32> to vector<16xf32>
    %308 = vector.shape_cast %307 : vector<16xf32> to vector<16x1xf32>
    %cst_113 = arith.constant 1.280000e+02 : f32
    %309 = vector.broadcast %cst_113 : f32 to vector<16x1xf32>
    %310 = arith.divf %308, %309 : vector<16x1xf32>
    %311 = arith.mulf %302, %302 : vector<16x128xf32>
    %cst_114 = arith.constant dense<0.000000e+00> : vector<16xf32>
    %312 = vector.multi_reduction <add>, %311, %cst_114 [1] : vector<16x128xf32> to vector<16xf32>
    %313 = vector.shape_cast %312 : vector<16xf32> to vector<16x1xf32>
    %cst_115 = arith.constant 1.280000e+02 : f32
    %314 = vector.broadcast %cst_115 : f32 to vector<16x1xf32>
    %315 = arith.divf %313, %314 : vector<16x1xf32>
    %316 = arith.mulf %310, %310 : vector<16x1xf32>
    %317 = arith.subf %315, %316 : vector<16x1xf32>
    %318 = vector.broadcast %310 : vector<16x1xf32> to vector<16x128xf32>
    %319 = arith.subf %302, %318 : vector<16x128xf32>
    %cst_116 = arith.constant 9.99999974E-6 : f32
    %320 = vector.broadcast %cst_116 : f32 to vector<16x1xf32>
    %321 = arith.addf %317, %320 : vector<16x1xf32>
    %322 = math.rsqrt %321 : vector<16x1xf32>
    %323 = vector.broadcast %322 : vector<16x1xf32> to vector<16x128xf32>
    %324 = arith.mulf %319, %323 : vector<16x128xf32>
    %325 = vector.broadcast %304 : vector<1x128xf32> to vector<16x128xf32>
    %326 = arith.mulf %324, %325 : vector<16x128xf32>
    %327 = vector.broadcast %306 : vector<1x128xf32> to vector<16x128xf32>
    %328 = arith.addf %326, %327 : vector<16x128xf32>
    %329 = arith.truncf %328 : vector<16x128xf32> to vector<16x128xbf16>
    %c1_117 = arith.constant 1 : index
    %c0_118 = arith.constant 0 : index
    %c0_119 = arith.constant 0 : index
    %330 = vector.load %arg8[%c1_117, %c0_118, %c0_119] : memref<2x128x512xbf16, #tpu.memory_space<vmem>>, vector<1x128x512xbf16>
    %331 = vector.shape_cast %330 : vector<1x128x512xbf16> to vector<128x512xbf16>
    %cst_120 = arith.constant dense<0.000000e+00> : vector<16x512xf32>
    %332 = tpu.matmul %329, %331, %cst_120 {dimension_numbers = #tpu.dot_dimension_numbers<[1], [0], [0], [1], [0, 0, 1, 1], [], []>} : vector<16x128xbf16>, vector<128x512xbf16>, vector<16x512xf32> -> vector<16x512xf32>
    %c1_121 = arith.constant 1 : index
    %c0_122 = arith.constant 0 : index
    %c0_123 = arith.constant 0 : index
    %333 = vector.load %arg9[%c1_121, %c0_122, %c0_123] : memref<2x1x512xf32, #tpu.memory_space<vmem>>, vector<1x1x512xf32>
    %334 = vector.shape_cast %333 : vector<1x1x512xf32> to vector<1x512xf32>
    %335 = vector.broadcast %334 : vector<1x512xf32> to vector<16x512xf32>
    %336 = arith.addf %332, %335 : vector<16x512xf32>
    %cst_124 = arith.constant 5.000000e-01 : f32
    %337 = vector.broadcast %cst_124 : f32 to vector<16x512xf32>
    %338 = arith.mulf %337, %336 : vector<16x512xf32>
    %cst_125 = arith.constant 0.707106769 : f32
    %339 = vector.broadcast %cst_125 : f32 to vector<16x512xf32>
    %340 = arith.mulf %336, %339 : vector<16x512xf32>
    %341 = math.erf %340 : vector<16x512xf32>
    %cst_126 = arith.constant 1.000000e+00 : f32
    %342 = vector.broadcast %cst_126 : f32 to vector<16x512xf32>
    %343 = arith.addf %342, %341 : vector<16x512xf32>
    %344 = arith.mulf %338, %343 : vector<16x512xf32>
    %345 = arith.truncf %344 : vector<16x512xf32> to vector<16x512xbf16>
    %c1_127 = arith.constant 1 : index
    %c0_128 = arith.constant 0 : index
    %c0_129 = arith.constant 0 : index
    %346 = vector.load %arg10[%c1_127, %c0_128, %c0_129] : memref<2x512x128xbf16, #tpu.memory_space<vmem>>, vector<1x512x128xbf16>
    %347 = vector.shape_cast %346 : vector<1x512x128xbf16> to vector<512x128xbf16>
    %cst_130 = arith.constant dense<0.000000e+00> : vector<16x128xf32>
    %348 = tpu.matmul %345, %347, %cst_130 {dimension_numbers = #tpu.dot_dimension_numbers<[1], [0], [0], [1], [0, 0, 1, 1], [], []>} : vector<16x512xbf16>, vector<512x128xbf16>, vector<16x128xf32> -> vector<16x128xf32>
    %349 = arith.addf %302, %348 : vector<16x128xf32>
    %c1_131 = arith.constant 1 : index
    %c0_132 = arith.constant 0 : index
    %c0_133 = arith.constant 0 : index
    %350 = vector.load %arg11[%c1_131, %c0_132, %c0_133] : memref<2x1x128xf32, #tpu.memory_space<vmem>>, vector<1x1x128xf32>
    %351 = vector.shape_cast %350 : vector<1x1x128xf32> to vector<1x128xf32>
    %352 = vector.broadcast %351 : vector<1x128xf32> to vector<16x128xf32>
    %353 = arith.addf %349, %352 : vector<16x128xf32>
    %c0_134 = arith.constant 0 : index
    %c0_135 = arith.constant 0 : index
    %354 = vector.load %arg12[%c0_134, %c0_135] : memref<1x128xf32, #tpu.memory_space<vmem>>, vector<1x128xf32>
    %c0_136 = arith.constant 0 : index
    %c0_137 = arith.constant 0 : index
    %355 = vector.load %arg13[%c0_136, %c0_137] : memref<1x128xf32, #tpu.memory_space<vmem>>, vector<1x128xf32>
    %cst_138 = arith.constant dense<0.000000e+00> : vector<16xf32>
    %356 = vector.multi_reduction <add>, %353, %cst_138 [1] : vector<16x128xf32> to vector<16xf32>
    %357 = vector.shape_cast %356 : vector<16xf32> to vector<16x1xf32>
    %cst_139 = arith.constant 1.280000e+02 : f32
    %358 = vector.broadcast %cst_139 : f32 to vector<16x1xf32>
    %359 = arith.divf %357, %358 : vector<16x1xf32>
    %360 = arith.mulf %353, %353 : vector<16x128xf32>
    %cst_140 = arith.constant dense<0.000000e+00> : vector<16xf32>
    %361 = vector.multi_reduction <add>, %360, %cst_140 [1] : vector<16x128xf32> to vector<16xf32>
    %362 = vector.shape_cast %361 : vector<16xf32> to vector<16x1xf32>
    %cst_141 = arith.constant 1.280000e+02 : f32
    %363 = vector.broadcast %cst_141 : f32 to vector<16x1xf32>
    %364 = arith.divf %362, %363 : vector<16x1xf32>
    %365 = arith.mulf %359, %359 : vector<16x1xf32>
    %366 = arith.subf %364, %365 : vector<16x1xf32>
    %367 = vector.broadcast %359 : vector<16x1xf32> to vector<16x128xf32>
    %368 = arith.subf %353, %367 : vector<16x128xf32>
    %cst_142 = arith.constant 9.99999974E-6 : f32
    %369 = vector.broadcast %cst_142 : f32 to vector<16x1xf32>
    %370 = arith.addf %366, %369 : vector<16x1xf32>
    %371 = math.rsqrt %370 : vector<16x1xf32>
    %372 = vector.broadcast %371 : vector<16x1xf32> to vector<16x128xf32>
    %373 = arith.mulf %368, %372 : vector<16x128xf32>
    %374 = vector.broadcast %354 : vector<1x128xf32> to vector<16x128xf32>
    %375 = arith.mulf %373, %374 : vector<16x128xf32>
    %376 = vector.broadcast %355 : vector<1x128xf32> to vector<16x128xf32>
    %377 = arith.addf %375, %376 : vector<16x128xf32>
    %378 = arith.truncf %377 : vector<16x128xf32> to vector<16x128xbf16>
    %c0_143 = arith.constant 0 : index
    %c0_144 = arith.constant 0 : index
    %379 = vector.load %arg14[%c0_143, %c0_144] : memref<128x256xbf16, #tpu.memory_space<vmem>>, vector<128x256xbf16>
    %cst_145 = arith.constant dense<0.000000e+00> : vector<16x256xf32>
    %380 = tpu.matmul %378, %379, %cst_145 {dimension_numbers = #tpu.dot_dimension_numbers<[1], [0], [0], [1], [0, 0, 1, 1], [], []>} : vector<16x128xbf16>, vector<128x256xbf16>, vector<16x256xf32> -> vector<16x256xf32>
    %c0_146 = arith.constant 0 : index
    %c0_147 = arith.constant 0 : index
    %381 = vector.load %arg15[%c0_146, %c0_147] : memref<1x256xf32, #tpu.memory_space<vmem>>, vector<1x256xf32>
    %382 = vector.broadcast %381 : vector<1x256xf32> to vector<16x256xf32>
    %383 = arith.addf %380, %382 : vector<16x256xf32>
    %384 = vector.shape_cast %383 : vector<16x256xf32> to vector<2x8x256xf32>
    %c0_148 = arith.constant 0 : index
    %c0_149 = arith.constant 0 : index
    %c0_150 = arith.constant 0 : index
    %385 = vector.load %arg16[%c0_148, %c0_149, %c0_150] : memref<2x8x256xf32, #tpu.memory_space<vmem>>, vector<2x8x256xf32>
    tpu.vector_store %arg16[%c0_148, %c0_149, %c0_150], %384 {strides = array<i32>} : memref<2x8x256xf32, #tpu.memory_space<vmem>>, vector<2x8x256xf32>,
    return
  }
}

</mosaic_0001>

<bundles_post_ra>
// kernel: gpt_forward.1
= control target key start
LH: loop header
LB: loop body
LE: loop exit
PB: predicated region body
PF: predicated region fallthrough
CT: control target
= control target key end

     0   :  { %s6449_s0 = inlined_call_operand.vmem [shape: f32[2,8,128], index: 0, kind: input, shape index: {}]   ;;  %s6450_s1 = inlined_call_operand.vmem [shape: f32[2,1,128], index: 1, kind: input, shape index: {}]   ;;  %s6451_s2 = inlined_call_operand.vmem [shape: f32[2,1,128], index: 2, kind: input, shape index: {}]   ;;  %s6452_s3 = inlined_call_operand.hbm [shape: bf16[2,128,384], index: 3, kind: input, shape index: {}]   ;;  %s6453_s4 = inlined_call_operand.vmem [shape: bf16[2,128,128], index: 4, kind: input, shape index: {}]   ;;  %s6454_s5 = inlined_call_operand.vmem [shape: f32[2,1,128], index: 5, kind: input, shape index: {}]   ;;  %s6455_s6 = inlined_call_operand.vmem [shape: f32[2,1,128], index: 6, kind: input, shape index: {}]   ;;  %s6456_s7 = inlined_call_operand.vmem [shape: f32[2,1,128], index: 7, kind: input, shape index: {}]   ;;  %s6457_s8 = inlined_call_operand.hbm [shape: bf16[2,128,512], index: 8, kind: input, shape index: {}]   ;;  %s6458_s9 = inlined_call_operand.vmem [shape: f32[2,1,512], index: 9, kind: input, shape index: {}]   ;;  %s6459_s10 = inlined_call_operand.hbm [shape: bf16[2,512,128], index: 10, kind: input, shape index: {}]   ;;  %s6460_s11 = inlined_call_operand.vmem [shape: f32[2,1,128], index: 11, kind: input, shape index: {}]   ;;  %s6461_s12 = inlined_call_operand.vmem [shape: f32[1,128], index: 12, kind: input, shape index: {}]   ;;  %s6462_s13 = inlined_call_operand.vmem [shape: f32[1,128], index: 13, kind: input, shape index: {}]   ;;  %s6463_s14 = inlined_call_operand.hbm [shape: bf16[128,256], index: 14, kind: input, shape index: {}]   ;;  %s6464_s15 = inlined_call_operand.vmem [shape: f32[1,256], index: 15, kind: input, shape index: {}]   ;;  %s6465_s16 = inlined_call_operand.hbm [shape: f32[2,8,256], index: 16, kind: output, shape index: {}]  }
   0x1   :  { %6467 = sst [smem:[#allocation15_spill]] %s6449_s0 }
   0x2   :  { %21 = vsyncpa [#allocation3], 0 }
   0x3   :  { %22 = vsyncpa [#allocation6], 0 }
   0x4   :  { %23 = vsyncpa [#allocation9], 0 }
   0x5   :  { %24 = vsyncpa [#allocation4], 0  ;;  %s5735_s21 = smov [#allocation5]  }
   0x6   :  { %s56_s22 = sshll.u32 %s5735_s21, 4  ;;  %s57_s22 = int_to_ptr.vmem [resolvable:$true] %s56_s22 }
   0x7   :  { %s5635_s23 = scalar_lea.vmem %s57_s22, 8192  ;;  %p5640_p1 = scmp.lt.s32.totalorder %s57_s22, %s57_s22 }
   0x8   :  { %p5636_p0 = scmp.ne.s32.totalorder %s57_s22, %s5635_s23  ;;  %p5641_p2 = scmp.lt.s32.totalorder %s5635_s23, %s5635_s23 }
   0xa   :  { %p5642_p3 = por %p5641_p2, %p5640_p1 }
   0xc   :  { %p5643_p4 = pnand %p5642_p3, %p5636_p0 }
   0xe   :  { %5646 = shalt.err (!%p5643_p4)
}
   0xf   :  { %s5736_s24 = smov 256   ;;  %s5737_s25 = smov 16  }
  0x10   :  { %62 = dma.hbm_to_vmem [thread:$0]  %s6457_s8, 8192, %s57_s22, [#allocation6], %s5736_s24, %s5736_s24, %s5737_s25  }
  0x11   :  { %s5738_s28 = smov [#allocation2]  }
  0x12   :  { %s36_s29 = sshll.u32 %s5738_s28, 4  ;;  %s37_s29 = int_to_ptr.vmem [resolvable:$true] %s36_s29 }
  0x13   :  { %s5655_s30 = scalar_lea.vmem %s37_s29, 6144  ;;  %p5660_p6 = scmp.lt.s32.totalorder %s37_s29, %s37_s29 }
  0x14   :  { %p5656_p5 = scmp.ne.s32.totalorder %s37_s29, %s5655_s30  ;;  %p5661_p7 = scmp.lt.s32.totalorder %s5655_s30, %s5655_s30 }
  0x16   :  { %p5662_p8 = por %p5661_p7, %p5660_p6 }
  0x18   :  { %p5663_p9 = pnand %p5662_p8, %p5656_p5 }
  0x1a   :  { %5666 = shalt.err (!%p5663_p9)
}
  0x1b   :  { %s5739_s0 = smov 192   ;;  %s5740_s17 = smov 12  }
  0x1c   :  { %42 = dma.hbm_to_vmem [thread:$0]  %s6452_s3, 6144, %s37_s29, [#allocation3], %s5739_s0, %s5739_s0, %s5740_s17  }
  0x1d   :  { %s5741_s20 = smov [#allocation7]  }
  0x1e   :  { %s70_s21 = sshll.u32 %s5741_s20, 4  ;;  %s71_s21 = int_to_ptr.vmem [resolvable:$true] %s70_s21 }
  0x1f   :  { %s5675_s8 = scalar_lea.vmem %s71_s21, 8192  ;;  %p5680_p11 = scmp.lt.s32.totalorder %s71_s21, %s71_s21 }
  0x20   :  { %p5676_p10 = scmp.ne.s32.totalorder %s71_s21, %s5675_s8  ;;  %p5681_p12 = scmp.lt.s32.totalorder %s5675_s8, %s5675_s8 }
  0x22   :  { %p5682_p13 = por %p5681_p12, %p5680_p11 }
  0x24   :  { %p5683_p0 = pnand %p5682_p13, %p5676_p10 }
  0x26   :  { %5686 = shalt.err (!%p5683_p0)
}
  0x27   :  { %s5742_s22 = smov 64   ;;  %s5743_s23 = smov 4  }
  0x28   :  { %76 = dma.hbm_to_vmem [thread:$0]  %s6459_s10, 8192, %s71_s21, [#allocation6], %s5742_s22, %s5742_s22, %s5743_s23  }
  0x29   :  { %s5744_s28 = smov [#allocation8]  }
  0x2a   :  { %s88_s3 = sshll.u32 %s5744_s28, 4  ;;  %s89_s3 = int_to_ptr.vmem [resolvable:$true] %s88_s3 }
  0x2b   :  { %s5695_s29 = scalar_lea.vmem %s89_s3, 2048  ;;  %p5700_p2 = scmp.lt.s32.totalorder %s89_s3, %s89_s3 }
  0x2c   :  { %p5696_p1 = scmp.ne.s32.totalorder %s89_s3, %s5695_s29  ;;  %p5701_p3 = scmp.lt.s32.totalorder %s5695_s29, %s5695_s29 }
  0x2e   :  { %p5702_p4 = por %p5701_p3, %p5700_p2 }
  0x30   :  { %p5703_p5 = pnand %p5702_p4, %p5696_p1 }
  0x32   :  { %5706 = shalt.err (!%p5703_p5)
}
  0x33   :  { %s5745_s30 = smov 128   ;;  %s5746_s0 = smov 8  }
  0x34   :  { %94 = dma.hbm_to_vmem [thread:$0]  %s6463_s14, 2048, %s89_s3, [#allocation9], %s5745_s30, %s5745_s30, %s5746_s0  }
  0x35   :  { %5727 = dma.done.wait [#allocation3], 6144  }
  0x36   :  { %5728 = vsyncadd [#allocation3], 4294961152 }
  0x37   :  { %5729 = dma.done.wait [#allocation6], 16384  }
  0x38   :  { %5730 = vsyncadd [#allocation6], 4294950912 }
  0x39   :  { %5731 = dma.done.wait [#allocation9], 2048  }
  0x3a   :  { %5732 = vsyncadd [#allocation9], 4294965248  ;;  %s6468_s20 = sld [smem:[#allocation15_spill]]  ;;  %v5245_v4 = vld [vmem:[#allocation2 + $0xac] ss:$12 sps:$4 sm:$0xff]   ;;  %v5747_v7 = vmov 0.0  }
  0x3b   :  { %v5247_v5 = vld [vmem:[#allocation2 + $0xa8] ss:$12 sps:$4 sm:$0xff]   ;;  %v5248_v6 = vld [vmem:[#allocation2 + $0xb0] ss:$12 sps:$4 sm:$0xff]   ;;  %318 = vmatprep.subr.bf16.mxu0 %v5245_v4  ;;  %4925 = vmatprep.subr.bf16.mxu1 %v5747_v7  ;;  %v5252_v10 = vld [vmem:[#allocation2 + $0x98] ss:$12 sps:$4 sm:$0xff]  }
  0x3c   :  { %319 = vmatpush1.bf16.msra.mxu0 %v5247_v5  ;;  %4926 = vmatpush3.bf16.msra.mxu1 %v5248_v6  ;;  %v5249_v8 = vld [vmem:[#allocation2 + $0x94] ss:$12 sps:$4 sm:$0xff]   ;;  %v5251_v9 = vld [vmem:[#allocation2 + $0x90] ss:$12 sps:$4 sm:$0xff]   ;;  %v5255_v12 = vld [vmem:[#allocation2 + $0x78] ss:$12 sps:$4 sm:$0xff]  }
  0x3d   :  { %4927 = vmatprep.subr.bf16.mxu1 %v5747_v7  ;;  %320 = vmatprep.subr.bf16.mxu0 %v5249_v8  ;;  %v5253_v11 = vld [vmem:[#allocation2 + $0x7c] ss:$12 sps:$4 sm:$0xff]   ;;  %v5256_v13 = vld [vmem:[#allocation2 + $0x80] ss:$12 sps:$4 sm:$0xff]   ;;  %v5257_v14 = vld [vmem:[#allocation2 + $0x64] ss:$12 sps:$4 sm:$0xff]  }
  0x3e   :  { %v5259_v15 = vld [vmem:[#allocation2 + $0x60] ss:$12 sps:$4 sm:$0xff]   ;;  %v5260_v16 = vld [vmem:[#allocation2 + $0x68] ss:$12 sps:$4 sm:$0xff]   ;;  %v5264_v19 = vld [vmem:[#allocation2 + $0x50] ss:$12 sps:$4 sm:$0xff]  }
  0x3f   :  { %v5261_v17 = vld [vmem:[#allocation2 + $0x4c] ss:$12 sps:$4 sm:$0xff]   ;;  %v5263_v18 = vld [vmem:[#allocation2 + $0x48] ss:$12 sps:$4 sm:$0xff]   ;;  %v5267_v21 = vld [vmem:[#allocation2 + $0x30] ss:$12 sps:$4 sm:$0xff]  }
  0x40   :  { %v5858_v0 = vld [vmem:[%s6468_s20] sm:$0xff]  ;;  %v5863_v1 = vld [vmem:[%s6468_s20 + $0x8] sm:$0xff]  ;;  %321 = vmatpush1.bf16.msra.mxu0 %v5251_v9  ;;  %4928 = vmatpush3.bf16.msra.mxu1 %v5252_v10  ;;  %v5748_v24 = vmov 0   ;;  %vm5749_vm0 = vmmov 0   ;;  %vm408_vm1 = vcmask 261120   ;;  %vm531_vm2 = vcmask 1043456  }
  0x41   :  { %114 = vadd.xlane.f32.xlu0 %v5858_v0  ;;  %v121_v2 = vmul.f32 %v5858_v0, %v5858_v0  ;;  %v122_v3 = vmul.f32 %v5863_v1, %v5863_v1  ;;  %4929 = vmatprep.subr.bf16.mxu1 %v5747_v7  ;;  %v5265_v20 = vld [vmem:[#allocation2 + $0x34] ss:$12 sps:$4 sm:$0xff]   ;;  %v5268_v22 = vld [vmem:[#allocation2 + $0x38] ss:$12 sps:$4 sm:$0xff]   ;;  %v5269_v23 = vld [vmem:[#allocation2 + $0x1c] ss:$12 sps:$4 sm:$0xff]  }
  0x42   :  { %322 = vmatprep.subr.bf16.mxu0 %v5253_v11  ;;  %350 = vmatprep.mubr.bf16.mxu0 %v5748_v24  ;;  %v5271_v25 = vld [vmem:[#allocation2 + $0x18] ss:$12 sps:$4 sm:$0xff]   ;;  %v5272_v26 = vld [vmem:[#allocation2 + $0x20] ss:$12 sps:$4 sm:$0xff]   ;;  %v5276_v29 = vld [vmem:[#allocation2 + $0x8] ss:$12 sps:$4 sm:$0xff]  }
  0x43   :  { %123 = vadd.xlane.f32.xlu1 %v121_v2  ;;  %4941 = vmatprep.mubr.msk.bf16.mxu1 %vm5749_vm0, %v5747_v7  ;;  %v5273_v27 = vld [vmem:[#allocation2 + $0x4] ss:$12 sps:$4 sm:$0xff]   ;;  %v5275_v28 = vld [vmem:[#allocation2] ss:$12 sps:$4 sm:$0xff]   ;;  %vm501_vm3 = vcmask 64512   ;;  %s5750_s28 = smov 96  }
  0x44   :  { %323 = vmatpush1.bf16.msra.mxu0 %v5255_v12  ;;  %4930 = vmatpush3.bf16.msra.mxu1 %v5256_v13  ;;  %v4460_v47 = vld [vmem:[%s6450_s1] ss:$0 sm:$0xff]  ;;  %s5751_s3 = smov 32   ;;  %vm1313_vm4 = vcmask 523264   ;;  %vm1316_vm5 = vcmask 785408  }
  0x45   :  { %116 = vadd.xlane.f32.xlu0 %v5863_v1  ;;  %4931 = vmatprep.subr.bf16.mxu1 %v5747_v7  ;;  %v4461_v52 = vld [vmem:[%s6451_s2] ss:$0 sm:$0xff] }
  0x46   :  { %324 = vmatprep.subr.bf16.mxu0 %v5257_v14 }
  0x47   :  { %125 = vadd.xlane.f32.xlu1 %v122_v3 }
  0x48   :  { %325 = vmatpush1.bf16.msra.mxu0 %v5259_v15  ;;  %4932 = vmatpush3.bf16.msra.mxu1 %v5260_v16 }
  0x49   :  { %326 = vmatprep.subr.bf16.mxu0 %v5261_v17  ;;  %4933 = vmatprep.subr.bf16.mxu1 %v5747_v7 }
  0x4c   :  { %327 = vmatpush1.bf16.msra.mxu0 %v5263_v18  ;;  %4934 = vmatpush3.bf16.msra.mxu1 %v5264_v19 }
  0x4d   :  { %328 = vmatprep.subr.bf16.mxu0 %v5265_v20  ;;  %4935 = vmatprep.subr.bf16.mxu1 %v5747_v7 }
  0x50   :  { %329 = vmatpush1.bf16.msra.mxu0 %v5267_v21  ;;  %4936 = vmatpush3.bf16.msra.mxu1 %v5268_v22 }
  0x51   :  { %330 = vmatprep.subr.bf16.mxu0 %v5269_v23  ;;  %4937 = vmatprep.subr.bf16.mxu1 %v5747_v7 }
  0x54   :  { %331 = vmatpush1.bf16.msra.mxu0 %v5271_v25  ;;  %4938 = vmatpush3.bf16.msra.mxu1 %v5272_v26 }
  0x55   :  { %332 = vmatprep.subr.bf16.mxu0 %v5273_v27  ;;  %4939 = vmatprep.subr.bf16.mxu1 %v5747_v7 }
  0x58   :  { %333 = vmatpush1.bf16.msra.mxu0 %v5275_v28  ;;  %4940 = vmatpush3.bf16.msra.mxu1 %v5276_v29 }
  0x59   :  { %4945 = vmatprep.subr.bf16.mxu0 %v5747_v7  ;;  %4951 = vmatprep.subr.bf16.mxu1 %v5747_v7 }
  0xca   :  { %v115_v30 = vpop.xlane.xlu0 %114 }
  0xcb   :  { %v119_v31 = vmul.f32 0.0078125, %v115_v30 }
  0xcc   :  { %v124_v32 = vpop.xlane.xlu1 %123 }
  0xcd   :  { %v129_v33 = vmul.f32 %v119_v31, %v119_v31  ;;  %v127_v34 = vmul.f32 0.0078125, %v124_v32  ;;  %v133_v44 = vsub.f32 %v5858_v0, %v119_v31 }
  0xce   :  { %v117_v35 = vpop.xlane.xlu0 %116 }
  0xcf   :  { %v131_v36 = vsub.f32 %v127_v34, %v129_v33  ;;  %v120_v37 = vmul.f32 0.0078125, %v117_v35 }
  0xd0   :  { %v126_v38 = vpop.xlane.xlu1 %125 }
  0xd1   :  { %v135_v39 = vadd.f32 1e-05, %v131_v36  ;;  %v130_v40 = vmul.f32 %v120_v37, %v120_v37  ;;  %v128_v41 = vmul.f32 0.0078125, %v126_v38  ;;  %v134_v48 = vsub.f32 %v5863_v1, %v120_v37 }
  0xd3   :  { %5509 = vrsqrt.f32 %v135_v39  ;;  %v132_v42 = vsub.f32 %v128_v41, %v130_v40 }
  0xd5   :  { %v136_v43 = vadd.f32 1e-05, %v132_v42 }
  0xd7   :  { %5511 = vrsqrt.f32 %v136_v43 }
  0xe0   :  { %v5510_v45 = vpop.eup %5509 }
  0xe1   :  { %v139_v46 = vmul.f32 %v5510_v45, %v133_v44 }
  0xe3   :  { %v147_v51 = vmul.f32 %v4460_v47, %v139_v46 }
  0xe4   :  { %v5512_v49 = vpop.eup %5511 }
  0xe5   :  { %v140_v50 = vmul.f32 %v5512_v49, %v134_v48  ;;  %v155_v54 = vadd.f32 %v4461_v52, %v147_v51 }
  0xe7   :  { %v148_v53 = vmul.f32 %v4460_v47, %v140_v50 }
  0xe9   :  { %v156_v55 = vadd.f32 %v4461_v52, %v148_v53 }
  0xeb   :  { %v157_v56 = vpack.c.bf16 %v156_v55, %v155_v54 }
  0xed   :  { %351 = vmatmul.mubr.bf16.vlgmr.msra.gmra.mxu0 %v157_v56  ;;  %4942 = vmatmul.mubr.bf16.vlgmr.msra.gmra.mxu1 %v157_v56 }
  0xee   :  { %4947 = vmatprep.mubr.msk.bf16.mxu0 %vm5749_vm0, %v5747_v7  ;;  %4953 = vmatprep.mubr.msk.bf16.mxu1 %vm5749_vm0, %v5747_v7 }
 0x1ad   :  { %v352_v57 = vpop.f32.mrf.mxu0  ;;  %v395_v58 = vpop.f32.mrf.mxu1 }
 0x1ae   :  { %v402_v3 = vmul.f32 0.088388346, %v352_v57  ;;  %v5903_v5 = vpack.c.bf16 %v395_v58, %v395_v58 }
 0x1af   :  { %v354_v59 = vpop.f32.mrf.mxu0  ;;  %v4943_v60 = vpop.f32.mrf.mxu1 }
 0x1b0   :  { %v5896_v61 = vpack.c.bf16 %v354_v59, %v354_v59  ;;  %v5907_v8 = vpack.c.bf16 %v402_v3, %v402_v3  ;;  %v533_v11 = vsel %vm531_vm2, %v5903_v5, 0 }
 0x1b1   :  { %v356_v62 = vpop.f32.mrf.mxu0  ;;  %v398_v63 = vpop.f32.mrf.mxu1 }
 0x1b2   :  { %v413_v0 = vsel %vm408_vm1, %v5896_v61, 0  ;;  %v403_v9 = vmul.f32 0.088388346, %v356_v62  ;;  %v5910_v10 = vpack.c.bf16 %v398_v63, %v398_v63 }
 0x1b3   :  { %v358_v1 = vpop.f32.mrf.mxu0  ;;  %v4944_v2 = vpop.f32.mrf.mxu1  ;;  %4946 = vmatpush3.bf16.xpose.msra.mxu0 %v413_v0 }
 0x1b4   :  { %v5900_v4 = vpack.c.bf16 %v358_v1, %v358_v1  ;;  %4957 = vmatprep.subr.bf16.mxu0 %v5747_v7  ;;  %v5918_v12 = vpack.c.bf16 %v403_v9, %v403_v9  ;;  %v579_v13 = vsel %vm531_vm2, %v5910_v10, 0 }
 0x1b6   :  { %v459_v6 = vsel %vm408_vm1, %v5900_v4, 0 }
 0x1b7   :  { %4952 = vmatpush3.bf16.xpose.msra.mxu1 %v459_v6 }
 0x1b8   :  { %4963 = vmatprep.subr.bf16.mxu1 %v5747_v7 }
 0x1ba   :  { %4948 = vmatmul.mubr.msk.bf16.vlgmr.msra.gmra.mxu0 %vm408_vm1, %v5907_v8 }
 0x1bb   :  { %4958 = vmatpush3.bf16.msra.mxu0 %v533_v11  ;;  %4959 = vmatprep.mubr.msk.bf16.mxu0 %vm5749_vm0, %v5747_v7 }
 0x1bc   :  { %4969 = vmatprep.subr.bf16.mxu0 %v5747_v7 }
 0x1be   :  { %4954 = vmatmul.mubr.msk.bf16.vlgmr.msra.gmra.mxu1 %vm408_vm1, %v5918_v12 }
 0x1bf   :  { %4964 = vmatpush3.bf16.msra.mxu1 %v579_v13  ;;  %4965 = vmatprep.mubr.msk.bf16.mxu1 %vm5749_vm0, %v5747_v7 }
 0x1c0   :  { %4975 = vmatprep.subr.bf16.mxu1 %v5747_v7 }
 0x27a   :  { %v449_v14 = vpop.f32.mrf.mxu0 }
 0x27b   :  { %v502_v15 = vsel %vm501_vm3, %v449_v14, -inf }
 0x27c   :  { %503 = vmax.xlane.f32.xlu0 %v502_v15  ;;  %v4949_v16 = vpop.f32.mrf.mxu0 }
 0x27e   :  { %v452_v17 = vpop.f32.mrf.mxu0  ;;  %v495_v18 = vpop.f32.mrf.mxu1 }
 0x27f   :  { %v505_v19 = vsel %vm501_vm3, %v495_v18, -inf }
 0x280   :  { %v4950_v20 = vpop.f32.mrf.mxu0  ;;  %506 = vmax.xlane.f32.xlu1 %v505_v19  ;;  %v4955_v21 = vpop.f32.mrf.mxu1 }
 0x282   :  { %v498_v22 = vpop.f32.mrf.mxu1 }
 0x284   :  { %v4956_v23 = vpop.f32.mrf.mxu1 }
 0x291   :  { %677 = vrot.lane.b32.xlu1 %v5900_v4, %s5750_s28 }
 0x305   :  { %v504_v25 = vpop.xlane.xlu0 %503 }
 0x306   :  { %v508_v26 = vsub.f32 %v449_v14, %v504_v25 }
 0x308   :  { %v510_v27 = vmul.f32 1.442695, %v508_v26 }
 0x309   :  { %v507_v28 = vpop.xlane.xlu1 %506 }
 0x30a   :  { %5513 = vpow2.f32 %v510_v27  ;;  %v509_v29 = vsub.f32 %v495_v18, %v507_v28 }
 0x30c   :  { %v512_v30 = vmul.f32 1.442695, %v509_v29 }
 0x30d   :  { %v678_v35 = vpop.permute.xlu1 %677 }
 0x30e   :  { %5515 = vpow2.f32 %v512_v30  ;;  %v683_v46 = vsel %vm408_vm1, %v678_v35, 0 }
 0x317   :  { %v5514_v31 = vpop.eup %5513 }
 0x318   :  { %v514_v32 = vsel %vm501_vm3, %v5514_v31, 0.0 }
 0x319   :  { %515 = vadd.xlane.f32.xlu0 %v514_v32 }
 0x31b   :  { %v5516_v33 = vpop.eup %5515 }
 0x31c   :  { %v517_v34 = vsel %vm501_vm3, %v5516_v33, 0.0 }
 0x31d   :  { %518 = vadd.xlane.f32.xlu1 %v517_v34 }
 0x32e   :  { %622 = vrot.lane.b32.xlu1 %v5907_v8, %s5750_s28 }
 0x32f   :  { %625 = vrot.lane.b32.xlu0 %v5896_v61, %s5750_s28 }
 0x332   :  { %674 = vrot.lane.b32.xlu1 %v5918_v12, %s5750_s28 }
 0x3a2   :  { %v516_v36 = vpop.xlane.xlu0 %515 }
 0x3a3   :  { %5517 = vrcp.f32 %v516_v36 }
 0x3a6   :  { %v519_v37 = vpop.xlane.xlu1 %518  ;;  %v626_v40 = vpop.permute.xlu0 %625 }
 0x3a7   :  { %5519 = vrcp.f32 %v519_v37  ;;  %v631_v43 = vsel %vm408_vm1, %v626_v40, 0 }
 0x3aa   :  { %v623_v47 = vpop.permute.xlu1 %622 }
 0x3ae   :  { %v675_v48 = vpop.permute.xlu1 %674 }
 0x3b0   :  { %v5518_v38 = vpop.eup %5517 }
 0x3b1   :  { %v522_v39 = vmul.f32 %v5518_v38, %v5514_v31 }
 0x3b3   :  { %v524_v41 = vpack.c.bf16 %v522_v39, %v522_v39 }
 0x3b4   :  { %v5520_v42 = vpop.eup %5519 }
 0x3b5   :  { %4960 = vmatmul.mubr.msk.bf16.vlgmr.msra.gmra.mxu0 %vm501_vm3, %v524_v41  ;;  %v523_v44 = vmul.f32 %v5520_v42, %v5516_v33 }
 0x3b6   :  { %4970 = vmatpush3.bf16.xpose.msra.mxu0 %v631_v43  ;;  %4971 = vmatprep.mubr.msk.bf16.mxu0 %vm5749_vm0, %v5747_v7 }
 0x3b7   :  { %v525_v45 = vpack.c.bf16 %v523_v44, %v523_v44  ;;  %4981 = vmatprep.subr.bf16.mxu0 %v5747_v7 }
 0x3b9   :  { %4966 = vmatmul.mubr.msk.bf16.vlgmr.msra.gmra.mxu1 %vm501_vm3, %v525_v45 }
 0x3ba   :  { %4976 = vmatpush3.bf16.xpose.msra.mxu1 %v683_v46  ;;  %4977 = vmatprep.mubr.msk.bf16.mxu1 %vm5749_vm0, %v5747_v7 }
 0x3bb   :  { %4987 = vmatprep.subr.bf16.mxu1 %v5747_v7 }
 0x3bd   :  { %4972 = vmatmul.mubr.msk.bf16.vlgmr.msra.gmra.mxu0 %vm408_vm1, %v623_v47 }
 0x3be   :  { %4983 = vmatprep.mubr.msk.bf16.mxu0 %vm5749_vm0, %v5747_v7 }
 0x3c1   :  { %4978 = vmatmul.mubr.msk.bf16.vlgmr.msra.gmra.mxu1 %vm408_vm1, %v675_v48 }
 0x3c2   :  { %4989 = vmatprep.mubr.msk.bf16.mxu1 %vm5749_vm0, %v5747_v7 }
 0x475   :  { %v5956_v49 = vpop.f32.mrf.mxu0 }
 0x477   :  { %v4961_v50 = vpop.f32.mrf.mxu0 }
 0x479   :  { %v572_v51 = vpop.f32.mrf.mxu0  ;;  %v5958_v52 = vpop.f32.mrf.mxu1 }
 0x47b   :  { %v4962_v53 = vpop.f32.mrf.mxu0  ;;  %v4967_v54 = vpop.f32.mrf.mxu1 }
 0x47d   :  { %v618_v55 = vpop.f32.mrf.mxu1  ;;  %v667_v56 = vpop.f32.mrf.mxu0 }
 0x47e   :  { %v725_v57 = vsel %vm501_vm3, %v667_v56, -inf }
 0x47f   :  { %726 = vmax.xlane.f32.xlu0 %v725_v57  ;;  %v4968_v58 = vpop.f32.mrf.mxu1  ;;  %v4973_v59 = vpop.f32.mrf.mxu0 }
 0x481   :  { %v670_v60 = vpop.f32.mrf.mxu0  ;;  %v719_v62 = vpop.f32.mrf.mxu1 }
 0x482   :  { %v728_v63 = vsel %vm501_vm3, %v719_v62, -inf }
 0x483   :  { %v4974_v0 = vpop.f32.mrf.mxu0  ;;  %729 = vmax.xlane.f32.xlu1 %v728_v63  ;;  %v4979_v1 = vpop.f32.mrf.mxu1 }
 0x485   :  { %v722_v2 = vpop.f32.mrf.mxu1 }
 0x487   :  { %v4980_v3 = vpop.f32.mrf.mxu1 }
 0x494   :  { %799 = vrot.lane.b32.xlu1 %v5910_v10, %s5750_s28 }
 0x498   :  { %849 = vrot.lane.b32.xlu1 %v5896_v61, %s5742_s22 }
 0x49c   :  { %899 = vrot.lane.b32.xlu1 %v5900_v4, %s5742_s22 }
 0x4a0   :  { %897 = vrot.lane.b32.xlu1 %v5918_v12, %s5742_s22 }
 0x508   :  { %v727_v6 = vpop.xlane.xlu0 %726 }
 0x509   :  { %v731_v9 = vsub.f32 %v667_v56, %v727_v6 }
 0x50b   :  { %v733_v11 = vmul.f32 1.442695, %v731_v9 }
 0x50c   :  { %v730_v13 = vpop.xlane.xlu1 %729 }
 0x50d   :  { %5521 = vpow2.f32 %v733_v11  ;;  %v732_v14 = vsub.f32 %v719_v62, %v730_v13 }
 0x50f   :  { %v735_v15 = vmul.f32 1.442695, %v732_v14 }
 0x510   :  { %v800_v16 = vpop.permute.xlu1 %799 }
 0x511   :  { %5523 = vpow2.f32 %v735_v15  ;;  %v805_v17 = vsel %vm531_vm2, %v800_v16, 0 }
 0x512   :  { %4988 = vmatpush3.bf16.msra.mxu1 %v805_v17 }
 0x513   :  { %4999 = vmatprep.subr.bf16.mxu1 %v5747_v7 }
 0x514   :  { %v850_v28 = vpop.permute.xlu1 %849 }
 0x515   :  { %v855_v32 = vsel %vm408_vm1, %v850_v28, 0 }
 0x518   :  { %v900_v34 = vpop.permute.xlu1 %899 }
 0x519   :  { %v905_v36 = vsel %vm408_vm1, %v900_v34, 0 }
 0x51a   :  { %v5522_v18 = vpop.eup %5521 }
 0x51b   :  { %v737_v19 = vsel %vm501_vm3, %v5522_v18, 0.0 }
 0x51c   :  { %738 = vadd.xlane.f32.xlu0 %v737_v19  ;;  %v898_v38 = vpop.permute.xlu1 %897 }
 0x51e   :  { %v5524_v20 = vpop.eup %5523 }
 0x51f   :  { %v740_v21 = vsel %vm501_vm3, %v5524_v20, 0.0 }
 0x520   :  { %741 = vadd.xlane.f32.xlu0 %v740_v21 }
 0x536   :  { %750 = vrot.lane.b32.xlu0 %v5903_v5, %s5750_s28 }
 0x53a   :  { %847 = vrot.lane.b32.xlu0 %v5907_v8, %s5742_s22 }
 0x5a5   :  { %v739_v22 = vpop.xlane.xlu0 %738 }
 0x5a6   :  { %5525 = vrcp.f32 %v739_v22 }
 0x5a9   :  { %v742_v23 = vpop.xlane.xlu0 %741 }
 0x5aa   :  { %5527 = vrcp.f32 %v742_v23 }
 0x5ad   :  { %v751_v25 = vpop.permute.xlu0 %750 }
 0x5ae   :  { %v756_v26 = vsel %vm531_vm2, %v751_v25, 0 }
 0x5af   :  { %4982 = vmatpush3.bf16.msra.mxu0 %v756_v26 }
 0x5b0   :  { %4993 = vmatprep.subr.bf16.mxu0 %v5747_v7 }
 0x5b1   :  { %v848_v37 = vpop.permute.xlu0 %847 }
 0x5b3   :  { %v5526_v27 = vpop.eup %5525 }
 0x5b4   :  { %v745_v29 = vmul.f32 %v5526_v27, %v5522_v18 }
 0x5b6   :  { %v747_v30 = vpack.c.bf16 %v745_v29, %v745_v29 }
 0x5b7   :  { %v5528_v31 = vpop.eup %5527 }
 0x5b8   :  { %4984 = vmatmul.mubr.msk.bf16.vlgmr.msra.gmra.mxu0 %vm501_vm3, %v747_v30  ;;  %v746_v33 = vmul.f32 %v5528_v31, %v5524_v20 }
 0x5b9   :  { %4994 = vmatpush3.bf16.xpose.msra.mxu0 %v855_v32  ;;  %4995 = vmatprep.mubr.msk.bf16.mxu0 %vm5749_vm0, %v5747_v7 }
 0x5ba   :  { %v748_v35 = vpack.c.bf16 %v746_v33, %v746_v33  ;;  %5005 = vmatprep.subr.bf16.mxu0 %v5747_v7 }
 0x5bc   :  { %4990 = vmatmul.mubr.msk.bf16.vlgmr.msra.gmra.mxu1 %vm501_vm3, %v748_v35 }
 0x5bd   :  { %5000 = vmatpush3.bf16.xpose.msra.mxu1 %v905_v36  ;;  %5001 = vmatprep.mubr.msk.bf16.mxu1 %vm5749_vm0, %v5747_v7 }
 0x5be   :  { %5011 = vmatprep.subr.bf16.mxu1 %v5747_v7 }
 0x5c0   :  { %4996 = vmatmul.mubr.msk.bf16.vlgmr.msra.gmra.mxu0 %vm408_vm1, %v848_v37 }
 0x5c1   :  { %5007 = vmatprep.mubr.msk.bf16.mxu0 %vm5749_vm0, %v5747_v7 }
 0x5c4   :  { %5002 = vmatmul.mubr.msk.bf16.vlgmr.msra.gmra.mxu1 %vm408_vm1, %v898_v38 }
 0x5c5   :  { %5013 = vmatprep.mubr.msk.bf16.mxu1 %vm5749_vm0, %v5747_v7 }
 0x678   :  { %v5996_v39 = vpop.f32.mrf.mxu0 }
 0x67a   :  { %v4985_v40 = vpop.f32.mrf.mxu0 }
 0x67c   :  { %v795_v41 = vpop.f32.mrf.mxu0  ;;  %v5998_v42 = vpop.f32.mrf.mxu1 }
 0x67d   :  { %v5215_v43 = vpack.i.bf16 %v5998_v42, %v5996_v39 }
 0x67e   :  { %v4986_v44 = vpop.f32.mrf.mxu0  ;;  %v4991_v45 = vpop.f32.mrf.mxu1 }
 0x680   :  { %v844_v46 = vpop.f32.mrf.mxu1  ;;  %v891_v47 = vpop.f32.mrf.mxu0 }
 0x681   :  { %v947_v48 = vsel %vm501_vm3, %v891_v47, -inf }
 0x682   :  { %948 = vmax.xlane.f32.xlu0 %v947_v48  ;;  %v4992_v50 = vpop.f32.mrf.mxu1  ;;  %v4997_v51 = vpop.f32.mrf.mxu0 }
 0x684   :  { %v894_v53 = vpop.f32.mrf.mxu0  ;;  %v941_v54 = vpop.f32.mrf.mxu1 }
 0x685   :  { %v950_v55 = vsel %vm501_vm3, %v941_v54, -inf }
 0x686   :  { %v4998_v56 = vpop.f32.mrf.mxu0  ;;  %951 = vmax.xlane.f32.xlu1 %v950_v55  ;;  %v5003_v57 = vpop.f32.mrf.mxu1 }
 0x688   :  { %v944_v58 = vpop.f32.mrf.mxu1 }
 0x68a   :  { %v5004_v59 = vpop.f32.mrf.mxu1 }
 0x697   :  { %1019 = vrot.lane.b32.xlu1 %v5910_v10, %s5742_s22 }
 0x69b   :  { %1069 = vrot.lane.b32.xlu1 %v5896_v61, %s5751_s3 }
 0x69f   :  { %1119 = vrot.lane.b32.xlu1 %v5900_v4, %s5751_s3 }
 0x6a3   :  { %1117 = vrot.lane.b32.xlu1 %v5918_v12, %s5751_s3 }
 0x70b   :  { %v949_v60 = vpop.xlane.xlu0 %948 }
 0x70c   :  { %v953_v62 = vsub.f32 %v891_v47, %v949_v60 }
 0x70e   :  { %v955_v63 = vmul.f32 1.442695, %v953_v62 }
 0x70f   :  { %v952_v0 = vpop.xlane.xlu1 %951 }
 0x710   :  { %5529 = vpow2.f32 %v955_v63  ;;  %v954_v1 = vsub.f32 %v941_v54, %v952_v0 }
 0x712   :  { %v957_v2 = vmul.f32 1.442695, %v954_v1 }
 0x713   :  { %v1020_v3 = vpop.permute.xlu1 %1019 }
 0x714   :  { %5531 = vpow2.f32 %v957_v2  ;;  %v1025_v6 = vsel %vm531_vm2, %v1020_v3, 0 }
 0x715   :  { %5012 = vmatpush3.bf16.msra.mxu1 %v1025_v6 }
 0x716   :  { %5023 = vmatprep.subr.bf16.mxu1 %v5747_v7 }
 0x717   :  { %v1070_v17 = vpop.permute.xlu1 %1069 }
 0x718   :  { %v1075_v21 = vsel %vm408_vm1, %v1070_v17, 0 }
 0x71b   :  { %v1120_v22 = vpop.permute.xlu1 %1119 }
 0x71c   :  { %v1125_v25 = vsel %vm408_vm1, %v1120_v22, 0 }
 0x71d   :  { %v5530_v61 = vpop.eup %5529 }
 0x71e   :  { %v959_v4 = vsel %vm501_vm3, %v5530_v61, 0.0 }
 0x71f   :  { %960 = vadd.xlane.f32.xlu0 %v959_v4  ;;  %v1118_v27 = vpop.permute.xlu1 %1117  ;;  %v5277_v4 = vld [vmem:[%s6453_s4 + $0x38] sm:$0xff]  }
 0x721   :  { %v5532_v9 = vpop.eup %5531 }
 0x722   :  { %v962_v12 = vsel %vm501_vm3, %v5532_v9, 0.0 }
 0x723   :  { %963 = vadd.xlane.f32.xlu0 %v962_v12  ;;  %v5279_v12 = vld [vmem:[%s6453_s4 + $0x28] sm:$0xff]  }
 0x739   :  { %971 = vrot.lane.b32.xlu0 %v5903_v5, %s5742_s22 }
 0x73d   :  { %1067 = vrot.lane.b32.xlu0 %v5907_v8, %s5751_s3 }
 0x7a8   :  { %v961_v11 = vpop.xlane.xlu0 %960 }
 0x7a9   :  { %5533 = vrcp.f32 %v961_v11  ;;  %v5280_v11 = vld [vmem:[%s6453_s4 + $0x20] sm:$0xff]  }
 0x7ac   :  { %v964_v13 = vpop.xlane.xlu0 %963 }
 0x7ad   :  { %5535 = vrcp.f32 %v964_v13  ;;  %v5281_v13 = vld [vmem:[%s6453_s4 + $0x18] sm:$0xff]  }
 0x7b0   :  { %v972_v14 = vpop.permute.xlu0 %971 }
 0x7b1   :  { %v977_v15 = vsel %vm531_vm2, %v972_v14, 0  ;;  %v5282_v14 = vld [vmem:[%s6453_s4 + $0x10] sm:$0xff]  }
 0x7b2   :  { %5006 = vmatpush3.bf16.msra.mxu0 %v977_v15  ;;  %v5283_v15 = vld [vmem:[%s6453_s4 + $0x8] sm:$0xff]  }
 0x7b3   :  { %5017 = vmatprep.subr.bf16.mxu0 %v5747_v7 }
 0x7b4   :  { %v1068_v26 = vpop.permute.xlu0 %1067 }
 0x7b6   :  { %v5534_v16 = vpop.eup %5533 }
 0x7b7   :  { %v967_v18 = vmul.f32 %v5534_v16, %v5530_v61  ;;  %v5284_v16 = vld [vmem:[%s6453_s4] sm:$0xff]  }
 0x7b9   :  { %v969_v19 = vpack.c.bf16 %v967_v18, %v967_v18 }
 0x7ba   :  { %v5536_v20 = vpop.eup %5535 }
 0x7bb   :  { %5008 = vmatmul.mubr.msk.bf16.vlgmr.msra.gmra.mxu0 %vm501_vm3, %v969_v19  ;;  %v968_v8 = vmul.f32 %v5536_v20, %v5532_v9  ;;  %v5278_v9 = vld [vmem:[%s6453_s4 + $0x30] sm:$0xff]  }
 0x7bc   :  { %5018 = vmatpush3.bf16.xpose.msra.mxu0 %v1075_v21  ;;  %5019 = vmatprep.mubr.msk.bf16.mxu0 %vm5749_vm0, %v5747_v7 }
 0x7bd   :  { %v970_v23 = vpack.c.bf16 %v968_v8, %v968_v8  ;;  %5029 = vmatprep.subr.bf16.mxu0 %v5747_v7 }
 0x7bf   :  { %5014 = vmatmul.mubr.msk.bf16.vlgmr.msra.gmra.mxu1 %vm501_vm3, %v970_v23 }
 0x7c0   :  { %5024 = vmatpush3.bf16.xpose.msra.mxu1 %v1125_v25  ;;  %5025 = vmatprep.mubr.msk.bf16.mxu1 %vm5749_vm0, %v5747_v7 }
 0x7c1   :  { %5035 = vmatprep.subr.bf16.mxu1 %v5747_v7 }
 0x7c3   :  { %5020 = vmatmul.mubr.msk.bf16.vlgmr.msra.gmra.mxu0 %vm408_vm1, %v1068_v26 }
 0x7c4   :  { %5031 = vmatprep.mubr.msk.bf16.mxu0 %vm5749_vm0, %v5747_v7 }
 0x7c7   :  { %5026 = vmatmul.mubr.msk.bf16.vlgmr.msra.gmra.mxu1 %vm408_vm1, %v1118_v27 }
 0x7c8   :  { %5037 = vmatprep.mubr.msk.bf16.mxu1 %vm5749_vm0, %v5747_v7 }
 0x87b   :  { %v1013_v28 = vpop.f32.mrf.mxu0 }
 0x87d   :  { %v5009_v29 = vpop.f32.mrf.mxu0 }
 0x87f   :  { %v1016_v30 = vpop.f32.mrf.mxu0  ;;  %v1061_v31 = vpop.f32.mrf.mxu1 }
 0x880   :  { %v5220_v50 = vpack.i.bf16 %v1061_v31, %v1013_v28 }
 0x881   :  { %v5010_v32 = vpop.f32.mrf.mxu0  ;;  %v5015_v33 = vpop.f32.mrf.mxu1 }
 0x883   :  { %v1064_v34 = vpop.f32.mrf.mxu1  ;;  %v1111_v35 = vpop.f32.mrf.mxu0 }
 0x884   :  { %v1167_v36 = vsel %vm501_vm3, %v1111_v35, -inf }
 0x885   :  { %1168 = vmax.xlane.f32.xlu0 %v1167_v36  ;;  %v5016_v37 = vpop.f32.mrf.mxu1  ;;  %v5021_v38 = vpop.f32.mrf.mxu0 }
 0x887   :  { %v1114_v40 = vpop.f32.mrf.mxu0  ;;  %v1161_v41 = vpop.f32.mrf.mxu1 }
 0x888   :  { %v1170_v44 = vsel %vm501_vm3, %v1161_v41, -inf }
 0x889   :  { %v5022_v45 = vpop.f32.mrf.mxu0  ;;  %1171 = vmax.xlane.f32.xlu1 %v1170_v44  ;;  %v5027_v46 = vpop.f32.mrf.mxu1 }
 0x88b   :  { %v1164_v47 = vpop.f32.mrf.mxu1 }
 0x88d   :  { %v5028_v48 = vpop.f32.mrf.mxu1 }
 0x89a   :  { %1239 = vrot.lane.b32.xlu1 %v5910_v10, %s5751_s3 }
 0x89e   :  { %5216 = vrot.lane.b32.xlu1 %v5215_v43, %s5751_s3 }
 0x8a2   :  { %5221 = vrot.lane.b32.xlu1 %v5220_v50, %s5742_s22 }
 0x90e   :  { %v1169_v51 = vpop.xlane.xlu0 %1168 }
 0x90f   :  { %v1173_v53 = vsub.f32 %v1111_v35, %v1169_v51  ;;  %v5626_v51 = vld [vmem:[%s6468_s20 + $0x8] sm:$0xff] }
 0x911   :  { %v1175_v54 = vmul.f32 1.442695, %v1173_v53 }
 0x912   :  { %v1172_v55 = vpop.xlane.xlu1 %1171 }
 0x913   :  { %5537 = vpow2.f32 %v1175_v54  ;;  %v1174_v56 = vsub.f32 %v1161_v41, %v1172_v55 }
 0x915   :  { %v1177_v57 = vmul.f32 1.442695, %v1174_v56 }
 0x916   :  { %v1240_v58 = vpop.permute.xlu1 %1239 }
 0x917   :  { %5539 = vpow2.f32 %v1177_v57  ;;  %v1245_v59 = vsel %vm531_vm2, %v1240_v58, 0  ;;  %v5287_v58 = vld [vmem:[#allocation5 + $0xe4] ss:$16 sps:$4 sm:$0xff]  }
 0x918   :  { %5036 = vmatpush3.bf16.msra.mxu1 %v1245_v59  ;;  %v5290_v59 = vld [vmem:[#allocation5 + $0xec] ss:$16 sps:$4 sm:$0xff]  }
 0x919   :  { %1695 = vmatprep.subr.bf16.mxu1 %v5287_v58  ;;  %v5334_v58 = vld [vmem:[#allocation7 + $0xf8] sm:$0xff]  }
 0x91a   :  { %v5217_v26 = vpop.permute.xlu1 %5216 }
 0x91b   :  { %v5219_v28 = vunpack.i.h.bf16 %v5217_v26  ;;  %v5218_v29 = vunpack.i.l.bf16 %v5217_v26 }
 0x91d   :  { %v1312_v33 = vsel %vm408_vm1, %v5958_v52, %v5219_v28  ;;  %v1311_v34 = vsel %vm408_vm1, %v5956_v49, %v5218_v29  ;;  %v4510_v52 = vld [vmem:[%s6454_s5] ss:$0 sm:$0xff] }
 0x91e   :  { %v5222_v27 = vpop.permute.xlu1 %5221  ;;  %v5625_v49 = vld [vmem:[%s6468_s20] sm:$0xff] }
 0x91f   :  { %v5224_v30 = vunpack.i.h.bf16 %v5222_v27  ;;  %v5223_v31 = vunpack.i.l.bf16 %v5222_v27 }
 0x920   :  { %v5538_v10 = vpop.eup %5537 }
 0x921   :  { %v1179_v60 = vsel %vm501_vm3, %v5538_v10, 0.0  ;;  %v1314_v37 = vsel %vm1313_vm4, %v1311_v34, %v5223_v31  ;;  %v1315_v38 = vsel %vm1313_vm4, %v1312_v33, %v5224_v30 }
 0x922   :  { %1180 = vadd.xlane.f32.xlu0 %v1179_v60  ;;  %v5288_v60 = vld [vmem:[#allocation5 + $0xe8] ss:$16 sps:$4 sm:$0xff]  }
 0x924   :  { %v5540_v39 = vpop.eup %5539 }
 0x925   :  { %v1182_v42 = vsel %vm501_vm3, %v5540_v39, 0.0 }
 0x926   :  { %1183 = vadd.xlane.f32.xlu0 %v1182_v42  ;;  %v5296_v42 = vld [vmem:[#allocation5 + $0xcc] ss:$16 sps:$4 sm:$0xff]  }
 0x93c   :  { %1191 = vrot.lane.b32.xlu0 %v5903_v5, %s5751_s3 }
 0x9ab   :  { %v1181_v43 = vpop.xlane.xlu0 %1180 }
 0x9ac   :  { %5541 = vrcp.f32 %v1181_v43  ;;  %v5291_v43 = vld [vmem:[#allocation5 + $0xc0] ss:$16 sps:$4 sm:$0xff]  }
 0x9af   :  { %v1184_v62 = vpop.xlane.xlu0 %1183 }
 0x9b0   :  { %5543 = vrcp.f32 %v1184_v62  ;;  %v5294_v62 = vld [vmem:[#allocation5 + $0xc8] ss:$16 sps:$4 sm:$0xff]  }
 0x9b3   :  { %v1192_v63 = vpop.permute.xlu0 %1191 }
 0x9b4   :  { %v1197_v0 = vsel %vm531_vm2, %v1192_v63, 0  ;;  %v5299_v63 = vld [vmem:[#allocation5 + $0xa4] ss:$16 sps:$4 sm:$0xff]  }
 0x9b5   :  { %5030 = vmatpush3.bf16.msra.mxu0 %v1197_v0  ;;  %v5302_v0 = vld [vmem:[#allocation5 + $0xac] ss:$16 sps:$4 sm:$0xff]  }
 0x9b6   :  { %5041 = vmatprep.subr.bf16.mxu0 %v5747_v7 }
 0x9b9   :  { %v5542_v1 = vpop.eup %5541 }
 0x9ba   :  { %v1187_v2 = vmul.f32 %v5542_v1, %v5538_v10  ;;  %v5285_v10 = vld [vmem:[#allocation5 + $0xe0] ss:$16 sps:$4 sm:$0xff]  }
 0x9bb   :  { %v5297_v1 = vld [vmem:[#allocation5 + $0xa0] ss:$16 sps:$4 sm:$0xff]  }
 0x9bc   :  { %v1189_v3 = vpack.c.bf16 %v1187_v2, %v1187_v2  ;;  %v5300_v2 = vld [vmem:[#allocation5 + $0xa8] ss:$16 sps:$4 sm:$0xff]  }
 0x9bd   :  { %v5544_v6 = vpop.eup %5543 }
 0x9be   :  { %5032 = vmatmul.mubr.msk.bf16.vlgmr.msra.gmra.mxu0 %vm501_vm3, %v1189_v3  ;;  %v1188_v61 = vmul.f32 %v5544_v6, %v5540_v39  ;;  %v5293_v39 = vld [vmem:[#allocation5 + $0xc4] ss:$16 sps:$4 sm:$0xff]   ;;  %v5303_v3 = vld [vmem:[#allocation5 + $0x80] ss:$16 sps:$4 sm:$0xff]  }
 0x9bf   :  { %5057 = vmatprep.mubr.msk.bf16.mxu0 %vm5749_vm0, %v5747_v7  ;;  %5042 = vmatpush3.bf16.msra.mxu0 %v5277_v4  ;;  %v5305_v6 = vld [vmem:[#allocation5 + $0x84] ss:$16 sps:$4 sm:$0xff]  }
 0x9c0   :  { %v1190_v5 = vpack.c.bf16 %v1188_v61, %v1188_v61  ;;  %5043 = vmatprep.subr.bf16.mxu0 %v5747_v7  ;;  %v5306_v61 = vld [vmem:[#allocation5 + $0x88] ss:$16 sps:$4 sm:$0xff]   ;;  %v5311_v4 = vld [vmem:[#allocation5 + $0x64] ss:$16 sps:$4 sm:$0xff]  }
 0x9c2   :  { %5038 = vmatmul.mubr.msk.bf16.vlgmr.msra.gmra.mxu1 %vm501_vm3, %v1190_v5  ;;  %v5308_v5 = vld [vmem:[#allocation5 + $0x8c] ss:$16 sps:$4 sm:$0xff]  }
 0x9c3   :  { %1727 = vmatprep.mubr.bf16.mxu1 %v5748_v24  ;;  %5044 = vmatpush3.bf16.msra.mxu0 %v5278_v9  ;;  %v5314_v9 = vld [vmem:[#allocation5 + $0x6c] ss:$16 sps:$4 sm:$0xff]  }
 0x9c4   :  { %5045 = vmatprep.subr.bf16.mxu0 %v5747_v7  ;;  %1696 = vmatpush1.bf16.msra.mxu1 %v5285_v10  ;;  %v5336_v10 = vld [vmem:[#allocation7 + $0xb8] sm:$0xff]  }
 0x9c5   :  { %1697 = vmatprep.subr.bf16.mxu1 %v5293_v39  ;;  %v5338_v39 = vld [vmem:[#allocation7 + $0xf0] sm:$0xff]  }
 0x9c7   :  { %5046 = vmatpush3.bf16.msra.mxu0 %v5279_v12  ;;  %v5309_v12 = vld [vmem:[#allocation5 + $0x60] ss:$16 sps:$4 sm:$0xff]  }
 0x9c8   :  { %5047 = vmatprep.subr.bf16.mxu0 %v5747_v7  ;;  %1698 = vmatpush1.bf16.msra.mxu1 %v5291_v43  ;;  %v5340_v43 = vld [vmem:[#allocation7 + $0xb0] sm:$0xff]  }
 0x9c9   :  { %1699 = vmatprep.subr.bf16.mxu1 %v5299_v63  ;;  %v5342_v63 = vld [vmem:[#allocation7 + $0xe8] sm:$0xff]  }
 0x9cb   :  { %5048 = vmatpush3.bf16.msra.mxu0 %v5280_v11  ;;  %v5312_v11 = vld [vmem:[#allocation5 + $0x68] ss:$16 sps:$4 sm:$0xff]  }
 0x9cc   :  { %5049 = vmatprep.subr.bf16.mxu0 %v5747_v7  ;;  %1700 = vmatpush1.bf16.msra.mxu1 %v5297_v1  ;;  %v5344_v1 = vld [vmem:[#allocation7 + $0xa8] sm:$0xff]  }
 0x9cd   :  { %1701 = vmatprep.subr.bf16.mxu1 %v5305_v6  ;;  %v5347_v6 = vld [vmem:[#allocation7 + $0x20] sm:$0xff]  }
 0x9cf   :  { %5050 = vmatpush3.bf16.msra.mxu0 %v5281_v13  ;;  %v5317_v13 = vld [vmem:[#allocation5 + $0x44] ss:$16 sps:$4 sm:$0xff]  }
 0x9d0   :  { %5051 = vmatprep.subr.bf16.mxu0 %v5747_v7  ;;  %1702 = vmatpush1.bf16.msra.mxu1 %v5303_v3  ;;  %v5346_v3 = vld [vmem:[#allocation7 + $0xe0] sm:$0xff]  }
 0x9d1   :  { %1703 = vmatprep.subr.bf16.mxu1 %v5311_v4  ;;  %v5350_v4 = vld [vmem:[#allocation7 + $0xd8] sm:$0xff]  }
 0x9d3   :  { %5052 = vmatpush3.bf16.msra.mxu0 %v5282_v14  ;;  %v5320_v14 = vld [vmem:[#allocation5 + $0x4c] ss:$16 sps:$4 sm:$0xff]  }
 0x9d4   :  { %5053 = vmatprep.subr.bf16.mxu0 %v5747_v7  ;;  %1704 = vmatpush1.bf16.msra.mxu1 %v5309_v12  ;;  %v5352_v12 = vld [vmem:[#allocation7 + $0x98] sm:$0xff]  }
 0x9d5   :  { %1705 = vmatprep.subr.bf16.mxu1 %v5317_v13  ;;  %v5354_v13 = vld [vmem:[#allocation7 + $0xd0] sm:$0xff]  }
 0x9d7   :  { %5054 = vmatpush3.bf16.msra.mxu0 %v5283_v15  ;;  %v5315_v15 = vld [vmem:[#allocation5 + $0x40] ss:$16 sps:$4 sm:$0xff]  }
 0x9d8   :  { %5055 = vmatprep.subr.bf16.mxu0 %v5747_v7  ;;  %1706 = vmatpush1.bf16.msra.mxu1 %v5315_v15  ;;  %v5356_v15 = vld [vmem:[#allocation7 + $0x90] sm:$0xff]  }
 0x9db   :  { %5056 = vmatpush3.bf16.msra.mxu0 %v5284_v16  ;;  %v5318_v16 = vld [vmem:[#allocation5 + $0x48] ss:$16 sps:$4 sm:$0xff]  }
 0x9dc   :  { %1738 = vmatprep.subr.bf16.mxu0 %v5290_v59  ;;  %v5335_v59 = vld [vmem:[#allocation7 + $0x38] sm:$0xff]  }
 0xa7e   :  { %v1233_v17 = vpop.f32.mrf.mxu0 }
 0xa80   :  { %v5033_v18 = vpop.f32.mrf.mxu0 }
 0xa81   :  { %v5326_v18 = vld [vmem:[#allocation5 + $0x2c] ss:$16 sps:$4 sm:$0xff]  }
 0xa82   :  { %v1236_v19 = vpop.f32.mrf.mxu0  ;;  %v1281_v20 = vpop.f32.mrf.mxu1 }
 0xa83   :  { %v5225_v21 = vpack.i.bf16 %v1281_v20, %v1233_v17  ;;  %v5323_v17 = vld [vmem:[#allocation5 + $0x24] ss:$16 sps:$4 sm:$0xff]   ;;  %v5321_v19 = vld [vmem:[#allocation5 + $0x20] ss:$16 sps:$4 sm:$0xff]   ;;  %v5324_v20 = vld [vmem:[#allocation5 + $0x28] ss:$16 sps:$4 sm:$0xff]  }
 0xa84   :  { %v5034_v8 = vpop.f32.mrf.mxu0  ;;  %v5039_v22 = vpop.f32.mrf.mxu1  ;;  %1707 = vmatprep.subr.bf16.mxu1 %v5323_v17  ;;  %v5358_v17 = vld [vmem:[#allocation7 + $0xc8] sm:$0xff]  }
 0xa85   :  { %5226 = vrot.lane.b32.xlu0 %v5225_v21, %s5750_s28  ;;  %v5329_v21 = vld [vmem:[#allocation5 + $0x4] ss:$16 sps:$4 sm:$0xff]   ;;  %v5332_v8 = vld [vmem:[#allocation5 + $0xc] ss:$16 sps:$4 sm:$0xff]   ;;  %1708 = vmatpush1.bf16.msra.mxu1 %v5321_v19  ;;  %v5327_v22 = vld [vmem:[#allocation5] ss:$16 sps:$4 sm:$0xff]  }
 0xa86   :  { %v1284_v23 = vpop.f32.mrf.mxu1  ;;  %1709 = vmatprep.subr.bf16.mxu1 %v5329_v21  ;;  %v5360_v19 = vld [vmem:[#allocation7 + $0x88] sm:$0xff]   ;;  %v5362_v21 = vld [vmem:[#allocation7 + $0xc0] sm:$0xff]  }
 0xa87   :  { %v5330_v23 = vld [vmem:[#allocation5 + $0x8] ss:$16 sps:$4 sm:$0xff]  }
 0xa88   :  { %v5040_v25 = vpop.f32.mrf.mxu1 }
 0xa89   :  { %1710 = vmatpush1.bf16.msra.mxu1 %v5327_v22  ;;  %v5364_v22 = vld [vmem:[#allocation7 + $0x80] sm:$0xff]  }
 0xaf7   :  { %v5227_v32 = vpop.permute.xlu0 %5226 }
 0xaf8   :  { %v5229_v35 = vunpack.i.h.bf16 %v5227_v32  ;;  %v5228_v36 = vunpack.i.l.bf16 %v5227_v32 }
 0xafa   :  { %v1318_v40 = vsel %vm1316_vm5, %v1315_v38, %v5229_v35  ;;  %v1317_v41 = vsel %vm1316_vm5, %v1314_v37, %v5228_v36 }
 0xafb   :  { %v1319_v44 = vpack.c.bf16 %v1318_v40, %v1317_v41 }
 0xafd   :  { %5058 = vmatmul.mubr.bf16.vlgmr.msra.gmra.mxu0 %v1319_v44 }
 0xafe   :  { %1770 = vmatprep.mubr.bf16.mxu0 %v5748_v24  ;;  %1739 = vmatpush1.bf16.msra.mxu0 %v5288_v60  ;;  %v5337_v60 = vld [vmem:[#allocation7 + $0x70] sm:$0xff]  }
 0xaff   :  { %1740 = vmatprep.subr.bf16.mxu0 %v5296_v42  ;;  %v5339_v42 = vld [vmem:[#allocation7 + $0x30] sm:$0xff]  }
 0xb02   :  { %1741 = vmatpush1.bf16.msra.mxu0 %v5294_v62  ;;  %v5341_v62 = vld [vmem:[#allocation7 + $0x68] sm:$0xff]  }
 0xb03   :  { %1742 = vmatprep.subr.bf16.mxu0 %v5302_v0  ;;  %v5343_v0 = vld [vmem:[#allocation7 + $0x28] sm:$0xff]  }
 0xb06   :  { %1743 = vmatpush1.bf16.msra.mxu0 %v5300_v2  ;;  %v5345_v2 = vld [vmem:[#allocation7 + $0x60] sm:$0xff]  }
 0xb07   :  { %1744 = vmatprep.subr.bf16.mxu0 %v5308_v5  ;;  %v5349_v5 = vld [vmem:[#allocation7 + $0x58] sm:$0xff]  }
 0xb0a   :  { %1745 = vmatpush1.bf16.msra.mxu0 %v5306_v61  ;;  %v5348_v61 = vld [vmem:[#allocation7 + $0xa0] sm:$0xff]  }
 0xb0b   :  { %1746 = vmatprep.subr.bf16.mxu0 %v5314_v9  ;;  %v5351_v9 = vld [vmem:[#allocation7 + $0x18] sm:$0xff]  }
 0xb0e   :  { %1747 = vmatpush1.bf16.msra.mxu0 %v5312_v11  ;;  %v5353_v11 = vld [vmem:[#allocation7 + $0x50] sm:$0xff]  }
 0xb0f   :  { %1748 = vmatprep.subr.bf16.mxu0 %v5320_v14  ;;  %v5355_v14 = vld [vmem:[#allocation7 + $0x10] sm:$0xff]  }
 0xb12   :  { %1749 = vmatpush1.bf16.msra.mxu0 %v5318_v16  ;;  %v5357_v16 = vld [vmem:[#allocation7 + $0x48] sm:$0xff]  }
 0xb13   :  { %1750 = vmatprep.subr.bf16.mxu0 %v5326_v18  ;;  %v5359_v18 = vld [vmem:[#allocation7 + $0x8] sm:$0xff]  }
 0xb16   :  { %1751 = vmatpush1.bf16.msra.mxu0 %v5324_v20  ;;  %v5361_v20 = vld [vmem:[#allocation7 + $0x40] sm:$0xff]  }
 0xb17   :  { %1752 = vmatprep.subr.bf16.mxu0 %v5332_v8  ;;  %v5363_v8 = vld [vmem:[#allocation7] sm:$0xff]  }
 0xb1a   :  { %1753 = vmatpush1.bf16.msra.mxu0 %v5330_v23  ;;  %v1515_v23 = vlaneseq }
 0xb1b   :  { %4809 = vmatprep.subr.bf16.mxu0 %v5334_v58 }
 0xbbd   :  { %v1418_v45 = vpop.f32.mrf.mxu0 }
 0xbbe   :  { %v1425_v46 = vadd.f32 %v5625_v49, %v1418_v45  ;;  %v4511_v45 = vld [vmem:[%s6455_s6] ss:$0 sm:$0xff] }
 0xbbf   :  { %v5059_v47 = vpop.f32.mrf.mxu0 }
 0xbc0   :  { %v6106_v48 = vadd.f32 %v4510_v52, %v1425_v46 }
 0xbc1   :  { %v1421_v50 = vpop.f32.mrf.mxu0 }
 0xbc2   :  { %v1426_v53 = vadd.f32 %v5626_v51, %v1421_v50  ;;  %1438 = vadd.xlane.f32.xlu1 %v6106_v48  ;;  %v1444_v54 = vmul.f32 %v6106_v48, %v6106_v48  ;;  %v4512_v50 = vld [vmem:[%s6456_s7] ss:$0 sm:$0xff] }
 0xbc3   :  { %v5060_v55 = vpop.f32.mrf.mxu0 }
 0xbc4   :  { %1446 = vadd.xlane.f32.xlu0 %v1444_v54  ;;  %v6114_v56 = vadd.f32 %v4510_v52, %v1426_v53 }
 0xbc6   :  { %v1445_v57 = vmul.f32 %v6114_v56, %v6114_v56 }
 0xbc8   :  { %1440 = vadd.xlane.f32.xlu0 %v6114_v56 }
 0xbcc   :  { %1448 = vadd.xlane.f32.xlu0 %v1445_v57  ;;  %v5333_v57 = vld [vmem:[#allocation7 + $0x78] sm:$0xff]  }
 0xbcd   :  { %4787 = vmatprep.subr.bf16.mxu1 %v5333_v57 }
 0xc4b   :  { %v1439_v25 = vpop.xlane.xlu1 %1438 }
 0xc4c   :  { %v1442_v26 = vmul.f32 0.0078125, %v1439_v25  ;;  %v6128_v25 = vshrl.u32 %v1515_v23, 7 }
 0xc4d   :  { %v1447_v27 = vpop.xlane.xlu0 %1446 }
 0xc4e   :  { %v1452_v28 = vmul.f32 %v1442_v26, %v1442_v26  ;;  %v1450_v29 = vmul.f32 0.0078125, %v1447_v27  ;;  %v1456_v41 = vsub.f32 %v6106_v48, %v1442_v26  ;;  %v6131_v26 = vsub.s32 0, %v6128_v25 }
 0xc4f   :  { %v1525_v27 = vsub.s32 2, %v6128_v25 }
 0xc50   :  { %v1454_v30 = vsub.f32 %v1450_v29, %v1452_v28  ;;  %v1513_v28 = vld [vmem:[%s6458_s9] sm:$0xf]  ;;  %v6138_v29 = vsub.s32 1, %v6128_v25 }
 0xc51   :  { %v1441_v31 = vpop.xlane.xlu0 %1440 }
 0xc52   :  { %v1458_v32 = vadd.f32 1e-05, %v1454_v30  ;;  %v1443_v33 = vmul.f32 0.0078125, %v1441_v31  ;;  %v1529_v30 = vsub.s32 3, %v6128_v25  ;;  %v1518_v31 = vrot.slane %v1513_v28, %v6131_v26 }
 0xc54   :  { %5545 = vrsqrt.f32 %v1458_v32  ;;  %v1453_v35 = vmul.f32 %v1443_v33, %v1443_v33  ;;  %v1457_v52 = vsub.f32 %v6114_v56, %v1443_v33  ;;  %v1526_v32 = vrot.slane %v1513_v28, %v1525_v27 }
 0xc55   :  { %v1449_v34 = vpop.xlane.xlu0 %1448 }
 0xc56   :  { %v1451_v36 = vmul.f32 0.0078125, %v1449_v34 }
 0xc58   :  { %v1455_v37 = vsub.f32 %v1451_v36, %v1453_v35  ;;  %v1522_v35 = vrot.slane %v1513_v28, %v6138_v29  ;;  %v1530_v36 = vrot.slane %v1513_v28, %v1529_v30 }
 0xc5a   :  { %v1459_v38 = vadd.f32 1e-05, %v1455_v37 }
 0xc5c   :  { %5547 = vrsqrt.f32 %v1459_v38 }
 0xc61   :  { %v5546_v40 = vpop.eup %5545 }
 0xc62   :  { %v1462_v44 = vmul.f32 %v5546_v40, %v1456_v41 }
 0xc64   :  { %v1470_v47 = vmul.f32 %v4511_v45, %v1462_v44 }
 0xc66   :  { %v1478_v53 = vadd.f32 %v4512_v50, %v1470_v47 }
 0xc69   :  { %v5548_v49 = vpop.eup %5547 }
 0xc6a   :  { %v1463_v46 = vmul.f32 %v5548_v49, %v1457_v52 }
 0xc6c   :  { %v1471_v51 = vmul.f32 %v4511_v45, %v1463_v46 }
 0xc6e   :  { %v1479_v54 = vadd.f32 %v4512_v50, %v1471_v51 }
 0xc70   :  { %v1480_v55 = vpack.c.bf16 %v1479_v54, %v1478_v53 }
 0xc72   :  { %1728 = vmatmul.mubr.bf16.vlgmr.msra.gmra.mxu1 %v1480_v55  ;;  %1771 = vmatmul.mubr.bf16.vlgmr.msra.gmra.mxu0 %v1480_v55 }
 0xc73   :  { %4788 = vmatpush3.bf16.msra.mxu1 %v5335_v59  ;;  %4810 = vmatpush3.bf16.msra.mxu0 %v5336_v10 }
 0xc74   :  { %4789 = vmatprep.subr.bf16.mxu1 %v5337_v60  ;;  %4811 = vmatprep.subr.bf16.mxu0 %v5338_v39 }
 0xc77   :  { %4790 = vmatpush3.bf16.msra.mxu1 %v5339_v42  ;;  %4812 = vmatpush3.bf16.msra.mxu0 %v5340_v43 }
 0xc78   :  { %4791 = vmatprep.subr.bf16.mxu1 %v5341_v62  ;;  %4813 = vmatprep.subr.bf16.mxu0 %v5342_v63 }
 0xc7b   :  { %4792 = vmatpush3.bf16.msra.mxu1 %v5343_v0  ;;  %4814 = vmatpush3.bf16.msra.mxu0 %v5344_v1 }
 0xc7c   :  { %4793 = vmatprep.subr.bf16.mxu1 %v5345_v2  ;;  %4815 = vmatprep.subr.bf16.mxu0 %v5346_v3 }
 0xc7f   :  { %4794 = vmatpush3.bf16.msra.mxu1 %v5347_v6  ;;  %4816 = vmatpush3.bf16.msra.mxu0 %v5348_v61 }
 0xc80   :  { %4795 = vmatprep.subr.bf16.mxu1 %v5349_v5  ;;  %4817 = vmatprep.subr.bf16.mxu0 %v5350_v4 }
 0xc83   :  { %4796 = vmatpush3.bf16.msra.mxu1 %v5351_v9  ;;  %4818 = vmatpush3.bf16.msra.mxu0 %v5352_v12 }
 0xc84   :  { %4797 = vmatprep.subr.bf16.mxu1 %v5353_v11  ;;  %4819 = vmatprep.subr.bf16.mxu0 %v5354_v13 }
 0xc87   :  { %4798 = vmatpush3.bf16.msra.mxu1 %v5355_v14  ;;  %4820 = vmatpush3.bf16.msra.mxu0 %v5356_v15 }
 0xc88   :  { %4799 = vmatprep.subr.bf16.mxu1 %v5357_v16  ;;  %4821 = vmatprep.subr.bf16.mxu0 %v5358_v17 }
 0xc8b   :  { %4800 = vmatpush3.bf16.msra.mxu1 %v5359_v18  ;;  %4822 = vmatpush3.bf16.msra.mxu0 %v5360_v19 }
 0xc8c   :  { %4801 = vmatprep.subr.bf16.mxu1 %v5361_v20  ;;  %4823 = vmatprep.subr.bf16.mxu0 %v5362_v21 }
 0xc8f   :  { %4802 = vmatpush3.bf16.msra.mxu1 %v5363_v8  ;;  %4824 = vmatpush3.bf16.msra.mxu0 %v5364_v22 }
 0xc90   :  { %5061 = vmatprep.subr.bf16.mxu0 %v5747_v7 }
 0xd32   :  { %v1729_v33 = vpop.f32.mrf.mxu1  ;;  %v1772_v34 = vpop.f32.mrf.mxu0 }
 0xd33   :  { %v1730_v37 = vadd.f32 %v1729_v33, %v1518_v31  ;;  %v1773_v38 = vadd.f32 %v1772_v34, %v1526_v32 }
 0xd34   :  { %v1731_v40 = vpop.f32.mrf.mxu1  ;;  %v1774_v41 = vpop.f32.mrf.mxu0 }
 0xd35   :  { %v1789_v44 = vmul.f32 0.70710677, %v1730_v37  ;;  %v1791_v45 = vmul.f32 0.70710677, %v1773_v38  ;;  %v1732_v52 = vadd.f32 %v1731_v40, %v1522_v35  ;;  %v1775_v49 = vadd.f32 %v1774_v41, %v1530_v36 }
 0xd36   :  { %v1733_v46 = vpop.f32.mrf.mxu1  ;;  %v1776_v47 = vpop.f32.mrf.mxu0  ;;  %v1781_v3 = vmul.f32 0.5, %v1730_v37  ;;  %v1783_v22 = vmul.f32 0.5, %v1773_v38 }
 0xd37   :  { %v1734_v50 = vadd.f32 %v1733_v46, %v1518_v31  ;;  %v1777_v51 = vadd.f32 %v1776_v47, %v1526_v32  ;;  %5549 = verf.f32 %v1789_v44  ;;  %v1790_v53 = vmul.f32 0.70710677, %v1732_v52 }
 0xd38   :  { %v1735_v54 = vpop.f32.mrf.mxu1  ;;  %v1778_v55 = vpop.f32.mrf.mxu0  ;;  %5551 = verf.f32 %v1791_v45  ;;  %v1792_v57 = vmul.f32 0.70710677, %v1775_v49  ;;  %v1782_v6 = vmul.f32 0.5, %v1732_v52  ;;  %v1784_v19 = vmul.f32 0.5, %v1775_v49 }
 0xd39   :  { %v1793_v58 = vmul.f32 0.70710677, %v1734_v50  ;;  %5553 = verf.f32 %v1790_v53  ;;  %v1795_v59 = vmul.f32 0.70710677, %v1777_v51  ;;  %v1736_v10 = vadd.f32 %v1735_v54, %v1522_v35  ;;  %v4577_v54 = vld [vmem:[%s6460_s11] ss:$0 sm:$0xff] }
 0xd3a   :  { %v1779_v60 = vadd.f32 %v1778_v55, %v1530_v36  ;;  %5555 = verf.f32 %v1792_v57  ;;  %v1785_v11 = vmul.f32 0.5, %v1734_v50  ;;  %v1787_v16 = vmul.f32 0.5, %v1777_v51 }
 0xd3b   :  { %5557 = verf.f32 %v1793_v58  ;;  %v1794_v39 = vmul.f32 0.70710677, %v1736_v10  ;;  %v1786_v17 = vmul.f32 0.5, %v1736_v10 }
 0xd3c   :  { %5559 = verf.f32 %v1795_v59  ;;  %v1796_v42 = vmul.f32 0.70710677, %v1779_v60  ;;  %v1788_v21 = vmul.f32 0.5, %v1779_v60 }
 0xd3d   :  { %5561 = verf.f32 %v1794_v39 }
 0xd3e   :  { %5563 = verf.f32 %v1796_v42 }
 0xd44   :  { %v5550_v43 = vpop.eup %5549 }
 0xd45   :  { %v5552_v62 = vpop.eup %5551  ;;  %v1805_v9 = vadd.f32 1.0, %v5550_v43 }
 0xd46   :  { %v5554_v63 = vpop.eup %5553  ;;  %v1807_v15 = vadd.f32 1.0, %v5552_v62 }
 0xd47   :  { %v5556_v0 = vpop.eup %5555  ;;  %v1806_v61 = vadd.f32 1.0, %v5554_v63  ;;  %v1813_v32 = vmul.f32 %v1805_v9, %v1781_v3  ;;  %v5365_v63 = vld [vmem:[#allocation2 + $0x168] ss:$12 sps:$4 sm:$0xff]  }
 0xd48   :  { %v5558_v1 = vpop.eup %5557  ;;  %v1808_v12 = vadd.f32 1.0, %v5556_v0  ;;  %v1815_v35 = vmul.f32 %v1807_v15, %v1783_v22  ;;  %v5368_v0 = vld [vmem:[#allocation2 + $0x170] ss:$12 sps:$4 sm:$0xff]   ;;  %v5380_v9 = vld [vmem:[#allocation2 + $0x128] ss:$12 sps:$4 sm:$0xff]  }
 0xd49   :  { %v5560_v2 = vpop.eup %5559  ;;  %v1809_v5 = vadd.f32 1.0, %v5558_v1  ;;  %v1814_v23 = vmul.f32 %v1806_v61, %v1782_v6  ;;  %v5369_v1 = vld [vmem:[#allocation2 + $0x150] ss:$12 sps:$4 sm:$0xff]   ;;  %v5373_v6 = vld [vmem:[#allocation2 + $0x138] ss:$12 sps:$4 sm:$0xff]  }
 0xd4a   :  { %v5562_v4 = vpop.eup %5561  ;;  %v1811_v13 = vadd.f32 1.0, %v5560_v2  ;;  %v1816_v33 = vmul.f32 %v1808_v12, %v1784_v19  ;;  %v5372_v2 = vld [vmem:[#allocation2 + $0x158] ss:$12 sps:$4 sm:$0xff]   ;;  %v5375_v3 = vld [vmem:[#allocation2 + $0x13c] ss:$12 sps:$4 sm:$0xff]  }
 0xd4b   :  { %v5564_v14 = vpop.eup %5563  ;;  %v1810_v18 = vadd.f32 1.0, %v5562_v4  ;;  %v1817_v20 = vmul.f32 %v1809_v5, %v1785_v11  ;;  %v5376_v61 = vld [vmem:[#allocation2 + $0x140] ss:$12 sps:$4 sm:$0xff]   ;;  %v5379_v4 = vld [vmem:[#allocation2 + $0x124] ss:$12 sps:$4 sm:$0xff]  }
 0xd4c   :  { %v1812_v8 = vadd.f32 1.0, %v5564_v14  ;;  %v1819_v28 = vmul.f32 %v1811_v13, %v1787_v16  ;;  %v5377_v5 = vld [vmem:[#allocation2 + $0x120] ss:$12 sps:$4 sm:$0xff]   ;;  %v5381_v11 = vld [vmem:[#allocation2 + $0x108] ss:$12 sps:$4 sm:$0xff]  }
 0xd4d   :  { %v1818_v31 = vmul.f32 %v1810_v18, %v1786_v17  ;;  %v1821_v37 = vpack.c.bf16 %v1817_v20, %v1813_v32  ;;  %v5383_v12 = vld [vmem:[#allocation2 + $0x10c] ss:$12 sps:$4 sm:$0xff]   ;;  %v5384_v13 = vld [vmem:[#allocation2 + $0x110] ss:$12 sps:$4 sm:$0xff]   ;;  %v5387_v14 = vld [vmem:[#allocation2 + $0xf4] ss:$12 sps:$4 sm:$0xff]  }
 0xd4e   :  { %v1820_v34 = vmul.f32 %v1812_v8, %v1788_v21  ;;  %v1823_v41 = vpack.c.bf16 %v1819_v28, %v1815_v35  ;;  %v5385_v15 = vld [vmem:[#allocation2 + $0xf0] ss:$12 sps:$4 sm:$0xff]   ;;  %v5388_v16 = vld [vmem:[#allocation2 + $0xf8] ss:$12 sps:$4 sm:$0xff]   ;;  %v5392_v19 = vld [vmem:[#allocation2 + $0xe0] ss:$12 sps:$4 sm:$0xff]  }
 0xd4f   :  { %v1822_v36 = vpack.c.bf16 %v1818_v31, %v1814_v23  ;;  %v5391_v17 = vld [vmem:[#allocation2 + $0xdc] ss:$12 sps:$4 sm:$0xff]   ;;  %v5389_v18 = vld [vmem:[#allocation2 + $0xd8] ss:$12 sps:$4 sm:$0xff]   ;;  %v5393_v21 = vld [vmem:[#allocation2 + $0xc0] ss:$12 sps:$4 sm:$0xff]  }
 0xd50   :  { %v1824_v40 = vpack.c.bf16 %v1820_v34, %v1816_v33  ;;  %v5395_v20 = vld [vmem:[#allocation2 + $0xc4] ss:$12 sps:$4 sm:$0xff]   ;;  %v5396_v8 = vld [vmem:[#allocation2 + $0xc8] ss:$12 sps:$4 sm:$0xff]  }
 0xd51   :  { %2113 = vmatprep.mubr.bf16.mxu1 %v1822_v36 }
 0xd52   :  { %2154 = vmatprep.mubr.bf16.mxu0 %v1824_v40  ;;  %2114 = vmatmul.mubr.bf16.vlgmr.msra.gmra.mxu1 %v1821_v37 }
 0xd53   :  { %2155 = vmatmul.mubr.bf16.vlgmr.msra.gmra.mxu0 %v1823_v41  ;;  %2414 = vmatprep.mubr.bf16.mxu1 %v5748_v24 }
 0xd54   :  { %5077 = vmatprep.mubr.msk.bf16.mxu0 %vm5749_vm0, %v5747_v7  ;;  %5062 = vmatpush3.bf16.msra.mxu0 %v5368_v0 }
 0xd55   :  { %5063 = vmatprep.subr.bf16.mxu0 %v5747_v7 }
 0xd58   :  { %5064 = vmatpush3.bf16.msra.mxu0 %v5372_v2 }
 0xd59   :  { %5065 = vmatprep.subr.bf16.mxu0 %v5747_v7 }
 0xd5c   :  { %5066 = vmatpush3.bf16.msra.mxu0 %v5376_v61 }
 0xd5d   :  { %5067 = vmatprep.subr.bf16.mxu0 %v5747_v7 }
 0xd60   :  { %5068 = vmatpush3.bf16.msra.mxu0 %v5380_v9 }
 0xd61   :  { %5069 = vmatprep.subr.bf16.mxu0 %v5747_v7 }
 0xd64   :  { %5070 = vmatpush3.bf16.msra.mxu0 %v5384_v13 }
 0xd65   :  { %5071 = vmatprep.subr.bf16.mxu0 %v5747_v7 }
 0xd68   :  { %5072 = vmatpush3.bf16.msra.mxu0 %v5388_v16 }
 0xd69   :  { %5073 = vmatprep.subr.bf16.mxu0 %v5747_v7 }
 0xd6c   :  { %5074 = vmatpush3.bf16.msra.mxu0 %v5392_v19 }
 0xd6d   :  { %5075 = vmatprep.subr.bf16.mxu0 %v5747_v7 }
 0xd70   :  { %5076 = vmatpush3.bf16.msra.mxu0 %v5396_v8 }
 0xd71   :  { %5105 = vmatprep.subr.bf16.mxu0 %v5747_v7 }
 0xe12   :  { %v4803_v38 = vpop.f32.mrf.mxu1 }
 0xe13   :  { %v4825_v44 = vpop.f32.mrf.mxu0 }
 0xe14   :  { %v4804_v45 = vpop.f32.mrf.mxu1 }
 0xe15   :  { %v4805_v52 = vadd.f32 %v4804_v45, %v4803_v38  ;;  %v4826_v49 = vpop.f32.mrf.mxu0 }
 0xe16   :  { %v4827_v46 = vadd.f32 %v4826_v49, %v4825_v44  ;;  %v4806_v47 = vpop.f32.mrf.mxu1 }
 0xe17   :  { %v4828_v50 = vpop.f32.mrf.mxu0 }
 0xe18   :  { %v2157_v51 = vadd.f32 %v4827_v46, %v4805_v52  ;;  %v4807_v53 = vpop.f32.mrf.mxu1  ;;  %v4580_v46 = vld [vmem:[%s6450_s1 + $0x1] ss:$0 sm:$0xff] }
 0xe19   :  { %v4808_v55 = vadd.f32 %v4807_v53, %v4806_v47  ;;  %v4829_v57 = vpop.f32.mrf.mxu0 }
 0xe1a   :  { %v2163_v58 = vadd.f32 %v2157_v51, %v6106_v48  ;;  %v4830_v59 = vadd.f32 %v4829_v57, %v4828_v50  ;;  %v5367_v48 = vld [vmem:[#allocation2 + $0x16c] ss:$12 sps:$4 sm:$0xff]  }
 0xe1b   :  { %2382 = vmatprep.subr.bf16.mxu1 %v5367_v48 }
 0xe1c   :  { %v6154_v10 = vadd.f32 %v4577_v54, %v2163_v58  ;;  %v2160_v60 = vadd.f32 %v4830_v59, %v4808_v55  ;;  %2383 = vmatpush1.bf16.msra.mxu1 %v5365_v63 }
 0xe1e   :  { %v2164_v39 = vadd.f32 %v2160_v60, %v6114_v56  ;;  %2178 = vadd.xlane.f32.xlu1 %v6154_v10  ;;  %v2184_v43 = vmul.f32 %v6154_v10, %v6154_v10  ;;  %v5371_v56 = vld [vmem:[#allocation2 + $0x154] ss:$12 sps:$4 sm:$0xff]  }
 0xe1f   :  { %2384 = vmatprep.subr.bf16.mxu1 %v5371_v56 }
 0xe20   :  { %v6158_v42 = vadd.f32 %v4577_v54, %v2164_v39  ;;  %2385 = vmatpush1.bf16.msra.mxu1 %v5369_v1  ;;  %v4581_v54 = vld [vmem:[%s6451_s2 + $0x1] ss:$0 sm:$0xff] }
 0xe21   :  { %2386 = vmatprep.subr.bf16.mxu1 %v5375_v3 }
 0xe22   :  { %2180 = vadd.xlane.f32.xlu0 %v6158_v42  ;;  %2186 = vadd.xlane.f32.xlu1 %v2184_v43  ;;  %v2185_v62 = vmul.f32 %v6158_v42, %v6158_v42 }
 0xe24   :  { %2387 = vmatpush1.bf16.msra.mxu1 %v5373_v6 }
 0xe25   :  { %2388 = vmatprep.subr.bf16.mxu1 %v5379_v4 }
 0xe26   :  { %2188 = vadd.xlane.f32.xlu0 %v2185_v62 }
 0xe28   :  { %2389 = vmatpush1.bf16.msra.mxu1 %v5377_v5 }
 0xe29   :  { %2390 = vmatprep.subr.bf16.mxu1 %v5383_v12 }
 0xe2c   :  { %2391 = vmatpush1.bf16.msra.mxu1 %v5381_v11 }
 0xe2d   :  { %2392 = vmatprep.subr.bf16.mxu1 %v5387_v14 }
 0xe30   :  { %2393 = vmatpush1.bf16.msra.mxu1 %v5385_v15 }
 0xe31   :  { %2394 = vmatprep.subr.bf16.mxu1 %v5391_v17 }
 0xe34   :  { %2395 = vmatpush1.bf16.msra.mxu1 %v5389_v18 }
 0xe35   :  { %2396 = vmatprep.subr.bf16.mxu1 %v5395_v20 }
 0xe38   :  { %2397 = vmatpush1.bf16.msra.mxu1 %v5393_v21 }
 0xe39   :  { %5081 = vmatprep.subr.bf16.mxu1 %v5747_v7 }
 0xea7   :  { %v2179_v22 = vpop.xlane.xlu1 %2178 }
 0xea8   :  { %v2182_v23 = vmul.f32 0.0078125, %v2179_v22 }
 0xeaa   :  { %v2192_v32 = vmul.f32 %v2182_v23, %v2182_v23  ;;  %v2196_v45 = vsub.f32 %v6154_v10, %v2182_v23 }
 0xeab   :  { %v2181_v28 = vpop.xlane.xlu0 %2180  ;;  %v2187_v31 = vpop.xlane.xlu1 %2186 }
 0xeac   :  { %v2183_v33 = vmul.f32 0.0078125, %v2181_v28  ;;  %v2190_v34 = vmul.f32 0.0078125, %v2187_v31 }
 0xeae   :  { %v2194_v35 = vsub.f32 %v2190_v34, %v2192_v32  ;;  %v2193_v37 = vmul.f32 %v2183_v33, %v2183_v33  ;;  %v2197_v47 = vsub.f32 %v6158_v42, %v2183_v33 }
 0xeaf   :  { %v2189_v36 = vpop.xlane.xlu0 %2188 }
 0xeb0   :  { %v2198_v40 = vadd.f32 1e-05, %v2194_v35  ;;  %v2191_v41 = vmul.f32 0.0078125, %v2189_v36 }
 0xeb2   :  { %5565 = vrsqrt.f32 %v2198_v40  ;;  %v2195_v38 = vsub.f32 %v2191_v41, %v2193_v37 }
 0xeb4   :  { %v2199_v44 = vadd.f32 1e-05, %v2195_v38 }
 0xeb6   :  { %5567 = vrsqrt.f32 %v2199_v44 }
 0xebf   :  { %v5566_v52 = vpop.eup %5565 }
 0xec0   :  { %v2202_v49 = vmul.f32 %v5566_v52, %v2196_v45 }
 0xec2   :  { %v2210_v53 = vmul.f32 %v4580_v46, %v2202_v49 }
 0xec3   :  { %v5568_v50 = vpop.eup %5567 }
 0xec4   :  { %v2203_v51 = vmul.f32 %v5568_v50, %v2197_v47  ;;  %v2218_v57 = vadd.f32 %v4581_v54, %v2210_v53 }
 0xec6   :  { %v2211_v55 = vmul.f32 %v4580_v46, %v2203_v51 }
 0xec8   :  { %v2219_v58 = vadd.f32 %v4581_v54, %v2211_v55 }
 0xeca   :  { %v2220_v59 = vpack.c.bf16 %v2219_v58, %v2218_v57 }
 0xecc   :  { %2415 = vmatmul.mubr.bf16.vlgmr.msra.gmra.mxu1 %v2220_v59  ;;  %5078 = vmatmul.mubr.bf16.vlgmr.msra.gmra.mxu0 %v2220_v59 }
 0xecd   :  { %5083 = vmatprep.mubr.msk.bf16.mxu1 %vm5749_vm0, %v5747_v7  ;;  %5107 = vmatprep.mubr.msk.bf16.mxu0 %vm5749_vm0, %v5747_v7 }
 0xf8c   :  { %v2416_v60 = vpop.f32.mrf.mxu1  ;;  %v2459_v39 = vpop.f32.mrf.mxu0 }
 0xf8d   :  { %v2466_v3 = vmul.f32 0.088388346, %v2416_v60  ;;  %v6204_v9 = vpack.c.bf16 %v2459_v39, %v2459_v39 }
 0xf8e   :  { %v2418_v43 = vpop.f32.mrf.mxu1  ;;  %v5079_v62 = vpop.f32.mrf.mxu0 }
 0xf8f   :  { %v6186_v48 = vpack.c.bf16 %v2418_v43, %v2418_v43  ;;  %v6195_v61 = vpack.c.bf16 %v2466_v3, %v2466_v3  ;;  %v2594_v11 = vsel %vm531_vm2, %v6204_v9, 0 }
 0xf90   :  { %v2420_v63 = vpop.f32.mrf.mxu1  ;;  %v6188_v0 = vpop.f32.mrf.mxu0 }
 0xf91   :  { %v2476_v56 = vsel %vm408_vm1, %v6186_v48, 0  ;;  %v2467_v4 = vmul.f32 0.088388346, %v2420_v63  ;;  %v6234_v49 = vpack.c.bf16 %v6188_v0, %v6188_v0 }
 0xf92   :  { %v2422_v1 = vpop.f32.mrf.mxu1  ;;  %v5080_v2 = vpop.f32.mrf.mxu0  ;;  %5082 = vmatpush3.bf16.xpose.msra.mxu1 %v2476_v56 }
 0xf93   :  { %5087 = vmatprep.subr.bf16.mxu1 %v5747_v7  ;;  %v6193_v6 = vpack.c.bf16 %v2422_v1, %v2422_v1  ;;  %v6206_v12 = vpack.c.bf16 %v2467_v4, %v2467_v4  ;;  %v2640_v50 = vsel %vm531_vm2, %v6234_v49, 0 }
 0xf95   :  { %v2522_v5 = vsel %vm408_vm1, %v6193_v6, 0 }
 0xf99   :  { %5084 = vmatmul.mubr.msk.bf16.vlgmr.msra.gmra.mxu1 %vm408_vm1, %v6195_v61 }
 0xf9a   :  { %5088 = vmatpush3.bf16.xpose.msra.mxu1 %v2522_v5  ;;  %5089 = vmatprep.mubr.msk.bf16.mxu1 %vm5749_vm0, %v5747_v7 }
 0xf9b   :  { %5093 = vmatprep.subr.bf16.mxu1 %v5747_v7 }
 0xfa1   :  { %5090 = vmatmul.mubr.msk.bf16.vlgmr.msra.gmra.mxu1 %vm408_vm1, %v6206_v12 }
 0xfa2   :  { %5094 = vmatpush3.bf16.msra.mxu1 %v2594_v11  ;;  %5095 = vmatprep.mubr.msk.bf16.mxu1 %vm5749_vm0, %v5747_v7 }
 0xfa3   :  { %5099 = vmatprep.subr.bf16.mxu1 %v5747_v7 }
0x1059   :  { %v2512_v13 = vpop.f32.mrf.mxu1 }
0x105a   :  { %v2564_v14 = vsel %vm501_vm3, %v2512_v13, -inf }
0x105b   :  { %2565 = vmax.xlane.f32.xlu1 %v2564_v14  ;;  %v5085_v15 = vpop.f32.mrf.mxu1 }
0x105d   :  { %v2515_v16 = vpop.f32.mrf.mxu1 }
0x105f   :  { %v5086_v17 = vpop.f32.mrf.mxu1 }
0x1061   :  { %v2558_v18 = vpop.f32.mrf.mxu1 }
0x1062   :  { %v2567_v19 = vsel %vm501_vm3, %v2558_v18, -inf }
0x1063   :  { %2568 = vmax.xlane.f32.xlu0 %v2567_v19  ;;  %v5091_v20 = vpop.f32.mrf.mxu1 }
0x1065   :  { %v2561_v21 = vpop.f32.mrf.mxu1 }
0x1067   :  { %v5092_v8 = vpop.f32.mrf.mxu1 }
0x10e4   :  { %v2566_v22 = vpop.xlane.xlu1 %2565 }
0x10e5   :  { %v2570_v23 = vsub.f32 %v2512_v13, %v2566_v22 }
0x10e7   :  { %v2572_v28 = vmul.f32 1.442695, %v2570_v23 }
0x10e9   :  { %5569 = vpow2.f32 %v2572_v28 }
0x10ec   :  { %v2569_v31 = vpop.xlane.xlu0 %2568 }
0x10ed   :  { %v2571_v32 = vsub.f32 %v2558_v18, %v2569_v31 }
0x10ef   :  { %v2574_v33 = vmul.f32 1.442695, %v2571_v32 }
0x10f1   :  { %5571 = vpow2.f32 %v2574_v33 }
0x10f6   :  { %v5570_v34 = vpop.eup %5569 }
0x10f7   :  { %v2576_v35 = vsel %vm501_vm3, %v5570_v34, 0.0 }
0x10f8   :  { %2577 = vadd.xlane.f32.xlu1 %v2576_v35 }
0x10fe   :  { %v5572_v36 = vpop.eup %5571 }
0x10ff   :  { %v2579_v37 = vsel %vm501_vm3, %v5572_v36, 0.0 }
0x1100   :  { %2580 = vadd.xlane.f32.xlu0 %v2579_v37 }
0x1109   :  { %2686 = vrot.lane.b32.xlu1 %v6186_v48, %s5750_s28 }
0x110d   :  { %2683 = vrot.lane.b32.xlu1 %v6195_v61, %s5750_s28 }
0x1111   :  { %2735 = vrot.lane.b32.xlu1 %v6206_v12, %s5750_s28 }
0x1116   :  { %2738 = vrot.lane.b32.xlu0 %v6193_v6, %s5750_s28 }
0x1181   :  { %v2578_v40 = vpop.xlane.xlu1 %2577 }
0x1182   :  { %5573 = vrcp.f32 %v2578_v40 }
0x1185   :  { %v2687_v41 = vpop.permute.xlu1 %2686 }
0x1186   :  { %v2692_v38 = vsel %vm408_vm1, %v2687_v41, 0 }
0x1187   :  { %5106 = vmatpush3.bf16.xpose.msra.mxu0 %v2692_v38 }
0x1188   :  { %5117 = vmatprep.subr.bf16.mxu0 %v5747_v7 }
0x1189   :  { %v2581_v44 = vpop.xlane.xlu0 %2580  ;;  %v2684_v45 = vpop.permute.xlu1 %2683 }
0x118a   :  { %5575 = vrcp.f32 %v2581_v44 }
0x118d   :  { %v2739_v54 = vpop.permute.xlu0 %2738  ;;  %v2736_v58 = vpop.permute.xlu1 %2735 }
0x118e   :  { %5108 = vmatmul.mubr.msk.bf16.vlgmr.msra.gmra.mxu0 %vm408_vm1, %v2684_v45  ;;  %v2744_v57 = vsel %vm408_vm1, %v2739_v54, 0 }
0x118f   :  { %v5574_v52 = vpop.eup %5573  ;;  %5119 = vmatprep.mubr.msk.bf16.mxu0 %vm5749_vm0, %v5747_v7 }
0x1190   :  { %v2584_v46 = vmul.f32 %v5574_v52, %v5570_v34 }
0x1192   :  { %v2586_v47 = vpack.c.bf16 %v2584_v46, %v2584_v46 }
0x1194   :  { %5096 = vmatmul.mubr.msk.bf16.vlgmr.msra.gmra.mxu1 %vm501_vm3, %v2586_v47 }
0x1195   :  { %5100 = vmatpush3.bf16.msra.mxu1 %v2640_v50  ;;  %5101 = vmatprep.mubr.msk.bf16.mxu1 %vm5749_vm0, %v5747_v7 }
0x1196   :  { %5111 = vmatprep.subr.bf16.mxu1 %v5747_v7 }
0x1197   :  { %v5576_v51 = vpop.eup %5575 }
0x1198   :  { %v2585_v53 = vmul.f32 %v5576_v51, %v5572_v36 }
0x119a   :  { %v2587_v55 = vpack.c.bf16 %v2585_v53, %v2585_v53 }
0x119c   :  { %5102 = vmatmul.mubr.msk.bf16.vlgmr.msra.gmra.mxu1 %vm501_vm3, %v2587_v55 }
0x119d   :  { %5112 = vmatpush3.bf16.xpose.msra.mxu1 %v2744_v57  ;;  %5113 = vmatprep.mubr.msk.bf16.mxu1 %vm5749_vm0, %v5747_v7 }
0x119e   :  { %5123 = vmatprep.subr.bf16.mxu1 %v5747_v7 }
0x11a4   :  { %5114 = vmatmul.mubr.msk.bf16.vlgmr.msra.gmra.mxu1 %vm408_vm1, %v2736_v58 }
0x11a5   :  { %5125 = vmatprep.mubr.msk.bf16.mxu1 %vm5749_vm0, %v5747_v7 }
0x124e   :  { %v2728_v59 = vpop.f32.mrf.mxu0 }
0x124f   :  { %v2786_v60 = vsel %vm501_vm3, %v2728_v59, -inf }
0x1250   :  { %2787 = vmax.xlane.f32.xlu1 %v2786_v60  ;;  %v5109_v39 = vpop.f32.mrf.mxu0 }
0x1252   :  { %v2731_v43 = vpop.f32.mrf.mxu0 }
0x1254   :  { %v6251_v62 = vpop.f32.mrf.mxu1  ;;  %v5110_v63 = vpop.f32.mrf.mxu0 }
0x1256   :  { %v5097_v0 = vpop.f32.mrf.mxu1 }
0x1258   :  { %v2633_v56 = vpop.f32.mrf.mxu1 }
0x125a   :  { %v5098_v1 = vpop.f32.mrf.mxu1 }
0x125c   :  { %v6253_v2 = vpop.f32.mrf.mxu1 }
0x125e   :  { %v5103_v3 = vpop.f32.mrf.mxu1 }
0x1260   :  { %v2679_v5 = vpop.f32.mrf.mxu1 }
0x1261   :  { %2811 = vrot.lane.b32.xlu1 %v6204_v9, %s5750_s28 }
0x1262   :  { %v5104_v4 = vpop.f32.mrf.mxu1 }
0x1264   :  { %v2780_v11 = vpop.f32.mrf.mxu1 }
0x1265   :  { %2910 = vrot.lane.b32.xlu1 %v6186_v48, %s5742_s22  ;;  %v2789_v13 = vsel %vm501_vm3, %v2780_v11, -inf }
0x1266   :  { %2790 = vmax.xlane.f32.xlu0 %v2789_v13  ;;  %v5115_v14 = vpop.f32.mrf.mxu1 }
0x1268   :  { %v2783_v15 = vpop.f32.mrf.mxu1 }
0x1269   :  { %2960 = vrot.lane.b32.xlu1 %v6193_v6, %s5742_s22 }
0x126a   :  { %v5116_v16 = vpop.f32.mrf.mxu1 }
0x126d   :  { %2908 = vrot.lane.b32.xlu1 %v6195_v61, %s5742_s22 }
0x12d9   :  { %v2788_v17 = vpop.xlane.xlu1 %2787 }
0x12da   :  { %v2792_v18 = vsub.f32 %v2728_v59, %v2788_v17 }
0x12dc   :  { %v2794_v19 = vmul.f32 1.442695, %v2792_v18 }
0x12dd   :  { %v2812_v20 = vpop.permute.xlu1 %2811 }
0x12de   :  { %5577 = vpow2.f32 %v2794_v19  ;;  %v2817_v21 = vsel %vm531_vm2, %v2812_v20, 0 }
0x12df   :  { %5118 = vmatpush3.bf16.msra.mxu0 %v2817_v21 }
0x12e0   :  { %5129 = vmatprep.subr.bf16.mxu0 %v5747_v7 }
0x12e1   :  { %v2911_v36 = vpop.permute.xlu1 %2910 }
0x12e2   :  { %v2916_v41 = vsel %vm408_vm1, %v2911_v36, 0 }
0x12e5   :  { %v2961_v38 = vpop.permute.xlu1 %2960 }
0x12e6   :  { %v2966_v53 = vsel %vm408_vm1, %v2961_v38, 0 }
0x12e9   :  { %v2909_v45 = vpop.permute.xlu1 %2908 }
0x12eb   :  { %v5578_v8 = vpop.eup %5577 }
0x12ec   :  { %v2798_v22 = vsel %vm501_vm3, %v5578_v8, 0.0 }
0x12ed   :  { %2799 = vadd.xlane.f32.xlu0 %v2798_v22 }
0x12ef   :  { %v2791_v23 = vpop.xlane.xlu0 %2790 }
0x12f0   :  { %v2793_v28 = vsub.f32 %v2780_v11, %v2791_v23 }
0x12f2   :  { %v2796_v31 = vmul.f32 1.442695, %v2793_v28 }
0x12f4   :  { %5579 = vpow2.f32 %v2796_v31 }
0x1301   :  { %v5580_v32 = vpop.eup %5579 }
0x1302   :  { %v2801_v33 = vsel %vm501_vm3, %v5580_v32, 0.0 }
0x1303   :  { %2802 = vadd.xlane.f32.xlu0 %v2801_v33 }
0x1319   :  { %2860 = vrot.lane.b32.xlu0 %v6234_v49, %s5750_s28 }
0x131d   :  { %2958 = vrot.lane.b32.xlu0 %v6206_v12, %s5742_s22 }
0x1376   :  { %v2800_v34 = vpop.xlane.xlu0 %2799 }
0x1377   :  { %5581 = vrcp.f32 %v2800_v34 }
0x1384   :  { %v5582_v35 = vpop.eup %5581 }
0x1385   :  { %v2806_v37 = vmul.f32 %v5582_v35, %v5578_v8 }
0x1387   :  { %v2808_v40 = vpack.c.bf16 %v2806_v37, %v2806_v37 }
0x1389   :  { %5120 = vmatmul.mubr.msk.bf16.vlgmr.msra.gmra.mxu0 %vm501_vm3, %v2808_v40 }
0x138a   :  { %5130 = vmatpush3.bf16.xpose.msra.mxu0 %v2916_v41  ;;  %5131 = vmatprep.mubr.msk.bf16.mxu0 %vm5749_vm0, %v5747_v7 }
0x138b   :  { %5141 = vmatprep.subr.bf16.mxu0 %v5747_v7 }
0x138c   :  { %v2803_v44 = vpop.xlane.xlu0 %2802 }
0x138d   :  { %5583 = vrcp.f32 %v2803_v44 }
0x1390   :  { %v2861_v52 = vpop.permute.xlu0 %2860 }
0x1391   :  { %v2866_v46 = vsel %vm531_vm2, %v2861_v52, 0  ;;  %5132 = vmatmul.mubr.msk.bf16.vlgmr.msra.gmra.mxu0 %vm408_vm1, %v2909_v45 }
0x1392   :  { %5124 = vmatpush3.bf16.msra.mxu1 %v2866_v46  ;;  %5143 = vmatprep.mubr.msk.bf16.mxu0 %vm5749_vm0, %v5747_v7 }
0x1393   :  { %5135 = vmatprep.subr.bf16.mxu1 %v5747_v7 }
0x1394   :  { %v2959_v54 = vpop.permute.xlu0 %2958 }
0x139a   :  { %v5584_v47 = vpop.eup %5583 }
0x139b   :  { %v2807_v50 = vmul.f32 %v5584_v47, %v5580_v32 }
0x139d   :  { %v2809_v51 = vpack.c.bf16 %v2807_v50, %v2807_v50 }
0x139f   :  { %5126 = vmatmul.mubr.msk.bf16.vlgmr.msra.gmra.mxu1 %vm501_vm3, %v2809_v51 }
0x13a0   :  { %5136 = vmatpush3.bf16.xpose.msra.mxu1 %v2966_v53  ;;  %5137 = vmatprep.mubr.msk.bf16.mxu1 %vm5749_vm0, %v5747_v7 }
0x13a1   :  { %5147 = vmatprep.subr.bf16.mxu1 %v5747_v7 }
0x13a7   :  { %5138 = vmatmul.mubr.msk.bf16.vlgmr.msra.gmra.mxu1 %vm408_vm1, %v2959_v54 }
0x13a8   :  { %5149 = vmatprep.mubr.msk.bf16.mxu1 %vm5749_vm0, %v5747_v7 }
0x1449   :  { %v6290_v55 = vpop.f32.mrf.mxu0 }
0x144b   :  { %v5121_v57 = vpop.f32.mrf.mxu0 }
0x144d   :  { %v2856_v58 = vpop.f32.mrf.mxu0 }
0x144f   :  { %v5122_v59 = vpop.f32.mrf.mxu0 }
0x1451   :  { %v2952_v60 = vpop.f32.mrf.mxu0 }
0x1452   :  { %v3008_v39 = vsel %vm501_vm3, %v2952_v60, -inf }
0x1453   :  { %3009 = vmax.xlane.f32.xlu1 %v3008_v39  ;;  %v5133_v43 = vpop.f32.mrf.mxu0 }
0x1455   :  { %v2955_v63 = vpop.f32.mrf.mxu0 }
0x1457   :  { %v5134_v0 = vpop.f32.mrf.mxu0 }
0x145f   :  { %v6293_v56 = vpop.f32.mrf.mxu1 }
0x1460   :  { %v5230_v1 = vpack.i.bf16 %v6293_v56, %v6290_v55 }
0x1461   :  { %v5127_v3 = vpop.f32.mrf.mxu1 }
0x1463   :  { %v2905_v5 = vpop.f32.mrf.mxu1 }
0x1464   :  { %3032 = vrot.lane.b32.xlu1 %v6204_v9, %s5742_s22 }
0x1465   :  { %v5128_v4 = vpop.f32.mrf.mxu1 }
0x1467   :  { %v3002_v11 = vpop.f32.mrf.mxu1 }
0x1468   :  { %3130 = vrot.lane.b32.xlu1 %v6186_v48, %s5751_s3  ;;  %v3011_v13 = vsel %vm501_vm3, %v3002_v11, -inf }
0x1469   :  { %3012 = vmax.xlane.f32.xlu0 %v3011_v13  ;;  %v5139_v14 = vpop.f32.mrf.mxu1 }
0x146b   :  { %v3005_v15 = vpop.f32.mrf.mxu1 }
0x146c   :  { %3180 = vrot.lane.b32.xlu1 %v6193_v6, %s5751_s3 }
0x146d   :  { %v5140_v16 = vpop.f32.mrf.mxu1 }
0x1470   :  { %3128 = vrot.lane.b32.xlu1 %v6195_v61, %s5751_s3 }
0x14dc   :  { %v3010_v17 = vpop.xlane.xlu1 %3009 }
0x14dd   :  { %v3014_v18 = vsub.f32 %v2952_v60, %v3010_v17 }
0x14df   :  { %v3016_v19 = vmul.f32 1.442695, %v3014_v18 }
0x14e0   :  { %v3033_v20 = vpop.permute.xlu1 %3032 }
0x14e1   :  { %5585 = vpow2.f32 %v3016_v19  ;;  %v3038_v21 = vsel %vm531_vm2, %v3033_v20, 0 }
0x14e2   :  { %5142 = vmatpush3.bf16.msra.mxu0 %v3038_v21 }
0x14e3   :  { %5153 = vmatprep.subr.bf16.mxu0 %v5747_v7 }
0x14e4   :  { %v3131_v33 = vpop.permute.xlu1 %3130 }
0x14e5   :  { %v3136_v36 = vsel %vm408_vm1, %v3131_v33, 0 }
0x14e8   :  { %v3181_v37 = vpop.permute.xlu1 %3180 }
0x14e9   :  { %v3186_v46 = vsel %vm408_vm1, %v3181_v37, 0  ;;  %v5399_v37 = vld [vmem:[%s6453_s4 + $0x68] sm:$0xff]  }
0x14ee   :  { %v5586_v48 = vpop.eup %5585 }
0x14ef   :  { %v3020_v8 = vsel %vm501_vm3, %v5586_v48, 0.0 }
0x14f0   :  { %3021 = vadd.xlane.f32.xlu0 %v3020_v8 }
0x14f2   :  { %v3013_v22 = vpop.xlane.xlu0 %3012 }
0x14f3   :  { %v3015_v6 = vsub.f32 %v3002_v11, %v3013_v22 }
0x14f5   :  { %v3018_v23 = vmul.f32 1.442695, %v3015_v6 }
0x14f7   :  { %5587 = vpow2.f32 %v3018_v23 }
0x1504   :  { %v5588_v28 = vpop.eup %5587 }
0x1505   :  { %v3023_v61 = vsel %vm501_vm3, %v5588_v28, 0.0 }
0x1506   :  { %3024 = vadd.xlane.f32.xlu0 %v3023_v61 }
0x151c   :  { %3080 = vrot.lane.b32.xlu0 %v6234_v49, %s5742_s22 }
0x1520   :  { %3178 = vrot.lane.b32.xlu0 %v6206_v12, %s5751_s3  ;;  %v3129_v12 = vpop.permute.xlu1 %3128 }
0x1579   :  { %v3022_v31 = vpop.xlane.xlu0 %3021 }
0x157a   :  { %5589 = vrcp.f32 %v3022_v31 }
0x1587   :  { %v5590_v32 = vpop.eup %5589 }
0x1588   :  { %v3028_v34 = vmul.f32 %v5590_v32, %v5586_v48 }
0x158a   :  { %v3030_v35 = vpack.c.bf16 %v3028_v34, %v3028_v34 }
0x158c   :  { %5144 = vmatmul.mubr.msk.bf16.vlgmr.msra.gmra.mxu0 %vm501_vm3, %v3030_v35 }
0x158d   :  { %5154 = vmatpush3.bf16.xpose.msra.mxu0 %v3136_v36  ;;  %5155 = vmatprep.mubr.msk.bf16.mxu0 %vm5749_vm0, %v5747_v7  ;;  %v5398_v36 = vld [vmem:[%s6453_s4 + $0x70] sm:$0xff]  }
0x158e   :  { %5165 = vmatprep.subr.bf16.mxu0 %v5747_v7 }
0x158f   :  { %v3025_v40 = vpop.xlane.xlu0 %3024 }
0x1590   :  { %5591 = vrcp.f32 %v3025_v40  ;;  %v5400_v40 = vld [vmem:[%s6453_s4 + $0x60] sm:$0xff]  }
0x1593   :  { %v3081_v41 = vpop.permute.xlu0 %3080 }
0x1594   :  { %v3086_v38 = vsel %vm531_vm2, %v3081_v41, 0  ;;  %5156 = vmatmul.mubr.msk.bf16.vlgmr.msra.gmra.mxu0 %vm408_vm1, %v3129_v12  ;;  %v5401_v12 = vld [vmem:[%s6453_s4 + $0x58] sm:$0xff]   ;;  %v5402_v41 = vld [vmem:[%s6453_s4 + $0x50] sm:$0xff]  }
0x1595   :  { %5148 = vmatpush3.bf16.msra.mxu1 %v3086_v38  ;;  %5167 = vmatprep.mubr.msk.bf16.mxu0 %vm5749_vm0, %v5747_v7  ;;  %v5403_v38 = vld [vmem:[%s6453_s4 + $0x48] sm:$0xff]  }
0x1596   :  { %5159 = vmatprep.subr.bf16.mxu1 %v5747_v7 }
0x1597   :  { %v3179_v47 = vpop.permute.xlu0 %3178 }
0x159d   :  { %v5592_v44 = vpop.eup %5591 }
0x159e   :  { %v3029_v45 = vmul.f32 %v5592_v44, %v5588_v28 }
0x15a0   :  { %v3031_v52 = vpack.c.bf16 %v3029_v45, %v3029_v45 }
0x15a2   :  { %5150 = vmatmul.mubr.msk.bf16.vlgmr.msra.gmra.mxu1 %vm501_vm3, %v3031_v52 }
0x15a3   :  { %5160 = vmatpush3.bf16.xpose.msra.mxu1 %v3186_v46  ;;  %5161 = vmatprep.mubr.msk.bf16.mxu1 %vm5749_vm0, %v5747_v7 }
0x15a4   :  { %5171 = vmatprep.subr.bf16.mxu1 %v5747_v7 }
0x15aa   :  { %5162 = vmatmul.mubr.msk.bf16.vlgmr.msra.gmra.mxu1 %vm408_vm1, %v3179_v47  ;;  %v5404_v47 = vld [vmem:[%s6453_s4 + $0x40] sm:$0xff]  }
0x15ab   :  { %5173 = vmatprep.mubr.msk.bf16.mxu1 %vm5749_vm0, %v5747_v7 }
0x164c   :  { %v3074_v50 = vpop.f32.mrf.mxu0 }
0x164e   :  { %v5145_v51 = vpop.f32.mrf.mxu0 }
0x1650   :  { %v3077_v53 = vpop.f32.mrf.mxu0 }
0x1652   :  { %v5146_v54 = vpop.f32.mrf.mxu0 }
0x1654   :  { %v3172_v57 = vpop.f32.mrf.mxu0 }
0x1655   :  { %v3228_v58 = vsel %vm501_vm3, %v3172_v57, -inf }
0x1656   :  { %3229 = vmax.xlane.f32.xlu1 %v3228_v58  ;;  %v5157_v59 = vpop.f32.mrf.mxu0 }
0x1658   :  { %v3175_v60 = vpop.f32.mrf.mxu0 }
0x165a   :  { %v5158_v39 = vpop.f32.mrf.mxu0 }
0x1662   :  { %v3122_v43 = vpop.f32.mrf.mxu1 }
0x1663   :  { %v5235_v13 = vpack.i.bf16 %v3122_v43, %v3074_v50 }
0x1664   :  { %v5151_v63 = vpop.f32.mrf.mxu1 }
0x1666   :  { %v3125_v0 = vpop.f32.mrf.mxu1 }
0x1667   :  { %3252 = vrot.lane.b32.xlu1 %v6204_v9, %s5751_s3 }
0x1668   :  { %v5152_v3 = vpop.f32.mrf.mxu1 }
0x166a   :  { %v3222_v5 = vpop.f32.mrf.mxu1 }
0x166b   :  { %5231 = vrot.lane.b32.xlu1 %v5230_v1, %s5751_s3  ;;  %v3231_v4 = vsel %vm501_vm3, %v3222_v5, -inf }
0x166c   :  { %3232 = vmax.xlane.f32.xlu0 %v3231_v4  ;;  %v5163_v11 = vpop.f32.mrf.mxu1 }
0x166e   :  { %v3225_v14 = vpop.f32.mrf.mxu1 }
0x166f   :  { %5236 = vrot.lane.b32.xlu1 %v5235_v13, %s5742_s22 }
0x1670   :  { %v5164_v15 = vpop.f32.mrf.mxu1 }
0x16df   :  { %v3230_v16 = vpop.xlane.xlu1 %3229 }
0x16e0   :  { %v3234_v17 = vsub.f32 %v3172_v57, %v3230_v16 }
0x16e2   :  { %v3236_v18 = vmul.f32 1.442695, %v3234_v17 }
0x16e3   :  { %v3253_v9 = vpop.permute.xlu1 %3252 }
0x16e4   :  { %5593 = vpow2.f32 %v3236_v18  ;;  %v3258_v19 = vsel %vm531_vm2, %v3253_v9, 0 }
0x16e5   :  { %5166 = vmatpush3.bf16.msra.mxu0 %v3258_v19 }
0x16e6   :  { %5177 = vmatprep.subr.bf16.mxu0 %v5747_v7 }
0x16e7   :  { %v5232_v58 = vpop.permute.xlu1 %5231 }
0x16e8   :  { %v5234_v60 = vunpack.i.h.bf16 %v5232_v58 }
0x16ea   :  { %v3373_v0 = vsel %vm408_vm1, %v6253_v2, %v5234_v60  ;;  %v4647_v2 = vld [vmem:[%s6454_s5 + $0x1] ss:$0 sm:$0xff] }
0x16eb   :  { %v5237_v59 = vpop.permute.xlu1 %5236 }
0x16ec   :  { %v5239_v39 = vunpack.i.h.bf16 %v5237_v59  ;;  %v5238_v43 = vunpack.i.l.bf16 %v5237_v59 }
0x16ee   :  { %v3375_v11 = vsel %vm1313_vm4, %v3373_v0, %v5239_v39 }
0x16f1   :  { %v5594_v55 = vpop.eup %5593 }
0x16f2   :  { %v3240_v56 = vsel %vm501_vm3, %v5594_v55, 0.0 }
0x16f3   :  { %3241 = vadd.xlane.f32.xlu0 %v3240_v56 }
0x16f5   :  { %v3233_v1 = vpop.xlane.xlu0 %3232 }
0x16f6   :  { %v3235_v20 = vsub.f32 %v3222_v5, %v3233_v1 }
0x16f8   :  { %v3238_v21 = vmul.f32 1.442695, %v3235_v20 }
0x16fa   :  { %5595 = vpow2.f32 %v3238_v21  ;;  %v5407_v21 = vld [vmem:[#allocation5 + $0x1e4] ss:$16 sps:$4 sm:$0xff]  }
0x1707   :  { %v5596_v48 = vpop.eup %5595 }
0x1708   :  { %v3243_v8 = vsel %vm501_vm3, %v5596_v48, 0.0 }
0x1709   :  { %3244 = vadd.xlane.f32.xlu0 %v3243_v8  ;;  %v5405_v8 = vld [vmem:[#allocation5 + $0x1e0] ss:$16 sps:$4 sm:$0xff]  }
0x171f   :  { %3300 = vrot.lane.b32.xlu0 %v6234_v49, %s5751_s3  ;;  %v5397_v49 = vld [vmem:[%s6453_s4 + $0x78] sm:$0xff]  }
0x177c   :  { %v3242_v22 = vpop.xlane.xlu0 %3241 }
0x177d   :  { %5597 = vrcp.f32 %v3242_v22  ;;  %v5408_v22 = vld [vmem:[#allocation5 + $0x1e8] ss:$16 sps:$4 sm:$0xff]  }
0x178a   :  { %v5598_v6 = vpop.eup %5597 }
0x178b   :  { %v3248_v23 = vmul.f32 %v5598_v6, %v5594_v55  ;;  %v5416_v6 = vld [vmem:[#allocation5 + $0x1cc] ss:$16 sps:$4 sm:$0xff]  }
0x178d   :  { %v3250_v28 = vpack.c.bf16 %v3248_v23, %v3248_v23  ;;  %v5411_v23 = vld [vmem:[#allocation5 + $0x1c0] ss:$16 sps:$4 sm:$0xff]  }
0x178f   :  { %5168 = vmatmul.mubr.msk.bf16.vlgmr.msra.gmra.mxu0 %vm501_vm3, %v3250_v28  ;;  %v5414_v28 = vld [vmem:[#allocation5 + $0x1c8] ss:$16 sps:$4 sm:$0xff]  }
0x1790   :  { %5193 = vmatprep.mubr.msk.bf16.mxu0 %vm5749_vm0, %v5747_v7  ;;  %5178 = vmatpush3.bf16.msra.mxu0 %v5397_v49  ;;  %v5426_v49 = vld [vmem:[#allocation5 + $0x188] ss:$16 sps:$4 sm:$0xff]  }
0x1791   :  { %5179 = vmatprep.subr.bf16.mxu0 %v5747_v7 }
0x1792   :  { %v3245_v61 = vpop.xlane.xlu0 %3244 }
0x1793   :  { %5599 = vrcp.f32 %v3245_v61  ;;  %v5419_v61 = vld [vmem:[#allocation5 + $0x1a4] ss:$16 sps:$4 sm:$0xff]  }
0x1794   :  { %5180 = vmatpush3.bf16.msra.mxu0 %v5398_v36  ;;  %v5428_v36 = vld [vmem:[#allocation5 + $0x18c] ss:$16 sps:$4 sm:$0xff]  }
0x1795   :  { %5181 = vmatprep.subr.bf16.mxu0 %v5747_v7 }
0x1796   :  { %v3301_v31 = vpop.permute.xlu0 %3300 }
0x1797   :  { %v3306_v32 = vsel %vm531_vm2, %v3301_v31, 0  ;;  %v5422_v31 = vld [vmem:[#allocation5 + $0x1ac] ss:$16 sps:$4 sm:$0xff]  }
0x1798   :  { %5172 = vmatpush3.bf16.msra.mxu1 %v3306_v32  ;;  %5182 = vmatpush3.bf16.msra.mxu0 %v5399_v37  ;;  %v5417_v32 = vld [vmem:[#allocation5 + $0x1a0] ss:$16 sps:$4 sm:$0xff]   ;;  %v5431_v37 = vld [vmem:[#allocation5 + $0x164] ss:$16 sps:$4 sm:$0xff]  }
0x1799   :  { %5183 = vmatprep.subr.bf16.mxu0 %v5747_v7  ;;  %3760 = vmatprep.subr.bf16.mxu1 %v5407_v21 }
0x179c   :  { %5184 = vmatpush3.bf16.msra.mxu0 %v5400_v40  ;;  %v5434_v40 = vld [vmem:[#allocation5 + $0x16c] ss:$16 sps:$4 sm:$0xff]  }
0x179d   :  { %5185 = vmatprep.subr.bf16.mxu0 %v5747_v7 }
0x17a0   :  { %v5600_v33 = vpop.eup %5599  ;;  %5186 = vmatpush3.bf16.msra.mxu0 %v5401_v12  ;;  %v5429_v12 = vld [vmem:[#allocation5 + $0x160] ss:$16 sps:$4 sm:$0xff]  }
0x17a1   :  { %v3249_v34 = vmul.f32 %v5600_v33, %v5596_v48  ;;  %5187 = vmatprep.subr.bf16.mxu0 %v5747_v7  ;;  %v5410_v48 = vld [vmem:[#allocation5 + $0x1ec] ss:$16 sps:$4 sm:$0xff]   ;;  %v5420_v33 = vld [vmem:[#allocation5 + $0x1a8] ss:$16 sps:$4 sm:$0xff]  }
0x17a3   :  { %v3251_v35 = vpack.c.bf16 %v3249_v34, %v3249_v34  ;;  %v5423_v34 = vld [vmem:[#allocation5 + $0x180] ss:$16 sps:$4 sm:$0xff]  }
0x17a4   :  { %5188 = vmatpush3.bf16.msra.mxu0 %v5402_v41  ;;  %v5432_v41 = vld [vmem:[#allocation5 + $0x168] ss:$16 sps:$4 sm:$0xff]  }
0x17a5   :  { %5174 = vmatmul.mubr.msk.bf16.vlgmr.msra.gmra.mxu1 %vm501_vm3, %v3251_v35  ;;  %5189 = vmatprep.subr.bf16.mxu0 %v5747_v7  ;;  %v5425_v35 = vld [vmem:[#allocation5 + $0x184] ss:$16 sps:$4 sm:$0xff]  }
0x17a6   :  { %3792 = vmatprep.mubr.bf16.mxu1 %v5748_v24  ;;  %3761 = vmatpush1.bf16.msra.mxu1 %v5405_v8 }
0x17a8   :  { %5190 = vmatpush3.bf16.msra.mxu0 %v5403_v38  ;;  %v5437_v38 = vld [vmem:[#allocation5 + $0x144] ss:$16 sps:$4 sm:$0xff]  }
0x17a9   :  { %5191 = vmatprep.subr.bf16.mxu0 %v5747_v7  ;;  %v5233_v7 = vunpack.i.l.bf16 %v5232_v58  ;;  %v5450_v58 = vld [vmem:[#allocation5 + $0x108] ss:$16 sps:$4 sm:$0xff]  }
0x17ab   :  { %v3372_v3 = vsel %vm408_vm1, %v6251_v62, %v5233_v7 }
0x17ac   :  { %5192 = vmatpush3.bf16.msra.mxu0 %v5404_v47  ;;  %v3374_v13 = vsel %vm1313_vm4, %v3372_v3, %v5238_v43  ;;  %v5446_v47 = vld [vmem:[#allocation5 + $0x12c] ss:$16 sps:$4 sm:$0xff]  }
0x17ad   :  { %3803 = vmatprep.subr.bf16.mxu0 %v5410_v48 }
0x184f   :  { %v3294_v44 = vpop.f32.mrf.mxu0 }
0x1851   :  { %v5169_v45 = vpop.f32.mrf.mxu0 }
0x1852   :  { %v5435_v45 = vld [vmem:[#allocation5 + $0x140] ss:$16 sps:$4 sm:$0xff]  }
0x1853   :  { %v3297_v52 = vpop.f32.mrf.mxu0 }
0x1854   :  { %v5438_v52 = vld [vmem:[#allocation5 + $0x148] ss:$16 sps:$4 sm:$0xff]  }
0x1855   :  { %v5170_v46 = vpop.f32.mrf.mxu0 }
0x1856   :  { %v5443_v46 = vld [vmem:[#allocation5 + $0x124] ss:$16 sps:$4 sm:$0xff]  }
0x1865   :  { %v3342_v50 = vpop.f32.mrf.mxu1 }
0x1866   :  { %v5240_v51 = vpack.i.bf16 %v3342_v50, %v3294_v44  ;;  %v5440_v44 = vld [vmem:[#allocation5 + $0x14c] ss:$16 sps:$4 sm:$0xff]   ;;  %v5441_v50 = vld [vmem:[#allocation5 + $0x120] ss:$16 sps:$4 sm:$0xff]  }
0x1867   :  { %v5175_v53 = vpop.f32.mrf.mxu1 }
0x1868   :  { %5241 = vrot.lane.b32.xlu1 %v5240_v51, %s5750_s28  ;;  %v5444_v51 = vld [vmem:[#allocation5 + $0x128] ss:$16 sps:$4 sm:$0xff]   ;;  %v5449_v53 = vld [vmem:[#allocation5 + $0x104] ss:$16 sps:$4 sm:$0xff]  }
0x1869   :  { %v3345_v54 = vpop.f32.mrf.mxu1 }
0x186a   :  { %v5452_v54 = vld [vmem:[#allocation5 + $0x10c] ss:$16 sps:$4 sm:$0xff]  }
0x186b   :  { %v5176_v57 = vpop.f32.mrf.mxu1 }
0x186c   :  { %v5447_v57 = vld [vmem:[#allocation5 + $0x100] ss:$16 sps:$4 sm:$0xff]  }
0x18da   :  { %v5242_v63 = vpop.permute.xlu1 %5241 }
0x18db   :  { %v5244_v5 = vunpack.i.h.bf16 %v5242_v63  ;;  %v5243_v4 = vunpack.i.l.bf16 %v5242_v63 }
0x18dd   :  { %v3377_v14 = vsel %vm1316_vm5, %v3375_v11, %v5244_v5  ;;  %v3376_v15 = vsel %vm1316_vm5, %v3374_v13, %v5243_v4 }
0x18de   :  { %v3378_v16 = vpack.c.bf16 %v3377_v14, %v3376_v15 }
0x18e0   :  { %5194 = vmatmul.mubr.bf16.vlgmr.msra.gmra.mxu0 %v3378_v16 }
0x18e1   :  { %3835 = vmatprep.mubr.bf16.mxu0 %v5748_v24  ;;  %3804 = vmatpush1.bf16.msra.mxu0 %v5408_v22  ;;  %v5453_v22 = vld [vmem:[#allocation7 + $0x178] sm:$0xff]  }
0x18e2   :  { %3805 = vmatprep.subr.bf16.mxu0 %v5416_v6  ;;  %v5455_v6 = vld [vmem:[#allocation7 + $0x138] sm:$0xff]  }
0x18e5   :  { %3806 = vmatpush1.bf16.msra.mxu0 %v5414_v28  ;;  %v5457_v28 = vld [vmem:[#allocation7 + $0x170] sm:$0xff]  }
0x18e6   :  { %3807 = vmatprep.subr.bf16.mxu0 %v5422_v31  ;;  %v5459_v31 = vld [vmem:[#allocation7 + $0x130] sm:$0xff]  }
0x18e9   :  { %3808 = vmatpush1.bf16.msra.mxu0 %v5420_v33  ;;  %v5461_v33 = vld [vmem:[#allocation7 + $0x168] sm:$0xff]  }
0x18ea   :  { %3809 = vmatprep.subr.bf16.mxu0 %v5428_v36  ;;  %v5465_v36 = vld [vmem:[#allocation7 + $0x160] sm:$0xff]  }
0x18ed   :  { %3810 = vmatpush1.bf16.msra.mxu0 %v5426_v49  ;;  %v5464_v49 = vld [vmem:[#allocation7 + $0x1a8] sm:$0xff]  }
0x18ee   :  { %3811 = vmatprep.subr.bf16.mxu0 %v5434_v40  ;;  %v5467_v40 = vld [vmem:[#allocation7 + $0x120] sm:$0xff]  }
0x18f1   :  { %3812 = vmatpush1.bf16.msra.mxu0 %v5432_v41  ;;  %v5469_v41 = vld [vmem:[#allocation7 + $0x158] sm:$0xff]  }
0x18f2   :  { %3813 = vmatprep.subr.bf16.mxu0 %v5440_v44  ;;  %v5471_v44 = vld [vmem:[#allocation7 + $0x118] sm:$0xff]  }
0x18f5   :  { %3814 = vmatpush1.bf16.msra.mxu0 %v5438_v52  ;;  %v5473_v52 = vld [vmem:[#allocation7 + $0x150] sm:$0xff]  }
0x18f6   :  { %3815 = vmatprep.subr.bf16.mxu0 %v5446_v47  ;;  %v5475_v47 = vld [vmem:[#allocation7 + $0x110] sm:$0xff]  }
0x18f9   :  { %3816 = vmatpush1.bf16.msra.mxu0 %v5444_v51  ;;  %v5477_v51 = vld [vmem:[#allocation7 + $0x148] sm:$0xff]  }
0x18fa   :  { %3817 = vmatprep.subr.bf16.mxu0 %v5452_v54  ;;  %v5479_v54 = vld [vmem:[#allocation7 + $0x108] sm:$0xff]  }
0x18fd   :  { %3818 = vmatpush1.bf16.msra.mxu0 %v5450_v58  ;;  %v5481_v58 = vld [vmem:[#allocation7 + $0x140] sm:$0xff]  }
0x19a0   :  { %v3478_v17 = vpop.f32.mrf.mxu0 }
0x19a1   :  { %v3485_v62 = vadd.f32 %v3478_v17, %v6154_v10 }
0x19a2   :  { %v5195_v18 = vpop.f32.mrf.mxu0 }
0x19a3   :  { %v6398_v9 = vadd.f32 %v4647_v2, %v3485_v62  ;;  %v4650_v62 = vld [vmem:[%s6455_s6 + $0x1] ss:$0 sm:$0xff] }
0x19a4   :  { %v3481_v19 = vpop.f32.mrf.mxu0 }
0x19a5   :  { %v3486_v55 = vadd.f32 %v3481_v19, %v6158_v42  ;;  %3501 = vadd.xlane.f32.xlu0 %v6398_v9  ;;  %v3507_v20 = vmul.f32 %v6398_v9, %v6398_v9  ;;  %v5413_v42 = vld [vmem:[#allocation5 + $0x1c4] ss:$16 sps:$4 sm:$0xff]  }
0x19a6   :  { %v5196_v56 = vpop.f32.mrf.mxu0  ;;  %3762 = vmatprep.subr.bf16.mxu1 %v5413_v42  ;;  %v5454_v42 = vld [vmem:[#allocation7 + $0x1f8] sm:$0xff]  }
0x19a7   :  { %v6402_v1 = vadd.f32 %v4647_v2, %v3486_v55  ;;  %3763 = vmatpush1.bf16.msra.mxu1 %v5411_v23  ;;  %v5456_v23 = vld [vmem:[#allocation7 + $0x1b8] sm:$0xff]   ;;  %4903 = vmatprep.subr.bf16.mxu0 %v5454_v42 }
0x19a8   :  { %3764 = vmatprep.subr.bf16.mxu1 %v5419_v61  ;;  %v5458_v61 = vld [vmem:[#allocation7 + $0x1f0] sm:$0xff]  }
0x19a9   :  { %3509 = vadd.xlane.f32.xlu0 %v3507_v20  ;;  %3503 = vadd.xlane.f32.xlu1 %v6402_v1  ;;  %v3508_v10 = vmul.f32 %v6402_v1, %v6402_v1  ;;  %v4651_v20 = vld [vmem:[%s6456_s7 + $0x1] ss:$0 sm:$0xff] }
0x19ab   :  { %3765 = vmatpush1.bf16.msra.mxu1 %v5417_v32  ;;  %v5460_v32 = vld [vmem:[#allocation7 + $0x1b0] sm:$0xff]  }
0x19ac   :  { %3766 = vmatprep.subr.bf16.mxu1 %v5425_v35  ;;  %v5463_v35 = vld [vmem:[#allocation7 + $0x128] sm:$0xff]  }
0x19ad   :  { %3511 = vadd.xlane.f32.xlu0 %v3508_v10 }
0x19af   :  { %3767 = vmatpush1.bf16.msra.mxu1 %v5423_v34  ;;  %v5462_v34 = vld [vmem:[#allocation7 + $0x1e8] sm:$0xff]  }
0x19b0   :  { %3768 = vmatprep.subr.bf16.mxu1 %v5431_v37  ;;  %v5466_v37 = vld [vmem:[#allocation7 + $0x1e0] sm:$0xff]  }
0x19b3   :  { %3769 = vmatpush1.bf16.msra.mxu1 %v5429_v12  ;;  %v5468_v12 = vld [vmem:[#allocation7 + $0x1a0] sm:$0xff]  }
0x19b4   :  { %3770 = vmatprep.subr.bf16.mxu1 %v5437_v38  ;;  %v5470_v38 = vld [vmem:[#allocation7 + $0x1d8] sm:$0xff]  }
0x19b7   :  { %3771 = vmatpush1.bf16.msra.mxu1 %v5435_v45  ;;  %v5472_v45 = vld [vmem:[#allocation7 + $0x198] sm:$0xff]  }
0x19b8   :  { %3772 = vmatprep.subr.bf16.mxu1 %v5443_v46  ;;  %v5474_v46 = vld [vmem:[#allocation7 + $0x1d0] sm:$0xff]  }
0x19bb   :  { %3773 = vmatpush1.bf16.msra.mxu1 %v5441_v50  ;;  %v5476_v50 = vld [vmem:[#allocation7 + $0x190] sm:$0xff]  }
0x19bc   :  { %3774 = vmatprep.subr.bf16.mxu1 %v5449_v53  ;;  %v5478_v53 = vld [vmem:[#allocation7 + $0x1c8] sm:$0xff]  }
0x19bf   :  { %3775 = vmatpush1.bf16.msra.mxu1 %v5447_v57  ;;  %v5480_v57 = vld [vmem:[#allocation7 + $0x188] sm:$0xff]  }
0x19c0   :  { %4881 = vmatprep.subr.bf16.mxu1 %v5453_v22 }
0x1a2e   :  { %v3502_v59 = vpop.xlane.xlu0 %3501 }
0x1a2f   :  { %v3505_v60 = vmul.f32 0.0078125, %v3502_v59  ;;  %v5482_v59 = vld [vmem:[#allocation7 + $0x1c0] sm:$0xff]  }
0x1a31   :  { %v3515_v43 = vmul.f32 %v3505_v60, %v3505_v60  ;;  %v3519_v16 = vsub.f32 %v6398_v9, %v3505_v60  ;;  %v5483_v60 = vld [vmem:[#allocation7 + $0x100] sm:$0xff]  }
0x1a32   :  { %v3510_v7 = vpop.xlane.xlu0 %3509  ;;  %v3504_v39 = vpop.xlane.xlu1 %3503 }
0x1a33   :  { %v3513_v63 = vmul.f32 0.0078125, %v3510_v7  ;;  %v3506_v0 = vmul.f32 0.0078125, %v3504_v39  ;;  %v5484_v7 = vld [vmem:[#allocation7 + $0x180] sm:$0xff]  }
0x1a34   :  { %v4652_v39 = vld [vmem:[%s6458_s9 + $0x4] sm:$0xf] }
0x1a35   :  { %v3517_v3 = vsub.f32 %v3513_v63, %v3515_v43  ;;  %v3516_v11 = vmul.f32 %v3506_v0, %v3506_v0  ;;  %v3520_v18 = vsub.f32 %v6402_v1, %v3506_v0  ;;  %v3583_v43 = vrot.slane %v4652_v39, %v6131_v26 }
0x1a36   :  { %v3512_v5 = vpop.xlane.xlu0 %3511  ;;  %v3591_v63 = vrot.slane %v4652_v39, %v1525_v27 }
0x1a37   :  { %v3521_v4 = vadd.f32 1e-05, %v3517_v3  ;;  %v3514_v13 = vmul.f32 0.0078125, %v3512_v5  ;;  %v3587_v5 = vrot.slane %v4652_v39, %v6138_v29 }
0x1a39   :  { %5601 = vrsqrt.f32 %v3521_v4  ;;  %v3518_v14 = vsub.f32 %v3514_v13, %v3516_v11  ;;  %v3595_v4 = vrot.slane %v4652_v39, %v1529_v30 }
0x1a3b   :  { %v3522_v15 = vadd.f32 1e-05, %v3518_v14 }
0x1a3d   :  { %5603 = vrsqrt.f32 %v3522_v15 }
0x1a46   :  { %v5602_v17 = vpop.eup %5601 }
0x1a47   :  { %v3525_v2 = vmul.f32 %v5602_v17, %v3519_v16 }
0x1a49   :  { %v3533_v56 = vmul.f32 %v4650_v62, %v3525_v2 }
0x1a4a   :  { %v5604_v19 = vpop.eup %5603 }
0x1a4b   :  { %v3526_v55 = vmul.f32 %v5604_v19, %v3520_v18  ;;  %v3541_v21 = vadd.f32 %v4651_v20, %v3533_v56 }
0x1a4d   :  { %v3534_v10 = vmul.f32 %v4650_v62, %v3526_v55 }
0x1a4f   :  { %v3542_v48 = vadd.f32 %v4651_v20, %v3534_v10 }
0x1a51   :  { %v3543_v8 = vpack.c.bf16 %v3542_v48, %v3541_v21 }
0x1a53   :  { %3793 = vmatmul.mubr.bf16.vlgmr.msra.gmra.mxu1 %v3543_v8  ;;  %3836 = vmatmul.mubr.bf16.vlgmr.msra.gmra.mxu0 %v3543_v8 }
0x1a54   :  { %4882 = vmatpush3.bf16.msra.mxu1 %v5455_v6  ;;  %4904 = vmatpush3.bf16.msra.mxu0 %v5456_v23 }
0x1a55   :  { %4883 = vmatprep.subr.bf16.mxu1 %v5457_v28  ;;  %4905 = vmatprep.subr.bf16.mxu0 %v5458_v61 }
0x1a58   :  { %4884 = vmatpush3.bf16.msra.mxu1 %v5459_v31  ;;  %4906 = vmatpush3.bf16.msra.mxu0 %v5460_v32 }
0x1a59   :  { %4885 = vmatprep.subr.bf16.mxu1 %v5461_v33  ;;  %4907 = vmatprep.subr.bf16.mxu0 %v5462_v34 }
0x1a5c   :  { %4886 = vmatpush3.bf16.msra.mxu1 %v5463_v35  ;;  %4908 = vmatpush3.bf16.msra.mxu0 %v5464_v49 }
0x1a5d   :  { %4887 = vmatprep.subr.bf16.mxu1 %v5465_v36  ;;  %4909 = vmatprep.subr.bf16.mxu0 %v5466_v37 }
0x1a60   :  { %4888 = vmatpush3.bf16.msra.mxu1 %v5467_v40  ;;  %4910 = vmatpush3.bf16.msra.mxu0 %v5468_v12 }
0x1a61   :  { %4889 = vmatprep.subr.bf16.mxu1 %v5469_v41  ;;  %4911 = vmatprep.subr.bf16.mxu0 %v5470_v38 }
0x1a64   :  { %4890 = vmatpush3.bf16.msra.mxu1 %v5471_v44  ;;  %4912 = vmatpush3.bf16.msra.mxu0 %v5472_v45 }
0x1a65   :  { %4891 = vmatprep.subr.bf16.mxu1 %v5473_v52  ;;  %4913 = vmatprep.subr.bf16.mxu0 %v5474_v46 }
0x1a68   :  { %4892 = vmatpush3.bf16.msra.mxu1 %v5475_v47  ;;  %4914 = vmatpush3.bf16.msra.mxu0 %v5476_v50 }
0x1a69   :  { %4893 = vmatprep.subr.bf16.mxu1 %v5477_v51  ;;  %4915 = vmatprep.subr.bf16.mxu0 %v5478_v53 }
0x1a6c   :  { %4894 = vmatpush3.bf16.msra.mxu1 %v5479_v54  ;;  %4916 = vmatpush3.bf16.msra.mxu0 %v5480_v57 }
0x1a6d   :  { %4895 = vmatprep.subr.bf16.mxu1 %v5481_v58  ;;  %4917 = vmatprep.subr.bf16.mxu0 %v5482_v59 }
0x1a70   :  { %4896 = vmatpush3.bf16.msra.mxu1 %v5483_v60  ;;  %4918 = vmatpush3.bf16.msra.mxu0 %v5484_v7 }
0x1b13   :  { %v3794_v0 = vpop.f32.mrf.mxu1  ;;  %v3837_v3 = vpop.f32.mrf.mxu0 }
0x1b14   :  { %v3795_v11 = vadd.f32 %v3794_v0, %v3583_v43  ;;  %v3838_v13 = vadd.f32 %v3837_v3, %v3591_v63 }
0x1b15   :  { %v3796_v14 = vpop.f32.mrf.mxu1  ;;  %v3839_v15 = vpop.f32.mrf.mxu0 }
0x1b16   :  { %v3854_v16 = vmul.f32 0.70710677, %v3795_v11  ;;  %v3856_v17 = vmul.f32 0.70710677, %v3838_v13  ;;  %v3797_v2 = vadd.f32 %v3796_v14, %v3587_v5  ;;  %v3840_v62 = vadd.f32 %v3839_v15, %v3595_v4 }
0x1b17   :  { %v3798_v18 = vpop.f32.mrf.mxu1  ;;  %v3841_v19 = vpop.f32.mrf.mxu0  ;;  %v3846_v33 = vmul.f32 0.5, %v3795_v11  ;;  %v3848_v54 = vmul.f32 0.5, %v3838_v13 }
0x1b18   :  { %v3799_v55 = vadd.f32 %v3798_v18, %v3583_v43  ;;  %v3842_v56 = vadd.f32 %v3841_v19, %v3591_v63  ;;  %5605 = verf.f32 %v3854_v16  ;;  %v3855_v27 = vmul.f32 0.70710677, %v3797_v2 }
0x1b19   :  { %v3800_v20 = vpop.f32.mrf.mxu1  ;;  %v3843_v10 = vpop.f32.mrf.mxu0  ;;  %5607 = verf.f32 %v3856_v17  ;;  %v3857_v21 = vmul.f32 0.70710677, %v3840_v62  ;;  %v3847_v34 = vmul.f32 0.5, %v3797_v2  ;;  %v3849_v47 = vmul.f32 0.5, %v3840_v62 }
0x1b1a   :  { %v3858_v25 = vmul.f32 0.70710677, %v3799_v55  ;;  %5609 = verf.f32 %v3855_v27  ;;  %v3860_v30 = vmul.f32 0.70710677, %v3842_v56  ;;  %v3801_v48 = vadd.f32 %v3800_v20, %v3587_v5 }
0x1b1b   :  { %v3844_v8 = vadd.f32 %v3843_v10, %v3595_v4  ;;  %5611 = verf.f32 %v3857_v21  ;;  %v3850_v12 = vmul.f32 0.5, %v3799_v55  ;;  %v3852_v45 = vmul.f32 0.5, %v3842_v56  ;;  %v4718_v56 = vld [vmem:[%s6460_s11 + $0x1] ss:$0 sm:$0xff] }
0x1b1c   :  { %5613 = verf.f32 %v3858_v25  ;;  %v3859_v22 = vmul.f32 0.70710677, %v3801_v48  ;;  %v3851_v52 = vmul.f32 0.5, %v3801_v48 }
0x1b1d   :  { %5615 = verf.f32 %v3860_v30  ;;  %v3861_v42 = vmul.f32 0.70710677, %v3844_v8  ;;  %v3853_v51 = vmul.f32 0.5, %v3844_v8  ;;  %v5487_v8 = vld [vmem:[#allocation8 + $0x74] ss:$8 sps:$4 sm:$0xff]  }
0x1b1e   :  { %5617 = verf.f32 %v3859_v22  ;;  %v5485_v22 = vld [vmem:[#allocation8 + $0x70] ss:$8 sps:$4 sm:$0xff]   ;;  %4394 = vmatprep.subr.bf16.mxu1 %v5487_v8 }
0x1b1f   :  { %5619 = verf.f32 %v3861_v42  ;;  %v5490_v42 = vld [vmem:[#allocation8 + $0x64] ss:$8 sps:$4 sm:$0xff]  }
0x1b25   :  { %v5606_v6 = vpop.eup %5605 }
0x1b26   :  { %v5608_v23 = vpop.eup %5607  ;;  %v3870_v37 = vadd.f32 1.0, %v5606_v6  ;;  %v5488_v6 = vld [vmem:[#allocation8 + $0x60] ss:$8 sps:$4 sm:$0xff]  }
0x1b27   :  { %v5610_v28 = vpop.eup %5609  ;;  %v3872_v44 = vadd.f32 1.0, %v5608_v23  ;;  %v5491_v23 = vld [vmem:[#allocation8 + $0x50] ss:$8 sps:$4 sm:$0xff]  }
0x1b28   :  { %v5612_v61 = vpop.eup %5611  ;;  %v3871_v35 = vadd.f32 1.0, %v5610_v28  ;;  %v3878_v60 = vmul.f32 %v3870_v37, %v3846_v33  ;;  %v5496_v28 = vld [vmem:[#allocation8 + $0x44] ss:$8 sps:$4 sm:$0xff]   ;;  %v5500_v33 = vld [vmem:[#allocation8 + $0x20] ss:$8 sps:$4 sm:$0xff]  }
0x1b29   :  { %v5614_v31 = vpop.eup %5613  ;;  %v3873_v40 = vadd.f32 1.0, %v5612_v61  ;;  %v3880_v43 = vmul.f32 %v3872_v44, %v3848_v54  ;;  %v5499_v61 = vld [vmem:[#allocation8 + $0x34] ss:$8 sps:$4 sm:$0xff]  }
0x1b2a   :  { %v5616_v32 = vpop.eup %5615  ;;  %v3874_v49 = vadd.f32 1.0, %v5614_v31  ;;  %v3879_v57 = vmul.f32 %v3871_v35, %v3847_v34  ;;  %v5497_v31 = vld [vmem:[#allocation8 + $0x30] ss:$8 sps:$4 sm:$0xff]   ;;  %v5505_v34 = vld [vmem:[#allocation8 + $0x14] ss:$8 sps:$4 sm:$0xff]  }
0x1b2b   :  { %v5618_v36 = vpop.eup %5617  ;;  %v3876_v41 = vadd.f32 1.0, %v5616_v32  ;;  %v3881_v7 = vmul.f32 %v3873_v40, %v3849_v47  ;;  %v5502_v32 = vld [vmem:[#allocation8 + $0x24] ss:$8 sps:$4 sm:$0xff]   ;;  %v5503_v35 = vld [vmem:[#allocation8 + $0x10] ss:$8 sps:$4 sm:$0xff]  }
0x1b2c   :  { %v5620_v38 = vpop.eup %5619  ;;  %v3875_v46 = vadd.f32 1.0, %v5618_v36  ;;  %v3882_v50 = vmul.f32 %v3874_v49, %v3850_v12  ;;  %v5508_v49 = vld [vmem:[#allocation8 + $0x4] ss:$8 sps:$4 sm:$0xff]   ;;  %v5506_v36 = vld [vmem:[#allocation8] ss:$8 sps:$4 sm:$0xff]  }
0x1b2d   :  { %v3877_v53 = vadd.f32 1.0, %v5620_v38  ;;  %v3884_v58 = vmul.f32 %v3876_v41, %v3852_v45 }
0x1b2e   :  { %v3883_v59 = vmul.f32 %v3875_v46, %v3851_v52  ;;  %v3886_v0 = vpack.c.bf16 %v3882_v50, %v3878_v60  ;;  %v4719_v60 = vld [vmem:[%s6461_s12] ss:$0 sm:$0xff]  ;;  %s5752_s12 = smov [#allocation10]  }
0x1b2f   :  { %v3885_v39 = vmul.f32 %v3877_v53, %v3853_v51  ;;  %v3888_v5 = vpack.c.bf16 %v3884_v58, %v3880_v43 }
0x1b30   :  { %v3887_v63 = vpack.c.bf16 %v3883_v59, %v3879_v57 }
0x1b31   :  { %v3889_v3 = vpack.c.bf16 %v3885_v39, %v3881_v7 }
0x1b32   :  { %4179 = vmatprep.mubr.bf16.mxu1 %v3887_v63 }
0x1b33   :  { %4220 = vmatprep.mubr.bf16.mxu0 %v3889_v3  ;;  %4180 = vmatmul.mubr.bf16.vlgmr.msra.gmra.mxu1 %v3886_v0  ;;  %v4720_v0 = vld [vmem:[%s6462_s13] ss:$0 sm:$0xff]  ;;  %s4446_s13 = sshll.u32 %s5752_s12, 4  ;;  %s4447_s13 = int_to_ptr.vmem [resolvable:$true] %s4446_s13 }
0x1b34   :  { %4221 = vmatmul.mubr.bf16.vlgmr.msra.gmra.mxu0 %v3888_v5  ;;  %4426 = vmatprep.mubr.bf16.mxu1 %v5748_v24  ;;  %p5712_p7 = scmp.lt.s32.totalorder %s4447_s13, %s4447_s13 }
0x1b35   :  { %4395 = vmatpush1.bf16.msra.mxu1 %v5485_v22 }
0x1b36   :  { %4396 = vmatprep.subr.bf16.mxu1 %v5490_v42 }
0x1b39   :  { %4397 = vmatpush1.bf16.msra.mxu1 %v5488_v6 }
0x1bf3   :  { %v4897_v4 = vpop.f32.mrf.mxu1 }
0x1bf4   :  { %v4919_v11 = vpop.f32.mrf.mxu0 }
0x1bf5   :  { %v4898_v13 = vpop.f32.mrf.mxu1 }
0x1bf6   :  { %v4899_v14 = vadd.f32 %v4898_v13, %v4897_v4  ;;  %v4920_v15 = vpop.f32.mrf.mxu0  ;;  %v4302_v13 = vld [vmem:[%s6464_s15] sm:$0x3]  ;;  %s5707_s15 = scalar_lea.vmem %s4447_s13, 512 }
0x1bf7   :  { %v4921_v16 = vadd.f32 %v4920_v15, %v4919_v11  ;;  %v4900_v17 = vpop.f32.mrf.mxu1  ;;  %v4311_v15 = vrot.slane %v4302_v13, %v6138_v29  ;;  %p5708_p6 = scmp.ne.s32.totalorder %s4447_s13, %s5707_s15  ;;  %p5713_p8 = scmp.lt.s32.totalorder %s5707_s15, %s5707_s15 }
0x1bf8   :  { %v4922_v2 = vpop.f32.mrf.mxu0 }
0x1bf9   :  { %v4223_v62 = vadd.f32 %v4921_v16, %v4899_v14  ;;  %v4901_v18 = vpop.f32.mrf.mxu1  ;;  %v4307_v14 = vrot.slane %v4302_v13, %v6131_v26  ;;  %p5714_p9 = por %p5713_p8, %p5712_p7 }
0x1bfa   :  { %v4902_v19 = vadd.f32 %v4901_v18, %v4900_v17  ;;  %v4923_v55 = vpop.f32.mrf.mxu0 }
0x1bfb   :  { %v4229_v27 = vadd.f32 %v4223_v62, %v6398_v9  ;;  %v4924_v20 = vadd.f32 %v4923_v55, %v4922_v2  ;;  %v5493_v9 = vld [vmem:[#allocation8 + $0x54] ss:$8 sps:$4 sm:$0xff]   ;;  %p5715_p10 = pnand %p5714_p9, %p5708_p6 }
0x1bfc   :  { %4398 = vmatprep.subr.bf16.mxu1 %v5493_v9 }
0x1bfd   :  { %v4226_v24 = vadd.f32 %v4924_v20, %v4902_v19  ;;  %v4239_v10 = vadd.f32 %v4718_v56, %v4229_v27  ;;  %4399 = vmatpush1.bf16.msra.mxu1 %v5491_v23 }
0x1bfe   :  { %4400 = vmatprep.subr.bf16.mxu1 %v5496_v28 }
0x1bff   :  { %v4230_v21 = vadd.f32 %v4226_v24, %v6402_v1  ;;  %4243 = vadd.xlane.f32.xlu0 %v4239_v10  ;;  %v4249_v30 = vmul.f32 %v4239_v10, %v4239_v10  ;;  %v5494_v1 = vld [vmem:[#allocation8 + $0x40] ss:$8 sps:$4 sm:$0xff]  }
0x1c01   :  { %v4240_v25 = vadd.f32 %v4718_v56, %v4230_v21  ;;  %4401 = vmatpush1.bf16.msra.mxu1 %v5494_v1 }
0x1c02   :  { %4402 = vmatprep.subr.bf16.mxu1 %v5499_v61 }
0x1c03   :  { %4245 = vadd.xlane.f32.xlu1 %v4240_v25  ;;  %4251 = vadd.xlane.f32.xlu0 %v4249_v30  ;;  %v4250_v48 = vmul.f32 %v4240_v25, %v4240_v25 }
0x1c05   :  { %4403 = vmatpush1.bf16.msra.mxu1 %v5497_v31 }
0x1c06   :  { %4404 = vmatprep.subr.bf16.mxu1 %v5502_v32 }
0x1c07   :  { %4253 = vadd.xlane.f32.xlu1 %v4250_v48 }
0x1c09   :  { %4405 = vmatpush1.bf16.msra.mxu1 %v5500_v33 }
0x1c0a   :  { %4406 = vmatprep.subr.bf16.mxu1 %v5505_v34 }
0x1c0d   :  { %4407 = vmatpush1.bf16.msra.mxu1 %v5503_v35 }
0x1c0e   :  { %4408 = vmatprep.subr.bf16.mxu1 %v5508_v49 }
0x1c11   :  { %4409 = vmatpush1.bf16.msra.mxu1 %v5506_v36 }
0x1c88   :  { %v4244_v37 = vpop.xlane.xlu0 %4243 }
0x1c89   :  { %v4247_v40 = vmul.f32 0.0078125, %v4244_v37 }
0x1c8b   :  { %v4257_v38 = vmul.f32 %v4247_v40, %v4247_v40  ;;  %v4261_v57 = vsub.f32 %v4239_v10, %v4247_v40 }
0x1c8c   :  { %v4246_v12 = vpop.xlane.xlu1 %4245  ;;  %v4252_v41 = vpop.xlane.xlu0 %4251 }
0x1c8d   :  { %v4248_v44 = vmul.f32 0.0078125, %v4246_v12  ;;  %v4255_v45 = vmul.f32 0.0078125, %v4252_v41 }
0x1c8f   :  { %v4259_v52 = vsub.f32 %v4255_v45, %v4257_v38  ;;  %v4258_v47 = vmul.f32 %v4248_v44, %v4248_v44  ;;  %v4262_v7 = vsub.f32 %v4240_v25, %v4248_v44 }
0x1c90   :  { %v4254_v46 = vpop.xlane.xlu1 %4253 }
0x1c91   :  { %v4263_v50 = vadd.f32 1e-05, %v4259_v52  ;;  %v4256_v51 = vmul.f32 0.0078125, %v4254_v46 }
0x1c93   :  { %5621 = vrsqrt.f32 %v4263_v50  ;;  %v4260_v53 = vsub.f32 %v4256_v51, %v4258_v47 }
0x1c95   :  { %v4264_v54 = vadd.f32 1e-05, %v4260_v53 }
0x1c97   :  { %5623 = vrsqrt.f32 %v4264_v54 }
0x1ca0   :  { %v5622_v58 = vpop.eup %5621 }
0x1ca1   :  { %v4267_v59 = vmul.f32 %v5622_v58, %v4261_v57 }
0x1ca3   :  { %v4275_v63 = vmul.f32 %v4719_v60, %v4267_v59 }
0x1ca4   :  { %v5624_v39 = vpop.eup %5623 }
0x1ca5   :  { %v4268_v43 = vmul.f32 %v5624_v39, %v4262_v7  ;;  %v4283_v5 = vadd.f32 %v4720_v0, %v4275_v63 }
0x1ca7   :  { %v4276_v3 = vmul.f32 %v4719_v60, %v4268_v43 }
0x1ca9   :  { %v4284_v4 = vadd.f32 %v4720_v0, %v4276_v3 }
0x1cab   :  { %v4285_v11 = vpack.c.bf16 %v4284_v4, %v4283_v5 }
0x1cad   :  { %4427 = vmatmul.mubr.bf16.vlgmr.msra.gmra.mxu1 %v4285_v11 }
0x1d6d   :  { %v4428_v16 = vpop.f32.mrf.mxu1 }
0x1d6e   :  { %v4429_v17 = vadd.f32 %v4428_v16, %v4307_v14 }
0x1d6f   :  { %v4430_v2 = vpop.f32.mrf.mxu1 }
0x1d70   :  { %4437 = vst [vmem:[#allocation10] sm:$0xff] %v4429_v17  ;;  %v4431_v62 = vadd.f32 %v4430_v2, %v4311_v15 }
0x1d71   :  { %v4432_v18 = vpop.f32.mrf.mxu1 }
0x1d72   :  { %4438 = vst [vmem:[#allocation10 + $0x8] sm:$0xff] %v4431_v62  ;;  %v4433_v19 = vadd.f32 %v4432_v18, %v4307_v14 }
0x1d73   :  { %v4434_v55 = vpop.f32.mrf.mxu1 }
0x1d74   :  { %4439 = vst [vmem:[#allocation10 + $0x10] sm:$0xff] %v4433_v19  ;;  %v4435_v56 = vadd.f32 %v4434_v55, %v4311_v15 }
0x1d76   :  { %4440 = vst [vmem:[#allocation10 + $0x18] sm:$0xff] %v4435_v56 }
0x1d77   :  { %5718 = shalt.err (!%p5715_p10)
}
0x1d78   :  { %4452 = dma.vmem_to_hbm [thread:$0]  %s4447_s13, 512, %s6465_s16, [#allocation4], %s5736_s24, %s5736_s24, %s5737_s25  }
0x1d79   :  { %5733 = dma.done.wait [#allocation4], 512  }
0x1d7a   :  { %5734 = vsyncadd [#allocation4], 4294966784 }
0x1d7b   :  { %4456 = vsyncpa [#allocation3], 1 }
0x1d7c   :  { %4457 = vsyncpa [#allocation6], 1 }
0x1d7d   :  { %4458 = vsyncpa [#allocation9], 1 }
0x1d7e   :  { %4459 = vsyncpa [#allocation4], 1 }

</bundles_post_ra>
